<compile_context>
chip_gen: v7x
topology: tpu7x:2x2x1
jax: 0.10.0
libtpu: 0.0.40
codegen_flags: <defaults>
</compile_context>

<pallas_src>
import functools

import jax
import jax.numpy as jnp
from jax.experimental import pallas as pl
from jax.experimental.pallas import tpu as pltpu


_TM_MAX = 512          # max rows per GEMM tile (mem-bound sweet spot, tiny VMEM footprint here)
_EPS = 1e-5


def _round_up(x, m):
    return ((x + m - 1) // m) * m


# ----------------------------------------------------------------------------
# Pallas kernels
# ----------------------------------------------------------------------------
def _conv_gemm_kernel(*refs, relu, has_residual):
    """Fused im2col-GEMM (bf16 MXU) + bias [+ residual] [+ ReLU], f32 epilogue."""
    if has_residual:
        lhs_ref, w_ref, b_ref, r_ref, o_ref = refs
    else:
        lhs_ref, w_ref, b_ref, o_ref = refs
    y = jnp.dot(lhs_ref[...], w_ref[...], preferred_element_type=jnp.float32)
    y = y + b_ref[...]
    if has_residual:
        y = y + r_ref[...]
    if relu:
        y = jnp.maximum(y, 0.0)
    o_ref[...] = y


def _tail_kernel(x_ref, w1a_ref, w1b_ref, b1_ref, w2_ref, b2_ref,
                 ea_ref, eb_ref, *, t):
    """Fused TSTP (mean/std over frames) + seg_1 + ReLU + folded BN1d + seg_2.

    x: (B, T, D) with T = frames (sublanes) and D = C*H (lanes).
    std uses the unbiased estimator (t-1), guarded for t == 1.
    """
    x = x_ref[...]                                       # (B, T, D) f32
    mean = jnp.mean(x, axis=1)                           # (B, D)
    diff = x - mean[:, None, :]
    denom = float(t - 1) if t > 1 else 1.0               # guard t<=1 (torch would give nan)
    std = jnp.sqrt(jnp.sum(diff * diff, axis=1) / denom)
    # seg_1 on concat(mean, std) without materializing the concat:
    ea = (jnp.dot(mean, w1a_ref[...], preferred_element_type=jnp.float32)
          + jnp.dot(std, w1b_ref[...], preferred_element_type=jnp.float32)
          + b1_ref[...])
    ea_ref[...] = ea
    h = jnp.maximum(ea, 0.0)                             # ReLU; BN1d folded into w2/b2
    eb_ref[...] = jnp.dot(h, w2_ref[...], preferred_element_type=jnp.float32) + b2_ref[...]


# ----------------------------------------------------------------------------
# Wrappers (glue: padding / im2col / reshapes in NHWC)
# ----------------------------------------------------------------------------
def _im2col_nhwc(x_nhwc, k, stride, pad):
    """x: (B, H, W, C) -> patches (B*Ho*Wo, K*K*C), flattened (kh, kw, c)."""
    B, H, W, C = x_nhwc.shape
    xp = jnp.pad(x_nhwc, ((0, 0), (pad, pad), (pad, pad), (0, 0)))
    Ho = (H + 2 * pad - k) // stride + 1
    Wo = (W + 2 * pad - k) // stride + 1
    cols = []
    for kh in range(k):
        for kw in range(k):
            cols.append(xp[:, kh: kh + (Ho - 1) * stride + 1: stride,
                           kw: kw + (Wo - 1) * stride + 1: stride, :])   # (B,Ho,Wo,C)
    col = jnp.stack(cols, axis=3)                       # (B, Ho, Wo, K*K, C)
    return col.reshape(B * Ho * Wo, k * k * C), Ho, Wo


def conv2d_bn_act(x_nhwc, wmat_bf16, bias, *, k, stride, relu, residual_nhwc=None):
    """NHWC Conv2d(bias=False, pad=k//2) + folded BN [+ residual] [+ ReLU].

    wmat_bf16: (K*K*Cin, Cout) bf16 with BN scale already folded in.
    bias:      (Cout,) f32 (folded BN shift).
    """
    B, H, W, Cin = x_nhwc.shape
    Kdim, Cout = wmat_bf16.shape

    x_b = x_nhwc.astype(jnp.bfloat16)                   # bf16 MXU inputs, halves patch bytes
    if k == 1:
        xs = x_b[:, ::stride, ::stride, :] if stride > 1 else x_b
        Ho, Wo = xs.shape[1], xs.shape[2]
        lhs = xs.reshape(B * Ho * Wo, Cin)              # no im2col for 1x1 shortcut
    else:
        lhs, Ho, Wo = _im2col_nhwc(x_b, k, stride, k // 2)

    M = B * Ho * Wo
    tm = _TM_MAX if M >= _TM_MAX else M                 # never a giant single tile at large M
    Mpad = _round_up(M, tm)
    if Mpad != M:
        lhs = jnp.pad(lhs, ((0, Mpad - M), (0, 0)))

    bias2 = bias.reshape(1, Cout).astype(jnp.float32)

    has_res = residual_nhwc is not None
    in_arrays = [lhs, wmat_bf16, bias2]
    in_specs = [
        pl.BlockSpec((tm, Kdim), lambda i: (i, 0)),
        pl.BlockSpec((Kdim, Cout), lambda i: (0, 0)),
        pl.BlockSpec((1, Cout), lambda i: (0, 0)),
    ]
    if has_res:
        res = residual_nhwc.reshape(M, Cout).astype(jnp.float32)
        if Mpad != M:
            res = jnp.pad(res, ((0, Mpad - M), (0, 0)))
        in_arrays.append(res)
        in_specs.append(pl.BlockSpec((tm, Cout), lambda i: (i, 0)))

    out = pl.pallas_call(
        functools.partial(_conv_gemm_kernel, relu=relu, has_residual=has_res),
        out_shape=jax.ShapeDtypeStruct((Mpad, Cout), jnp.float32),
        grid=(Mpad // tm,),
        in_specs=in_specs,
        out_specs=pl.BlockSpec((tm, Cout), lambda i: (i, 0)),
        compiler_params=pltpu.CompilerParams(dimension_semantics=("parallel",)),
    )(*in_arrays)

    if Mpad != M:
        out = out[:M]
    return out.reshape(B, Ho, Wo, Cout)


def tail_pool_embed(x_pool, w1a, w1b, b1, w2, b2):
    """Fused TSTP + seg_1 + ReLU + (folded) seg_bn_1 + seg_2."""
    B, T, D = x_pool.shape
    E = w1a.shape[1]
    return pl.pallas_call(
        functools.partial(_tail_kernel, t=T),
        out_shape=(jax.ShapeDtypeStruct((B, E), jnp.float32),
                   jax.ShapeDtypeStruct((B, E), jnp.float32)),
        grid=(1,),
        in_specs=[
            pl.BlockSpec((B, T, D), lambda i: (0, 0, 0)),
            pl.BlockSpec((D, E), lambda i: (0, 0)),
            pl.BlockSpec((D, E), lambda i: (0, 0)),
            pl.BlockSpec((1, E), lambda i: (0, 0)),
            pl.BlockSpec((E, E), lambda i: (0, 0)),
            pl.BlockSpec((1, E), lambda i: (0, 0)),
        ],
        out_specs=(pl.BlockSpec((B, E), lambda i: (0, 0)),
                   pl.BlockSpec((B, E), lambda i: (0, 0))),
    )(x_pool, w1a, w1b, b1.reshape(1, E), w2, b2.reshape(1, E))


# ----------------------------------------------------------------------------
# Parameter initialization (deterministic, synthetic; BN folded at init time)
# ----------------------------------------------------------------------------
def _conv_w(key, cout, cin, k):
    fan_in = cin * k * k
    return jax.random.normal(key, (cout, cin, k, k), jnp.float32) * (2.0 / fan_in) ** 0.5


def _bn_fold(key, c):
    k1, k2, k3, k4 = jax.random.split(key, 4)
    gamma = 1.0 + 0.1 * jax.random.normal(k1, (c,), jnp.float32)
    beta = 0.1 * jax.random.normal(k2, (c,), jnp.float32)
    mean = 0.1 * jax.random.normal(k3, (c,), jnp.float32)
    var = jax.random.uniform(k4, (c,), jnp.float32, minval=0.5, maxval=1.5)
    scale = gamma / jnp.sqrt(var + _EPS)
    bias = beta - mean * scale
    return scale, bias


def _fold_conv_bn(key, cout, cin, k):
    """Conv weight + eval-mode BN folded to (K*K*Cin, Cout) bf16 matrix + f32 bias."""
    kw, kb = jax.random.split(key)
    w = _conv_w(kw, cout, cin, k)                        # (Cout, Cin, K, K)
    scale, bias = _bn_fold(kb, cout)
    wmat = jnp.transpose(w, (2, 3, 1, 0)).reshape(k * k * cin, cout)   # (kh,kw,cin) fastest=cin
    wmat = wmat * scale[None, :]                         # fold BN scale into weights
    return wmat.astype(jnp.bfloat16), bias.astype(jnp.float32)


def init_params(key, m_channels=4, feat_dim=16, embed_dim=32, num_blocks=(1, 1, 1, 1)):
    keys = iter(jax.random.split(key, 256))
    p = {"m_channels": m_channels, "feat_dim": feat_dim, "embed_dim": embed_dim}

    p["conv1_w"], p["conv1_b"] = _fold_conv_bn(next(keys), m_channels, 1, 3)

    in_planes = m_channels
    layers = []
    for li, (mult, stride0) in enumerate(zip([1, 2, 4, 8], [1, 2, 2, 2])):
        planes = m_channels * mult
        strides = [stride0] + [1] * (num_blocks[li] - 1)
        blocks = []
        for st in strides:
            blk = {"stride": st}
            blk["w1"], blk["b1"] = _fold_conv_bn(next(keys), planes, in_planes, 3)
            blk["w2"], blk["b2"] = _fold_conv_bn(next(keys), planes, planes, 3)
            if st != 1 or in_planes != planes:           # BasicBlock.expansion == 1
                blk["wsc"], blk["bsc"] = _fold_conv_bn(next(keys), planes, in_planes, 1)
            blocks.append(blk)
            in_planes = planes
        layers.append(blocks)
    p["layers"] = layers

    stats_dim = (feat_dim // 8) * m_channels * 8
    pool_out = 2 * stats_dim

    w1 = jax.random.normal(next(keys), (embed_dim, pool_out), jnp.float32) * (1.0 / pool_out) ** 0.5
    b1 = 0.1 * jax.random.normal(next(keys), (embed_dim,), jnp.float32)
    w1t = w1.T                                           # (pool_out, embed)
    p["seg1_wa"] = w1t[:stats_dim]                       # multiplies mean
    p["seg1_wb"] = w1t[stats_dim:]                       # multiplies std
    p["seg1_b"] = b1

    # seg_bn_1 (BatchNorm1d, affine=False, eval mode) folded into seg_2.
    bn_m = 0.1 * jax.random.normal(next(keys), (embed_dim,), jnp.float32)
    bn_v = jax.random.uniform(next(keys), (embed_dim,), jnp.float32, minval=0.5, maxval=1.5)
    s = 1.0 / jnp.sqrt(bn_v + _EPS)
    w2 = jax.random.normal(next(keys), (embed_dim, embed_dim), jnp.float32) * (1.0 / embed_dim) ** 0.5
    b2 = 0.1 * jax.random.normal(next(keys), (embed_dim,), jnp.float32)
    p["seg2_w"] = s[:, None] * w2.T                      # (embed, embed), BN scale folded
    p["seg2_b"] = b2 - (bn_m * s) @ w2.T                 # BN shift folded
    return p


# ----------------------------------------------------------------------------
# Model forward (NHWC throughout)
# ----------------------------------------------------------------------------
def basic_block(x, blk):
    st = blk["stride"]
    out = conv2d_bn_act(x, blk["w1"], blk["b1"], k=3, stride=st, relu=True)
    if "wsc" in blk:
        sc = conv2d_bn_act(x, blk["wsc"], blk["bsc"], k=1, stride=st, relu=False)
    else:
        sc = x
    # conv2 + bn2 + residual add + relu fused in one kernel call
    return conv2d_bn_act(out, blk["w2"], blk["b2"], k=3, stride=1, relu=True,
                         residual_nhwc=sc)


def resnet_forward(params, x):
    """x: (batch, frames, features) -> (embed_a, embed_b), each (batch, embed_dim)."""
    # PyTorch: permute(0,2,1).unsqueeze(1) -> NCHW (B,1,feat,frames).
    # Here NHWC: (B, H=feat, W=frames, C=1).
    x = jnp.transpose(x, (0, 2, 1))[..., None]

    out = conv2d_bn_act(x, params["conv1_w"], params["conv1_b"], k=3, stride=1, relu=True)
    for layer in params["layers"]:
        for blk in layer:
            out = basic_block(out, blk)

    # TSTP: NCHW (B,C,H,W) -> (B, C*H, W) pooled over W.  In NHWC, present the
    # pooling input as (B, T=W, D=C*H) so D sits on the lane axis.
    B, H, W, C = out.shape
    x_pool = jnp.transpose(out, (0, 2, 3, 1)).reshape(B, W, C * H)

    embed_a, embed_b = tail_pool_embed(
        x_pool, params["seg1_wa"], params["seg1_wb"], params["seg1_b"],
        params["seg2_w"], params["seg2_b"])
    return embed_a, embed_b


# ----------------------------------------------------------------------------
if __name__ == "__main__":
    key = jax.random.PRNGKey(0)
    pkey, xkey = jax.random.split(key)

    M_CHANNELS, FEAT_DIM, EMBED_DIM = 4, 16, 32
    NUM_BLOCKS = (1, 1, 1, 1)
    B, FRAMES = 2, 16

    params = init_params(pkey, m_channels=M_CHANNELS, feat_dim=FEAT_DIM,
                         embed_dim=EMBED_DIM, num_blocks=NUM_BLOCKS)
    x = jax.random.normal(xkey, (B, FRAMES, FEAT_DIM), jnp.float32)

    fwd = jax.jit(functools.partial(resnet_forward, params))
    embed_a, embed_b = fwd(x)
    jax.block_until_ready((embed_a, embed_b))

    assert embed_a.shape == (B, EMBED_DIM), embed_a.shape
    assert embed_b.shape == (B, EMBED_DIM), embed_b.shape
    assert bool(jnp.all(jnp.isfinite(embed_a))) and bool(jnp.all(jnp.isfinite(embed_b)))
    print("KERNEL_OK")
</pallas_src>

<mosaic_0001>
module attributes {stable_mosaic.version = 11 : i64} {
  func.func @_conv_gemm_kernel(%arg0: i32, %arg1: memref<512x9xbf16, #tpu.memory_space<vmem>>, %arg2: memref<9x4xbf16, #tpu.memory_space<vmem>>, %arg3: memref<1x4xf32, #tpu.memory_space<vmem>>, %arg4: memref<512x4xf32, #tpu.memory_space<vmem>>) attributes {dimension_semantics = [#tpu.dimension_semantics<parallel>], iteration_bounds = array<i64: 1>, scalar_prefetch = 0 : i64, scratch_operands = 0 : i64, tpu.core_type = #tpu.core_type<tc>, window_params = [{transform_indices = @transform_0, window_bounds = array<i64: 512, 9>}, {pipeline_mode = #tpu.pipeline_mode<synchronous>, transform_indices = @transform_1, window_bounds = array<i64: 9, 4>}, {pipeline_mode = #tpu.pipeline_mode<synchronous>, transform_indices = @transform_2, window_bounds = array<i64: 1, 4>}, {transform_indices = @transform_3, window_bounds = array<i64: 512, 4>}]} {
    %c0 = arith.constant 0 : index
    %c0_0 = arith.constant 0 : index
    %0 = vector.load %arg1[%c0, %c0_0] : memref<512x9xbf16, #tpu.memory_space<vmem>>, vector<512x9xbf16>
    %c0_1 = arith.constant 0 : index
    %c0_2 = arith.constant 0 : index
    %1 = vector.load %arg2[%c0_1, %c0_2] : memref<9x4xbf16, #tpu.memory_space<vmem>>, vector<9x4xbf16>
    %cst = arith.constant dense<0.000000e+00> : vector<512x4xf32>
    %2 = tpu.matmul %0, %1, %cst {dimension_numbers = #tpu.dot_dimension_numbers<[1], [0], [0], [1], [0, 0, 1, 1], [], []>} : vector<512x9xbf16>, vector<9x4xbf16>, vector<512x4xf32> -> vector<512x4xf32>
    %c0_3 = arith.constant 0 : index
    %c0_4 = arith.constant 0 : index
    %3 = vector.load %arg3[%c0_3, %c0_4] : memref<1x4xf32, #tpu.memory_space<vmem>>, vector<1x4xf32>
    %4 = vector.broadcast %3 : vector<1x4xf32> to vector<512x4xf32>
    %5 = arith.addf %2, %4 : vector<512x4xf32>
    %cst_5 = arith.constant 0.000000e+00 : f32
    %6 = vector.broadcast %cst_5 : f32 to vector<512x4xf32>
    %7 = arith.maximumf %5, %6 : vector<512x4xf32>
    %c0_6 = arith.constant 0 : index
    %c0_7 = arith.constant 0 : index
    %8 = vector.load %arg4[%c0_6, %c0_7] : memref<512x4xf32, #tpu.memory_space<vmem>>, vector<512x4xf32>
    tpu.vector_store %arg4[%c0_6, %c0_7], %7 {strides = array<i32>} : memref<512x4xf32, #tpu.memory_space<vmem>>, vector<512x4xf32>,
    return
  }
  func.func @transform_0(%arg0: i32) -> (i32, i32) {
    %c0_i32 = arith.constant 0 : i32
    %c0_i32_0 = arith.constant 0 : i32
    return %arg0, %c0_i32 : i32, i32
  }
  func.func @transform_1(%arg0: i32) -> (i32, i32) {
    %c0_i32 = arith.constant 0 : i32
    %c0_i32_0 = arith.constant 0 : i32
    %c0_i32_1 = arith.constant 0 : i32
    return %c0_i32, %c0_i32_0 : i32, i32
  }
  func.func @transform_2(%arg0: i32) -> (i32, i32) {
    %c0_i32 = arith.constant 0 : i32
    %c0_i32_0 = arith.constant 0 : i32
    %c0_i32_1 = arith.constant 0 : i32
    return %c0_i32, %c0_i32_0 : i32, i32
  }
  func.func @transform_3(%arg0: i32) -> (i32, i32) {
    %c0_i32 = arith.constant 0 : i32
    %c0_i32_0 = arith.constant 0 : i32
    return %arg0, %c0_i32 : i32, i32
  }
}

module attributes {stable_mosaic.version = 11 : i64} {
  func.func @_conv_gemm_kernel(%arg0: i32, %arg1: memref<512x36xbf16, #tpu.memory_space<vmem>>, %arg2: memref<36x4xbf16, #tpu.memory_space<vmem>>, %arg3: memref<1x4xf32, #tpu.memory_space<vmem>>, %arg4: memref<512x4xf32, #tpu.memory_space<vmem>>) attributes {dimension_semantics = [#tpu.dimension_semantics<parallel>], iteration_bounds = array<i64: 1>, scalar_prefetch = 0 : i64, scratch_operands = 0 : i64, tpu.core_type = #tpu.core_type<tc>, window_params = [{transform_indices = @transform_0, window_bounds = array<i64: 512, 36>}, {pipeline_mode = #tpu.pipeline_mode<synchronous>, transform_indices = @transform_1, window_bounds = array<i64: 36, 4>}, {pipeline_mode = #tpu.pipeline_mode<synchronous>, transform_indices = @transform_2, window_bounds = array<i64: 1, 4>}, {transform_indices = @transform_3, window_bounds = array<i64: 512, 4>}]} {
    %c0 = arith.constant 0 : index
    %c0_0 = arith.constant 0 : index
    %0 = vector.load %arg1[%c0, %c0_0] : memref<512x36xbf16, #tpu.memory_space<vmem>>, vector<512x36xbf16>
    %c0_1 = arith.constant 0 : index
    %c0_2 = arith.constant 0 : index
    %1 = vector.load %arg2[%c0_1, %c0_2] : memref<36x4xbf16, #tpu.memory_space<vmem>>, vector<36x4xbf16>
    %cst = arith.constant dense<0.000000e+00> : vector<512x4xf32>
    %2 = tpu.matmul %0, %1, %cst {dimension_numbers = #tpu.dot_dimension_numbers<[1], [0], [0], [1], [0, 0, 1, 1], [], []>} : vector<512x36xbf16>, vector<36x4xbf16>, vector<512x4xf32> -> vector<512x4xf32>
    %c0_3 = arith.constant 0 : index
    %c0_4 = arith.constant 0 : index
    %3 = vector.load %arg3[%c0_3, %c0_4] : memref<1x4xf32, #tpu.memory_space<vmem>>, vector<1x4xf32>
    %4 = vector.broadcast %3 : vector<1x4xf32> to vector<512x4xf32>
    %5 = arith.addf %2, %4 : vector<512x4xf32>
    %cst_5 = arith.constant 0.000000e+00 : f32
    %6 = vector.broadcast %cst_5 : f32 to vector<512x4xf32>
    %7 = arith.maximumf %5, %6 : vector<512x4xf32>
    %c0_6 = arith.constant 0 : index
    %c0_7 = arith.constant 0 : index
    %8 = vector.load %arg4[%c0_6, %c0_7] : memref<512x4xf32, #tpu.memory_space<vmem>>, vector<512x4xf32>
    tpu.vector_store %arg4[%c0_6, %c0_7], %7 {strides = array<i32>} : memref<512x4xf32, #tpu.memory_space<vmem>>, vector<512x4xf32>,
    return
  }
  func.func @transform_0(%arg0: i32) -> (i32, i32) {
    %c0_i32 = arith.constant 0 : i32
    %c0_i32_0 = arith.constant 0 : i32
    return %arg0, %c0_i32 : i32, i32
  }
  func.func @transform_1(%arg0: i32) -> (i32, i32) {
    %c0_i32 = arith.constant 0 : i32
    %c0_i32_0 = arith.constant 0 : i32
    %c0_i32_1 = arith.constant 0 : i32
    return %c0_i32, %c0_i32_0 : i32, i32
  }
  func.func @transform_2(%arg0: i32) -> (i32, i32) {
    %c0_i32 = arith.constant 0 : i32
    %c0_i32_0 = arith.constant 0 : i32
    %c0_i32_1 = arith.constant 0 : i32
    return %c0_i32, %c0_i32_0 : i32, i32
  }
  func.func @transform_3(%arg0: i32) -> (i32, i32) {
    %c0_i32 = arith.constant 0 : i32
    %c0_i32_0 = arith.constant 0 : i32
    return %arg0, %c0_i32 : i32, i32
  }
}

module attributes {stable_mosaic.version = 11 : i64} {
  func.func @_conv_gemm_kernel(%arg0: i32, %arg1: memref<512x36xbf16, #tpu.memory_space<vmem>>, %arg2: memref<36x4xbf16, #tpu.memory_space<vmem>>, %arg3: memref<1x4xf32, #tpu.memory_space<vmem>>, %arg4: memref<512x4xf32, #tpu.memory_space<vmem>>, %arg5: memref<512x4xf32, #tpu.memory_space<vmem>>) attributes {dimension_semantics = [#tpu.dimension_semantics<parallel>], iteration_bounds = array<i64: 1>, scalar_prefetch = 0 : i64, scratch_operands = 0 : i64, tpu.core_type = #tpu.core_type<tc>, window_params = [{transform_indices = @transform_0, window_bounds = array<i64: 512, 36>}, {pipeline_mode = #tpu.pipeline_mode<synchronous>, transform_indices = @transform_1, window_bounds = array<i64: 36, 4>}, {pipeline_mode = #tpu.pipeline_mode<synchronous>, transform_indices = @transform_2, window_bounds = array<i64: 1, 4>}, {transform_indices = @transform_3, window_bounds = array<i64: 512, 4>}, {transform_indices = @transform_4, window_bounds = array<i64: 512, 4>}]} {
    %c0 = arith.constant 0 : index
    %c0_0 = arith.constant 0 : index
    %0 = vector.load %arg1[%c0, %c0_0] : memref<512x36xbf16, #tpu.memory_space<vmem>>, vector<512x36xbf16>
    %c0_1 = arith.constant 0 : index
    %c0_2 = arith.constant 0 : index
    %1 = vector.load %arg2[%c0_1, %c0_2] : memref<36x4xbf16, #tpu.memory_space<vmem>>, vector<36x4xbf16>
    %cst = arith.constant dense<0.000000e+00> : vector<512x4xf32>
    %2 = tpu.matmul %0, %1, %cst {dimension_numbers = #tpu.dot_dimension_numbers<[1], [0], [0], [1], [0, 0, 1, 1], [], []>} : vector<512x36xbf16>, vector<36x4xbf16>, vector<512x4xf32> -> vector<512x4xf32>
    %c0_3 = arith.constant 0 : index
    %c0_4 = arith.constant 0 : index
    %3 = vector.load %arg3[%c0_3, %c0_4] : memref<1x4xf32, #tpu.memory_space<vmem>>, vector<1x4xf32>
    %4 = vector.broadcast %3 : vector<1x4xf32> to vector<512x4xf32>
    %5 = arith.addf %2, %4 : vector<512x4xf32>
    %c0_5 = arith.constant 0 : index
    %c0_6 = arith.constant 0 : index
    %6 = vector.load %arg4[%c0_5, %c0_6] : memref<512x4xf32, #tpu.memory_space<vmem>>, vector<512x4xf32>
    %7 = arith.addf %5, %6 : vector<512x4xf32>
    %cst_7 = arith.constant 0.000000e+00 : f32
    %8 = vector.broadcast %cst_7 : f32 to vector<512x4xf32>
    %9 = arith.maximumf %7, %8 : vector<512x4xf32>
    %c0_8 = arith.constant 0 : index
    %c0_9 = arith.constant 0 : index
    %10 = vector.load %arg5[%c0_8, %c0_9] : memref<512x4xf32, #tpu.memory_space<vmem>>, vector<512x4xf32>
    tpu.vector_store %arg5[%c0_8, %c0_9], %9 {strides = array<i32>} : memref<512x4xf32, #tpu.memory_space<vmem>>, vector<512x4xf32>,
    return
  }
  func.func @transform_0(%arg0: i32) -> (i32, i32) {
    %c0_i32 = arith.constant 0 : i32
    %c0_i32_0 = arith.constant 0 : i32
    return %arg0, %c0_i32 : i32, i32
  }
  func.func @transform_1(%arg0: i32) -> (i32, i32) {
    %c0_i32 = arith.constant 0 : i32
    %c0_i32_0 = arith.constant 0 : i32
    %c0_i32_1 = arith.constant 0 : i32
    return %c0_i32, %c0_i32_0 : i32, i32
  }
  func.func @transform_2(%arg0: i32) -> (i32, i32) {
    %c0_i32 = arith.constant 0 : i32
    %c0_i32_0 = arith.constant 0 : i32
    %c0_i32_1 = arith.constant 0 : i32
    return %c0_i32, %c0_i32_0 : i32, i32
  }
  func.func @transform_3(%arg0: i32) -> (i32, i32) {
    %c0_i32 = arith.constant 0 : i32
    %c0_i32_0 = arith.constant 0 : i32
    return %arg0, %c0_i32 : i32, i32
  }
  func.func @transform_4(%arg0: i32) -> (i32, i32) {
    %c0_i32 = arith.constant 0 : i32
    %c0_i32_0 = arith.constant 0 : i32
    return %arg0, %c0_i32 : i32, i32
  }
}

module attributes {stable_mosaic.version = 11 : i64} {
  func.func @_conv_gemm_kernel(%arg0: i32, %arg1: memref<128x4xbf16, #tpu.memory_space<vmem>>, %arg2: memref<4x8xbf16, #tpu.memory_space<vmem>>, %arg3: memref<1x8xf32, #tpu.memory_space<vmem>>, %arg4: memref<128x8xf32, #tpu.memory_space<vmem>>) attributes {dimension_semantics = [#tpu.dimension_semantics<parallel>], iteration_bounds = array<i64: 1>, scalar_prefetch = 0 : i64, scratch_operands = 0 : i64, tpu.core_type = #tpu.core_type<tc>, window_params = [{transform_indices = @transform_0, window_bounds = array<i64: 128, 4>}, {pipeline_mode = #tpu.pipeline_mode<synchronous>, transform_indices = @transform_1, window_bounds = array<i64: 4, 8>}, {pipeline_mode = #tpu.pipeline_mode<synchronous>, transform_indices = @transform_2, window_bounds = array<i64: 1, 8>}, {transform_indices = @transform_3, window_bounds = array<i64: 128, 8>}]} {
    %c0 = arith.constant 0 : index
    %c0_0 = arith.constant 0 : index
    %0 = vector.load %arg1[%c0, %c0_0] : memref<128x4xbf16, #tpu.memory_space<vmem>>, vector<128x4xbf16>
    %c0_1 = arith.constant 0 : index
    %c0_2 = arith.constant 0 : index
    %1 = vector.load %arg2[%c0_1, %c0_2] : memref<4x8xbf16, #tpu.memory_space<vmem>>, vector<4x8xbf16>
    %cst = arith.constant dense<0.000000e+00> : vector<128x8xf32>
    %2 = tpu.matmul %0, %1, %cst {dimension_numbers = #tpu.dot_dimension_numbers<[1], [0], [0], [1], [0, 0, 1, 1], [], []>} : vector<128x4xbf16>, vector<4x8xbf16>, vector<128x8xf32> -> vector<128x8xf32>
    %c0_3 = arith.constant 0 : index
    %c0_4 = arith.constant 0 : index
    %3 = vector.load %arg3[%c0_3, %c0_4] : memref<1x8xf32, #tpu.memory_space<vmem>>, vector<1x8xf32>
    %4 = vector.broadcast %3 : vector<1x8xf32> to vector<128x8xf32>
    %5 = arith.addf %2, %4 : vector<128x8xf32>
    %c0_5 = arith.constant 0 : index
    %c0_6 = arith.constant 0 : index
    %6 = vector.load %arg4[%c0_5, %c0_6] : memref<128x8xf32, #tpu.memory_space<vmem>>, vector<128x8xf32>
    tpu.vector_store %arg4[%c0_5, %c0_6], %5 {strides = array<i32>} : memref<128x8xf32, #tpu.memory_space<vmem>>, vector<128x8xf32>,
    return
  }
  func.func @transform_0(%arg0: i32) -> (i32, i32) {
    %c0_i32 = arith.constant 0 : i32
    %c0_i32_0 = arith.constant 0 : i32
    return %arg0, %c0_i32 : i32, i32
  }
  func.func @transform_1(%arg0: i32) -> (i32, i32) {
    %c0_i32 = arith.constant 0 : i32
    %c0_i32_0 = arith.constant 0 : i32
    %c0_i32_1 = arith.constant 0 : i32
    return %c0_i32, %c0_i32_0 : i32, i32
  }
  func.func @transform_2(%arg0: i32) -> (i32, i32) {
    %c0_i32 = arith.constant 0 : i32
    %c0_i32_0 = arith.constant 0 : i32
    %c0_i32_1 = arith.constant 0 : i32
    return %c0_i32, %c0_i32_0 : i32, i32
  }
  func.func @transform_3(%arg0: i32) -> (i32, i32) {
    %c0_i32 = arith.constant 0 : i32
    %c0_i32_0 = arith.constant 0 : i32
    return %arg0, %c0_i32 : i32, i32
  }
}

module attributes {stable_mosaic.version = 11 : i64} {
  func.func @_conv_gemm_kernel(%arg0: i32, %arg1: memref<128x36xbf16, #tpu.memory_space<vmem>>, %arg2: memref<36x8xbf16, #tpu.memory_space<vmem>>, %arg3: memref<1x8xf32, #tpu.memory_space<vmem>>, %arg4: memref<128x8xf32, #tpu.memory_space<vmem>>) attributes {dimension_semantics = [#tpu.dimension_semantics<parallel>], iteration_bounds = array<i64: 1>, scalar_prefetch = 0 : i64, scratch_operands = 0 : i64, tpu.core_type = #tpu.core_type<tc>, window_params = [{transform_indices = @transform_0, window_bounds = array<i64: 128, 36>}, {pipeline_mode = #tpu.pipeline_mode<synchronous>, transform_indices = @transform_1, window_bounds = array<i64: 36, 8>}, {pipeline_mode = #tpu.pipeline_mode<synchronous>, transform_indices = @transform_2, window_bounds = array<i64: 1, 8>}, {transform_indices = @transform_3, window_bounds = array<i64: 128, 8>}]} {
    %c0 = arith.constant 0 : index
    %c0_0 = arith.constant 0 : index
    %0 = vector.load %arg1[%c0, %c0_0] : memref<128x36xbf16, #tpu.memory_space<vmem>>, vector<128x36xbf16>
    %c0_1 = arith.constant 0 : index
    %c0_2 = arith.constant 0 : index
    %1 = vector.load %arg2[%c0_1, %c0_2] : memref<36x8xbf16, #tpu.memory_space<vmem>>, vector<36x8xbf16>
    %cst = arith.constant dense<0.000000e+00> : vector<128x8xf32>
    %2 = tpu.matmul %0, %1, %cst {dimension_numbers = #tpu.dot_dimension_numbers<[1], [0], [0], [1], [0, 0, 1, 1], [], []>} : vector<128x36xbf16>, vector<36x8xbf16>, vector<128x8xf32> -> vector<128x8xf32>
    %c0_3 = arith.constant 0 : index
    %c0_4 = arith.constant 0 : index
    %3 = vector.load %arg3[%c0_3, %c0_4] : memref<1x8xf32, #tpu.memory_space<vmem>>, vector<1x8xf32>
    %4 = vector.broadcast %3 : vector<1x8xf32> to vector<128x8xf32>
    %5 = arith.addf %2, %4 : vector<128x8xf32>
    %cst_5 = arith.constant 0.000000e+00 : f32
    %6 = vector.broadcast %cst_5 : f32 to vector<128x8xf32>
    %7 = arith.maximumf %5, %6 : vector<128x8xf32>
    %c0_6 = arith.constant 0 : index
    %c0_7 = arith.constant 0 : index
    %8 = vector.load %arg4[%c0_6, %c0_7] : memref<128x8xf32, #tpu.memory_space<vmem>>, vector<128x8xf32>
    tpu.vector_store %arg4[%c0_6, %c0_7], %7 {strides = array<i32>} : memref<128x8xf32, #tpu.memory_space<vmem>>, vector<128x8xf32>,
    return
  }
  func.func @transform_0(%arg0: i32) -> (i32, i32) {
    %c0_i32 = arith.constant 0 : i32
    %c0_i32_0 = arith.constant 0 : i32
    return %arg0, %c0_i32 : i32, i32
  }
  func.func @transform_1(%arg0: i32) -> (i32, i32) {
    %c0_i32 = arith.constant 0 : i32
    %c0_i32_0 = arith.constant 0 : i32
    %c0_i32_1 = arith.constant 0 : i32
    return %c0_i32, %c0_i32_0 : i32, i32
  }
  func.func @transform_2(%arg0: i32) -> (i32, i32) {
    %c0_i32 = arith.constant 0 : i32
    %c0_i32_0 = arith.constant 0 : i32
    %c0_i32_1 = arith.constant 0 : i32
    return %c0_i32, %c0_i32_0 : i32, i32
  }
  func.func @transform_3(%arg0: i32) -> (i32, i32) {
    %c0_i32 = arith.constant 0 : i32
    %c0_i32_0 = arith.constant 0 : i32
    return %arg0, %c0_i32 : i32, i32
  }
}

module attributes {stable_mosaic.version = 11 : i64} {
  func.func @_conv_gemm_kernel(%arg0: i32, %arg1: memref<128x72xbf16, #tpu.memory_space<vmem>>, %arg2: memref<72x8xbf16, #tpu.memory_space<vmem>>, %arg3: memref<1x8xf32, #tpu.memory_space<vmem>>, %arg4: memref<128x8xf32, #tpu.memory_space<vmem>>, %arg5: memref<128x8xf32, #tpu.memory_space<vmem>>) attributes {dimension_semantics = [#tpu.dimension_semantics<parallel>], iteration_bounds = array<i64: 1>, scalar_prefetch = 0 : i64, scratch_operands = 0 : i64, tpu.core_type = #tpu.core_type<tc>, window_params = [{transform_indices = @transform_0, window_bounds = array<i64: 128, 72>}, {pipeline_mode = #tpu.pipeline_mode<synchronous>, transform_indices = @transform_1, window_bounds = array<i64: 72, 8>}, {pipeline_mode = #tpu.pipeline_mode<synchronous>, transform_indices = @transform_2, window_bounds = array<i64: 1, 8>}, {transform_indices = @transform_3, window_bounds = array<i64: 128, 8>}, {transform_indices = @transform_4, window_bounds = array<i64: 128, 8>}]} {
    %c0 = arith.constant 0 : index
    %c0_0 = arith.constant 0 : index
    %0 = vector.load %arg1[%c0, %c0_0] : memref<128x72xbf16, #tpu.memory_space<vmem>>, vector<128x72xbf16>
    %c0_1 = arith.constant 0 : index
    %c0_2 = arith.constant 0 : index
    %1 = vector.load %arg2[%c0_1, %c0_2] : memref<72x8xbf16, #tpu.memory_space<vmem>>, vector<72x8xbf16>
    %cst = arith.constant dense<0.000000e+00> : vector<128x8xf32>
    %2 = tpu.matmul %0, %1, %cst {dimension_numbers = #tpu.dot_dimension_numbers<[1], [0], [0], [1], [0, 0, 1, 1], [], []>} : vector<128x72xbf16>, vector<72x8xbf16>, vector<128x8xf32> -> vector<128x8xf32>
    %c0_3 = arith.constant 0 : index
    %c0_4 = arith.constant 0 : index
    %3 = vector.load %arg3[%c0_3, %c0_4] : memref<1x8xf32, #tpu.memory_space<vmem>>, vector<1x8xf32>
    %4 = vector.broadcast %3 : vector<1x8xf32> to vector<128x8xf32>
    %5 = arith.addf %2, %4 : vector<128x8xf32>
    %c0_5 = arith.constant 0 : index
    %c0_6 = arith.constant 0 : index
    %6 = vector.load %arg4[%c0_5, %c0_6] : memref<128x8xf32, #tpu.memory_space<vmem>>, vector<128x8xf32>
    %7 = arith.addf %5, %6 : vector<128x8xf32>
    %cst_7 = arith.constant 0.000000e+00 : f32
    %8 = vector.broadcast %cst_7 : f32 to vector<128x8xf32>
    %9 = arith.maximumf %7, %8 : vector<128x8xf32>
    %c0_8 = arith.constant 0 : index
    %c0_9 = arith.constant 0 : index
    %10 = vector.load %arg5[%c0_8, %c0_9] : memref<128x8xf32, #tpu.memory_space<vmem>>, vector<128x8xf32>
    tpu.vector_store %arg5[%c0_8, %c0_9], %9 {strides = array<i32>} : memref<128x8xf32, #tpu.memory_space<vmem>>, vector<128x8xf32>,
    return
  }
  func.func @transform_0(%arg0: i32) -> (i32, i32) {
    %c0_i32 = arith.constant 0 : i32
    %c0_i32_0 = arith.constant 0 : i32
    return %arg0, %c0_i32 : i32, i32
  }
  func.func @transform_1(%arg0: i32) -> (i32, i32) {
    %c0_i32 = arith.constant 0 : i32
    %c0_i32_0 = arith.constant 0 : i32
    %c0_i32_1 = arith.constant 0 : i32
    return %c0_i32, %c0_i32_0 : i32, i32
  }
  func.func @transform_2(%arg0: i32) -> (i32, i32) {
    %c0_i32 = arith.constant 0 : i32
    %c0_i32_0 = arith.constant 0 : i32
    %c0_i32_1 = arith.constant 0 : i32
    return %c0_i32, %c0_i32_0 : i32, i32
  }
  func.func @transform_3(%arg0: i32) -> (i32, i32) {
    %c0_i32 = arith.constant 0 : i32
    %c0_i32_0 = arith.constant 0 : i32
    return %arg0, %c0_i32 : i32, i32
  }
  func.func @transform_4(%arg0: i32) -> (i32, i32) {
    %c0_i32 = arith.constant 0 : i32
    %c0_i32_0 = arith.constant 0 : i32
    return %arg0, %c0_i32 : i32, i32
  }
}

module attributes {stable_mosaic.version = 11 : i64} {
  func.func @_conv_gemm_kernel(%arg0: i32, %arg1: memref<32x8xbf16, #tpu.memory_space<vmem>>, %arg2: memref<8x16xbf16, #tpu.memory_space<vmem>>, %arg3: memref<1x16xf32, #tpu.memory_space<vmem>>, %arg4: memref<32x16xf32, #tpu.memory_space<vmem>>) attributes {dimension_semantics = [#tpu.dimension_semantics<parallel>], iteration_bounds = array<i64: 1>, scalar_prefetch = 0 : i64, scratch_operands = 0 : i64, tpu.core_type = #tpu.core_type<tc>, window_params = [{transform_indices = @transform_0, window_bounds = array<i64: 32, 8>}, {pipeline_mode = #tpu.pipeline_mode<synchronous>, transform_indices = @transform_1, window_bounds = array<i64: 8, 16>}, {pipeline_mode = #tpu.pipeline_mode<synchronous>, transform_indices = @transform_2, window_bounds = array<i64: 1, 16>}, {transform_indices = @transform_3, window_bounds = array<i64: 32, 16>}]} {
    %c0 = arith.constant 0 : index
    %c0_0 = arith.constant 0 : index
    %0 = vector.load %arg1[%c0, %c0_0] : memref<32x8xbf16, #tpu.memory_space<vmem>>, vector<32x8xbf16>
    %c0_1 = arith.constant 0 : index
    %c0_2 = arith.constant 0 : index
    %1 = vector.load %arg2[%c0_1, %c0_2] : memref<8x16xbf16, #tpu.memory_space<vmem>>, vector<8x16xbf16>
    %cst = arith.constant dense<0.000000e+00> : vector<32x16xf32>
    %2 = tpu.matmul %0, %1, %cst {dimension_numbers = #tpu.dot_dimension_numbers<[1], [0], [0], [1], [0, 0, 1, 1], [], []>} : vector<32x8xbf16>, vector<8x16xbf16>, vector<32x16xf32> -> vector<32x16xf32>
    %c0_3 = arith.constant 0 : index
    %c0_4 = arith.constant 0 : index
    %3 = vector.load %arg3[%c0_3, %c0_4] : memref<1x16xf32, #tpu.memory_space<vmem>>, vector<1x16xf32>
    %4 = vector.broadcast %3 : vector<1x16xf32> to vector<32x16xf32>
    %5 = arith.addf %2, %4 : vector<32x16xf32>
    %c0_5 = arith.constant 0 : index
    %c0_6 = arith.constant 0 : index
    %6 = vector.load %arg4[%c0_5, %c0_6] : memref<32x16xf32, #tpu.memory_space<vmem>>, vector<32x16xf32>
    tpu.vector_store %arg4[%c0_5, %c0_6], %5 {strides = array<i32>} : memref<32x16xf32, #tpu.memory_space<vmem>>, vector<32x16xf32>,
    return
  }
  func.func @transform_0(%arg0: i32) -> (i32, i32) {
    %c0_i32 = arith.constant 0 : i32
    %c0_i32_0 = arith.constant 0 : i32
    return %arg0, %c0_i32 : i32, i32
  }
  func.func @transform_1(%arg0: i32) -> (i32, i32) {
    %c0_i32 = arith.constant 0 : i32
    %c0_i32_0 = arith.constant 0 : i32
    %c0_i32_1 = arith.constant 0 : i32
    return %c0_i32, %c0_i32_0 : i32, i32
  }
  func.func @transform_2(%arg0: i32) -> (i32, i32) {
    %c0_i32 = arith.constant 0 : i32
    %c0_i32_0 = arith.constant 0 : i32
    %c0_i32_1 = arith.constant 0 : i32
    return %c0_i32, %c0_i32_0 : i32, i32
  }
  func.func @transform_3(%arg0: i32) -> (i32, i32) {
    %c0_i32 = arith.constant 0 : i32
    %c0_i32_0 = arith.constant 0 : i32
    return %arg0, %c0_i32 : i32, i32
  }
}

module attributes {stable_mosaic.version = 11 : i64} {
  func.func @_conv_gemm_kernel(%arg0: i32, %arg1: memref<32x72xbf16, #tpu.memory_space<vmem>>, %arg2: memref<72x16xbf16, #tpu.memory_space<vmem>>, %arg3: memref<1x16xf32, #tpu.memory_space<vmem>>, %arg4: memref<32x16xf32, #tpu.memory_space<vmem>>) attributes {dimension_semantics = [#tpu.dimension_semantics<parallel>], iteration_bounds = array<i64: 1>, scalar_prefetch = 0 : i64, scratch_operands = 0 : i64, tpu.core_type = #tpu.core_type<tc>, window_params = [{transform_indices = @transform_0, window_bounds = array<i64: 32, 72>}, {pipeline_mode = #tpu.pipeline_mode<synchronous>, transform_indices = @transform_1, window_bounds = array<i64: 72, 16>}, {pipeline_mode = #tpu.pipeline_mode<synchronous>, transform_indices = @transform_2, window_bounds = array<i64: 1, 16>}, {transform_indices = @transform_3, window_bounds = array<i64: 32, 16>}]} {
    %c0 = arith.constant 0 : index
    %c0_0 = arith.constant 0 : index
    %0 = vector.load %arg1[%c0, %c0_0] : memref<32x72xbf16, #tpu.memory_space<vmem>>, vector<32x72xbf16>
    %c0_1 = arith.constant 0 : index
    %c0_2 = arith.constant 0 : index
    %1 = vector.load %arg2[%c0_1, %c0_2] : memref<72x16xbf16, #tpu.memory_space<vmem>>, vector<72x16xbf16>
    %cst = arith.constant dense<0.000000e+00> : vector<32x16xf32>
    %2 = tpu.matmul %0, %1, %cst {dimension_numbers = #tpu.dot_dimension_numbers<[1], [0], [0], [1], [0, 0, 1, 1], [], []>} : vector<32x72xbf16>, vector<72x16xbf16>, vector<32x16xf32> -> vector<32x16xf32>
    %c0_3 = arith.constant 0 : index
    %c0_4 = arith.constant 0 : index
    %3 = vector.load %arg3[%c0_3, %c0_4] : memref<1x16xf32, #tpu.memory_space<vmem>>, vector<1x16xf32>
    %4 = vector.broadcast %3 : vector<1x16xf32> to vector<32x16xf32>
    %5 = arith.addf %2, %4 : vector<32x16xf32>
    %cst_5 = arith.constant 0.000000e+00 : f32
    %6 = vector.broadcast %cst_5 : f32 to vector<32x16xf32>
    %7 = arith.maximumf %5, %6 : vector<32x16xf32>
    %c0_6 = arith.constant 0 : index
    %c0_7 = arith.constant 0 : index
    %8 = vector.load %arg4[%c0_6, %c0_7] : memref<32x16xf32, #tpu.memory_space<vmem>>, vector<32x16xf32>
    tpu.vector_store %arg4[%c0_6, %c0_7], %7 {strides = array<i32>} : memref<32x16xf32, #tpu.memory_space<vmem>>, vector<32x16xf32>,
    return
  }
  func.func @transform_0(%arg0: i32) -> (i32, i32) {
    %c0_i32 = arith.constant 0 : i32
    %c0_i32_0 = arith.constant 0 : i32
    return %arg0, %c0_i32 : i32, i32
  }
  func.func @transform_1(%arg0: i32) -> (i32, i32) {
    %c0_i32 = arith.constant 0 : i32
    %c0_i32_0 = arith.constant 0 : i32
    %c0_i32_1 = arith.constant 0 : i32
    return %c0_i32, %c0_i32_0 : i32, i32
  }
  func.func @transform_2(%arg0: i32) -> (i32, i32) {
    %c0_i32 = arith.constant 0 : i32
    %c0_i32_0 = arith.constant 0 : i32
    %c0_i32_1 = arith.constant 0 : i32
    return %c0_i32, %c0_i32_0 : i32, i32
  }
  func.func @transform_3(%arg0: i32) -> (i32, i32) {
    %c0_i32 = arith.constant 0 : i32
    %c0_i32_0 = arith.constant 0 : i32
    return %arg0, %c0_i32 : i32, i32
  }
}

module attributes {stable_mosaic.version = 11 : i64} {
  func.func @_conv_gemm_kernel(%arg0: i32, %arg1: memref<32x144xbf16, #tpu.memory_space<vmem>>, %arg2: memref<144x16xbf16, #tpu.memory_space<vmem>>, %arg3: memref<1x16xf32, #tpu.memory_space<vmem>>, %arg4: memref<32x16xf32, #tpu.memory_space<vmem>>, %arg5: memref<32x16xf32, #tpu.memory_space<vmem>>) attributes {dimension_semantics = [#tpu.dimension_semantics<parallel>], iteration_bounds = array<i64: 1>, scalar_prefetch = 0 : i64, scratch_operands = 0 : i64, tpu.core_type = #tpu.core_type<tc>, window_params = [{transform_indices = @transform_0, window_bounds = array<i64: 32, 144>}, {pipeline_mode = #tpu.pipeline_mode<synchronous>, transform_indices = @transform_1, window_bounds = array<i64: 144, 16>}, {pipeline_mode = #tpu.pipeline_mode<synchronous>, transform_indices = @transform_2, window_bounds = array<i64: 1, 16>}, {transform_indices = @transform_3, window_bounds = array<i64: 32, 16>}, {transform_indices = @transform_4, window_bounds = array<i64: 32, 16>}]} {
    %c0 = arith.constant 0 : index
    %c0_0 = arith.constant 0 : index
    %0 = vector.load %arg1[%c0, %c0_0] : memref<32x144xbf16, #tpu.memory_space<vmem>>, vector<32x144xbf16>
    %c0_1 = arith.constant 0 : index
    %c0_2 = arith.constant 0 : index
    %1 = vector.load %arg2[%c0_1, %c0_2] : memref<144x16xbf16, #tpu.memory_space<vmem>>, vector<144x16xbf16>
    %cst = arith.constant dense<0.000000e+00> : vector<32x16xf32>
    %2 = tpu.matmul %0, %1, %cst {dimension_numbers = #tpu.dot_dimension_numbers<[1], [0], [0], [1], [0, 0, 1, 1], [], []>} : vector<32x144xbf16>, vector<144x16xbf16>, vector<32x16xf32> -> vector<32x16xf32>
    %c0_3 = arith.constant 0 : index
    %c0_4 = arith.constant 0 : index
    %3 = vector.load %arg3[%c0_3, %c0_4] : memref<1x16xf32, #tpu.memory_space<vmem>>, vector<1x16xf32>
    %4 = vector.broadcast %3 : vector<1x16xf32> to vector<32x16xf32>
    %5 = arith.addf %2, %4 : vector<32x16xf32>
    %c0_5 = arith.constant 0 : index
    %c0_6 = arith.constant 0 : index
    %6 = vector.load %arg4[%c0_5, %c0_6] : memref<32x16xf32, #tpu.memory_space<vmem>>, vector<32x16xf32>
    %7 = arith.addf %5, %6 : vector<32x16xf32>
    %cst_7 = arith.constant 0.000000e+00 : f32
    %8 = vector.broadcast %cst_7 : f32 to vector<32x16xf32>
    %9 = arith.maximumf %7, %8 : vector<32x16xf32>
    %c0_8 = arith.constant 0 : index
    %c0_9 = arith.constant 0 : index
    %10 = vector.load %arg5[%c0_8, %c0_9] : memref<32x16xf32, #tpu.memory_space<vmem>>, vector<32x16xf32>
    tpu.vector_store %arg5[%c0_8, %c0_9], %9 {strides = array<i32>} : memref<32x16xf32, #tpu.memory_space<vmem>>, vector<32x16xf32>,
    return
  }
  func.func @transform_0(%arg0: i32) -> (i32, i32) {
    %c0_i32 = arith.constant 0 : i32
    %c0_i32_0 = arith.constant 0 : i32
    return %arg0, %c0_i32 : i32, i32
  }
  func.func @transform_1(%arg0: i32) -> (i32, i32) {
    %c0_i32 = arith.constant 0 : i32
    %c0_i32_0 = arith.constant 0 : i32
    %c0_i32_1 = arith.constant 0 : i32
    return %c0_i32, %c0_i32_0 : i32, i32
  }
  func.func @transform_2(%arg0: i32) -> (i32, i32) {
    %c0_i32 = arith.constant 0 : i32
    %c0_i32_0 = arith.constant 0 : i32
    %c0_i32_1 = arith.constant 0 : i32
    return %c0_i32, %c0_i32_0 : i32, i32
  }
  func.func @transform_3(%arg0: i32) -> (i32, i32) {
    %c0_i32 = arith.constant 0 : i32
    %c0_i32_0 = arith.constant 0 : i32
    return %arg0, %c0_i32 : i32, i32
  }
  func.func @transform_4(%arg0: i32) -> (i32, i32) {
    %c0_i32 = arith.constant 0 : i32
    %c0_i32_0 = arith.constant 0 : i32
    return %arg0, %c0_i32 : i32, i32
  }
}

module attributes {stable_mosaic.version = 11 : i64} {
  func.func @_conv_gemm_kernel(%arg0: i32, %arg1: memref<8x16xbf16, #tpu.memory_space<vmem>>, %arg2: memref<16x32xbf16, #tpu.memory_space<vmem>>, %arg3: memref<1x32xf32, #tpu.memory_space<vmem>>, %arg4: memref<8x32xf32, #tpu.memory_space<vmem>>) attributes {dimension_semantics = [#tpu.dimension_semantics<parallel>], iteration_bounds = array<i64: 1>, scalar_prefetch = 0 : i64, scratch_operands = 0 : i64, tpu.core_type = #tpu.core_type<tc>, window_params = [{transform_indices = @transform_0, window_bounds = array<i64: 8, 16>}, {pipeline_mode = #tpu.pipeline_mode<synchronous>, transform_indices = @transform_1, window_bounds = array<i64: 16, 32>}, {pipeline_mode = #tpu.pipeline_mode<synchronous>, transform_indices = @transform_2, window_bounds = array<i64: 1, 32>}, {transform_indices = @transform_3, window_bounds = array<i64: 8, 32>}]} {
    %c0 = arith.constant 0 : index
    %c0_0 = arith.constant 0 : index
    %0 = vector.load %arg1[%c0, %c0_0] : memref<8x16xbf16, #tpu.memory_space<vmem>>, vector<8x16xbf16>
    %c0_1 = arith.constant 0 : index
    %c0_2 = arith.constant 0 : index
    %1 = vector.load %arg2[%c0_1, %c0_2] : memref<16x32xbf16, #tpu.memory_space<vmem>>, vector<16x32xbf16>
    %cst = arith.constant dense<0.000000e+00> : vector<8x32xf32>
    %2 = tpu.matmul %0, %1, %cst {dimension_numbers = #tpu.dot_dimension_numbers<[1], [0], [0], [1], [0, 0, 1, 1], [], []>} : vector<8x16xbf16>, vector<16x32xbf16>, vector<8x32xf32> -> vector<8x32xf32>
    %c0_3 = arith.constant 0 : index
    %c0_4 = arith.constant 0 : index
    %3 = vector.load %arg3[%c0_3, %c0_4] : memref<1x32xf32, #tpu.memory_space<vmem>>, vector<1x32xf32>
    %4 = vector.broadcast %3 : vector<1x32xf32> to vector<8x32xf32>
    %5 = arith.addf %2, %4 : vector<8x32xf32>
    %c0_5 = arith.constant 0 : index
    %c0_6 = arith.constant 0 : index
    %6 = vector.load %arg4[%c0_5, %c0_6] : memref<8x32xf32, #tpu.memory_space<vmem>>, vector<8x32xf32>
    tpu.vector_store %arg4[%c0_5, %c0_6], %5 {strides = array<i32>} : memref<8x32xf32, #tpu.memory_space<vmem>>, vector<8x32xf32>,
    return
  }
  func.func @transform_0(%arg0: i32) -> (i32, i32) {
    %c0_i32 = arith.constant 0 : i32
    %c0_i32_0 = arith.constant 0 : i32
    return %arg0, %c0_i32 : i32, i32
  }
  func.func @transform_1(%arg0: i32) -> (i32, i32) {
    %c0_i32 = arith.constant 0 : i32
    %c0_i32_0 = arith.constant 0 : i32
    %c0_i32_1 = arith.constant 0 : i32
    return %c0_i32, %c0_i32_0 : i32, i32
  }
  func.func @transform_2(%arg0: i32) -> (i32, i32) {
    %c0_i32 = arith.constant 0 : i32
    %c0_i32_0 = arith.constant 0 : i32
    %c0_i32_1 = arith.constant 0 : i32
    return %c0_i32, %c0_i32_0 : i32, i32
  }
  func.func @transform_3(%arg0: i32) -> (i32, i32) {
    %c0_i32 = arith.constant 0 : i32
    %c0_i32_0 = arith.constant 0 : i32
    return %arg0, %c0_i32 : i32, i32
  }
}

module attributes {stable_mosaic.version = 11 : i64} {
  func.func @_conv_gemm_kernel(%arg0: i32, %arg1: memref<8x144xbf16, #tpu.memory_space<vmem>>, %arg2: memref<144x32xbf16, #tpu.memory_space<vmem>>, %arg3: memref<1x32xf32, #tpu.memory_space<vmem>>, %arg4: memref<8x32xf32, #tpu.memory_space<vmem>>) attributes {dimension_semantics = [#tpu.dimension_semantics<parallel>], iteration_bounds = array<i64: 1>, scalar_prefetch = 0 : i64, scratch_operands = 0 : i64, tpu.core_type = #tpu.core_type<tc>, window_params = [{transform_indices = @transform_0, window_bounds = array<i64: 8, 144>}, {pipeline_mode = #tpu.pipeline_mode<synchronous>, transform_indices = @transform_1, window_bounds = array<i64: 144, 32>}, {pipeline_mode = #tpu.pipeline_mode<synchronous>, transform_indices = @transform_2, window_bounds = array<i64: 1, 32>}, {transform_indices = @transform_3, window_bounds = array<i64: 8, 32>}]} {
    %c0 = arith.constant 0 : index
    %c0_0 = arith.constant 0 : index
    %0 = vector.load %arg1[%c0, %c0_0] : memref<8x144xbf16, #tpu.memory_space<vmem>>, vector<8x144xbf16>
    %c0_1 = arith.constant 0 : index
    %c0_2 = arith.constant 0 : index
    %1 = vector.load %arg2[%c0_1, %c0_2] : memref<144x32xbf16, #tpu.memory_space<vmem>>, vector<144x32xbf16>
    %cst = arith.constant dense<0.000000e+00> : vector<8x32xf32>
    %2 = tpu.matmul %0, %1, %cst {dimension_numbers = #tpu.dot_dimension_numbers<[1], [0], [0], [1], [0, 0, 1, 1], [], []>} : vector<8x144xbf16>, vector<144x32xbf16>, vector<8x32xf32> -> vector<8x32xf32>
    %c0_3 = arith.constant 0 : index
    %c0_4 = arith.constant 0 : index
    %3 = vector.load %arg3[%c0_3, %c0_4] : memref<1x32xf32, #tpu.memory_space<vmem>>, vector<1x32xf32>
    %4 = vector.broadcast %3 : vector<1x32xf32> to vector<8x32xf32>
    %5 = arith.addf %2, %4 : vector<8x32xf32>
    %cst_5 = arith.constant 0.000000e+00 : f32
    %6 = vector.broadcast %cst_5 : f32 to vector<8x32xf32>
    %7 = arith.maximumf %5, %6 : vector<8x32xf32>
    %c0_6 = arith.constant 0 : index
    %c0_7 = arith.constant 0 : index
    %8 = vector.load %arg4[%c0_6, %c0_7] : memref<8x32xf32, #tpu.memory_space<vmem>>, vector<8x32xf32>
    tpu.vector_store %arg4[%c0_6, %c0_7], %7 {strides = array<i32>} : memref<8x32xf32, #tpu.memory_space<vmem>>, vector<8x32xf32>,
    return
  }
  func.func @transform_0(%arg0: i32) -> (i32, i32) {
    %c0_i32 = arith.constant 0 : i32
    %c0_i32_0 = arith.constant 0 : i32
    return %arg0, %c0_i32 : i32, i32
  }
  func.func @transform_1(%arg0: i32) -> (i32, i32) {
    %c0_i32 = arith.constant 0 : i32
    %c0_i32_0 = arith.constant 0 : i32
    %c0_i32_1 = arith.constant 0 : i32
    return %c0_i32, %c0_i32_0 : i32, i32
  }
  func.func @transform_2(%arg0: i32) -> (i32, i32) {
    %c0_i32 = arith.constant 0 : i32
    %c0_i32_0 = arith.constant 0 : i32
    %c0_i32_1 = arith.constant 0 : i32
    return %c0_i32, %c0_i32_0 : i32, i32
  }
  func.func @transform_3(%arg0: i32) -> (i32, i32) {
    %c0_i32 = arith.constant 0 : i32
    %c0_i32_0 = arith.constant 0 : i32
    return %arg0, %c0_i32 : i32, i32
  }
}

module attributes {stable_mosaic.version = 11 : i64} {
  func.func @_conv_gemm_kernel(%arg0: i32, %arg1: memref<8x288xbf16, #tpu.memory_space<vmem>>, %arg2: memref<288x32xbf16, #tpu.memory_space<vmem>>, %arg3: memref<1x32xf32, #tpu.memory_space<vmem>>, %arg4: memref<8x32xf32, #tpu.memory_space<vmem>>, %arg5: memref<8x32xf32, #tpu.memory_space<vmem>>) attributes {dimension_semantics = [#tpu.dimension_semantics<parallel>], iteration_bounds = array<i64: 1>, scalar_prefetch = 0 : i64, scratch_operands = 0 : i64, tpu.core_type = #tpu.core_type<tc>, window_params = [{transform_indices = @transform_0, window_bounds = array<i64: 8, 288>}, {pipeline_mode = #tpu.pipeline_mode<synchronous>, transform_indices = @transform_1, window_bounds = array<i64: 288, 32>}, {pipeline_mode = #tpu.pipeline_mode<synchronous>, transform_indices = @transform_2, window_bounds = array<i64: 1, 32>}, {transform_indices = @transform_3, window_bounds = array<i64: 8, 32>}, {transform_indices = @transform_4, window_bounds = array<i64: 8, 32>}]} {
    %c0 = arith.constant 0 : index
    %c0_0 = arith.constant 0 : index
    %0 = vector.load %arg1[%c0, %c0_0] : memref<8x288xbf16, #tpu.memory_space<vmem>>, vector<8x288xbf16>
    %c0_1 = arith.constant 0 : index
    %c0_2 = arith.constant 0 : index
    %1 = vector.load %arg2[%c0_1, %c0_2] : memref<288x32xbf16, #tpu.memory_space<vmem>>, vector<288x32xbf16>
    %cst = arith.constant dense<0.000000e+00> : vector<8x32xf32>
    %2 = tpu.matmul %0, %1, %cst {dimension_numbers = #tpu.dot_dimension_numbers<[1], [0], [0], [1], [0, 0, 1, 1], [], []>} : vector<8x288xbf16>, vector<288x32xbf16>, vector<8x32xf32> -> vector<8x32xf32>
    %c0_3 = arith.constant 0 : index
    %c0_4 = arith.constant 0 : index
    %3 = vector.load %arg3[%c0_3, %c0_4] : memref<1x32xf32, #tpu.memory_space<vmem>>, vector<1x32xf32>
    %4 = vector.broadcast %3 : vector<1x32xf32> to vector<8x32xf32>
    %5 = arith.addf %2, %4 : vector<8x32xf32>
    %c0_5 = arith.constant 0 : index
    %c0_6 = arith.constant 0 : index
    %6 = vector.load %arg4[%c0_5, %c0_6] : memref<8x32xf32, #tpu.memory_space<vmem>>, vector<8x32xf32>
    %7 = arith.addf %5, %6 : vector<8x32xf32>
    %cst_7 = arith.constant 0.000000e+00 : f32
    %8 = vector.broadcast %cst_7 : f32 to vector<8x32xf32>
    %9 = arith.maximumf %7, %8 : vector<8x32xf32>
    %c0_8 = arith.constant 0 : index
    %c0_9 = arith.constant 0 : index
    %10 = vector.load %arg5[%c0_8, %c0_9] : memref<8x32xf32, #tpu.memory_space<vmem>>, vector<8x32xf32>
    tpu.vector_store %arg5[%c0_8, %c0_9], %9 {strides = array<i32>} : memref<8x32xf32, #tpu.memory_space<vmem>>, vector<8x32xf32>,
    return
  }
  func.func @transform_0(%arg0: i32) -> (i32, i32) {
    %c0_i32 = arith.constant 0 : i32
    %c0_i32_0 = arith.constant 0 : i32
    return %arg0, %c0_i32 : i32, i32
  }
  func.func @transform_1(%arg0: i32) -> (i32, i32) {
    %c0_i32 = arith.constant 0 : i32
    %c0_i32_0 = arith.constant 0 : i32
    %c0_i32_1 = arith.constant 0 : i32
    return %c0_i32, %c0_i32_0 : i32, i32
  }
  func.func @transform_2(%arg0: i32) -> (i32, i32) {
    %c0_i32 = arith.constant 0 : i32
    %c0_i32_0 = arith.constant 0 : i32
    %c0_i32_1 = arith.constant 0 : i32
    return %c0_i32, %c0_i32_0 : i32, i32
  }
  func.func @transform_3(%arg0: i32) -> (i32, i32) {
    %c0_i32 = arith.constant 0 : i32
    %c0_i32_0 = arith.constant 0 : i32
    return %arg0, %c0_i32 : i32, i32
  }
  func.func @transform_4(%arg0: i32) -> (i32, i32) {
    %c0_i32 = arith.constant 0 : i32
    %c0_i32_0 = arith.constant 0 : i32
    return %arg0, %c0_i32 : i32, i32
  }
}

module attributes {stable_mosaic.version = 11 : i64} {
  func.func @_tail_kernel(%arg0: i32, %arg1: memref<2x2x64xf32, #tpu.memory_space<vmem>>, %arg2: memref<64x32xf32, #tpu.memory_space<vmem>>, %arg3: memref<64x32xf32, #tpu.memory_space<vmem>>, %arg4: memref<1x32xf32, #tpu.memory_space<vmem>>, %arg5: memref<32x32xf32, #tpu.memory_space<vmem>>, %arg6: memref<1x32xf32, #tpu.memory_space<vmem>>, %arg7: memref<2x32xf32, #tpu.memory_space<vmem>>, %arg8: memref<2x32xf32, #tpu.memory_space<vmem>>) attributes {dimension_semantics = [#tpu.dimension_semantics<arbitrary>], iteration_bounds = array<i64: 1>, scalar_prefetch = 0 : i64, scratch_operands = 0 : i64, tpu.core_type = #tpu.core_type<tc>, window_params = [{pipeline_mode = #tpu.pipeline_mode<synchronous>, transform_indices = @transform_0, window_bounds = array<i64: 2, 2, 64>}, {pipeline_mode = #tpu.pipeline_mode<synchronous>, transform_indices = @transform_1, window_bounds = array<i64: 64, 32>}, {pipeline_mode = #tpu.pipeline_mode<synchronous>, transform_indices = @transform_2, window_bounds = array<i64: 64, 32>}, {pipeline_mode = #tpu.pipeline_mode<synchronous>, transform_indices = @transform_3, window_bounds = array<i64: 1, 32>}, {pipeline_mode = #tpu.pipeline_mode<synchronous>, transform_indices = @transform_4, window_bounds = array<i64: 32, 32>}, {pipeline_mode = #tpu.pipeline_mode<synchronous>, transform_indices = @transform_5, window_bounds = array<i64: 1, 32>}, {pipeline_mode = #tpu.pipeline_mode<synchronous>, transform_indices = @transform_6, window_bounds = array<i64: 2, 32>}, {pipeline_mode = #tpu.pipeline_mode<synchronous>, transform_indices = @transform_7, window_bounds = array<i64: 2, 32>}]} {
    %c0 = arith.constant 0 : index
    %c0_0 = arith.constant 0 : index
    %c0_1 = arith.constant 0 : index
    %0 = vector.load %arg1[%c0, %c0_0, %c0_1] : memref<2x2x64xf32, #tpu.memory_space<vmem>>, vector<2x2x64xf32>
    %cst = arith.constant dense<0.000000e+00> : vector<2x64xf32>
    %1 = vector.multi_reduction <add>, %0, %cst [1] : vector<2x2x64xf32> to vector<2x64xf32>
    %cst_2 = arith.constant 2.000000e+00 : f32
    %2 = vector.broadcast %cst_2 : f32 to vector<2x64xf32>
    %3 = arith.divf %1, %2 : vector<2x64xf32>
    %4 = vector.shape_cast %3 : vector<2x64xf32> to vector<2x1x64xf32>
    %5 = vector.broadcast %4 : vector<2x1x64xf32> to vector<2x2x64xf32>
    %6 = arith.subf %0, %5 : vector<2x2x64xf32>
    %7 = arith.mulf %6, %6 : vector<2x2x64xf32>
    %cst_3 = arith.constant dense<0.000000e+00> : vector<2x64xf32>
    %8 = vector.multi_reduction <add>, %7, %cst_3 [1] : vector<2x2x64xf32> to vector<2x64xf32>
    %cst_4 = arith.constant 1.000000e+00 : f32
    %9 = vector.broadcast %cst_4 : f32 to vector<2x64xf32>
    %10 = arith.divf %8, %9 : vector<2x64xf32>
    %11 = math.sqrt %10 : vector<2x64xf32>
    %c0_5 = arith.constant 0 : index
    %c0_6 = arith.constant 0 : index
    %12 = vector.load %arg2[%c0_5, %c0_6] : memref<64x32xf32, #tpu.memory_space<vmem>>, vector<64x32xf32>
    %cst_7 = arith.constant dense<0.000000e+00> : vector<2x32xf32>
    %13 = tpu.matmul %3, %12, %cst_7 {dimension_numbers = #tpu.dot_dimension_numbers<[1], [0], [0], [1], [0, 0, 1, 1], [], []>} : vector<2x64xf32>, vector<64x32xf32>, vector<2x32xf32> -> vector<2x32xf32>
    %c0_8 = arith.constant 0 : index
    %c0_9 = arith.constant 0 : index
    %14 = vector.load %arg3[%c0_8, %c0_9] : memref<64x32xf32, #tpu.memory_space<vmem>>, vector<64x32xf32>
    %cst_10 = arith.constant dense<0.000000e+00> : vector<2x32xf32>
    %15 = tpu.matmul %11, %14, %cst_10 {dimension_numbers = #tpu.dot_dimension_numbers<[1], [0], [0], [1], [0, 0, 1, 1], [], []>} : vector<2x64xf32>, vector<64x32xf32>, vector<2x32xf32> -> vector<2x32xf32>
    %16 = arith.addf %13, %15 : vector<2x32xf32>
    %c0_11 = arith.constant 0 : index
    %c0_12 = arith.constant 0 : index
    %17 = vector.load %arg4[%c0_11, %c0_12] : memref<1x32xf32, #tpu.memory_space<vmem>>, vector<1x32xf32>
    %18 = vector.broadcast %17 : vector<1x32xf32> to vector<2x32xf32>
    %19 = arith.addf %16, %18 : vector<2x32xf32>
    %c0_13 = arith.constant 0 : index
    %c0_14 = arith.constant 0 : index
    %20 = vector.load %arg7[%c0_13, %c0_14] : memref<2x32xf32, #tpu.memory_space<vmem>>, vector<2x32xf32>
    tpu.vector_store %arg7[%c0_13, %c0_14], %19 {strides = array<i32>} : memref<2x32xf32, #tpu.memory_space<vmem>>, vector<2x32xf32>,
    %cst_15 = arith.constant 0.000000e+00 : f32
    %21 = vector.broadcast %cst_15 : f32 to vector<2x32xf32>
    %22 = arith.maximumf %19, %21 : vector<2x32xf32>
    %c0_16 = arith.constant 0 : index
    %c0_17 = arith.constant 0 : index
    %23 = vector.load %arg5[%c0_16, %c0_17] : memref<32x32xf32, #tpu.memory_space<vmem>>, vector<32x32xf32>
    %cst_18 = arith.constant dense<0.000000e+00> : vector<2x32xf32>
    %24 = tpu.matmul %22, %23, %cst_18 {dimension_numbers = #tpu.dot_dimension_numbers<[1], [0], [0], [1], [0, 0, 1, 1], [], []>} : vector<2x32xf32>, vector<32x32xf32>, vector<2x32xf32> -> vector<2x32xf32>
    %c0_19 = arith.constant 0 : index
    %c0_20 = arith.constant 0 : index
    %25 = vector.load %arg6[%c0_19, %c0_20] : memref<1x32xf32, #tpu.memory_space<vmem>>, vector<1x32xf32>
    %26 = vector.broadcast %25 : vector<1x32xf32> to vector<2x32xf32>
    %27 = arith.addf %24, %26 : vector<2x32xf32>
    %c0_21 = arith.constant 0 : index
    %c0_22 = arith.constant 0 : index
    %28 = vector.load %arg8[%c0_21, %c0_22] : memref<2x32xf32, #tpu.memory_space<vmem>>, vector<2x32xf32>
    tpu.vector_store %arg8[%c0_21, %c0_22], %27 {strides = array<i32>} : memref<2x32xf32, #tpu.memory_space<vmem>>, vector<2x32xf32>,
    return
  }
  func.func @transform_0(%arg0: i32) -> (i32, i32, i32) {
    %c0_i32 = arith.constant 0 : i32
    %c0_i32_0 = arith.constant 0 : i32
    %c0_i32_1 = arith.constant 0 : i32
    %c0_i32_2 = arith.constant 0 : i32
    return %c0_i32, %c0_i32_0, %c0_i32_1 : i32, i32, i32
  }
  func.func @transform_1(%arg0: i32) -> (i32, i32) {
    %c0_i32 = arith.constant 0 : i32
    %c0_i32_0 = arith.constant 0 : i32
    %c0_i32_1 = arith.constant 0 : i32
    return %c0_i32, %c0_i32_0 : i32, i32
  }
  func.func @transform_2(%arg0: i32) -> (i32, i32) {
    %c0_i32 = arith.constant 0 : i32
    %c0_i32_0 = arith.constant 0 : i32
    %c0_i32_1 = arith.constant 0 : i32
    return %c0_i32, %c0_i32_0 : i32, i32
  }
  func.func @transform_3(%arg0: i32) -> (i32, i32) {
    %c0_i32 = arith.constant 0 : i32
    %c0_i32_0 = arith.constant 0 : i32
    %c0_i32_1 = arith.constant 0 : i32
    return %c0_i32, %c0_i32_0 : i32, i32
  }
  func.func @transform_4(%arg0: i32) -> (i32, i32) {
    %c0_i32 = arith.constant 0 : i32
    %c0_i32_0 = arith.constant 0 : i32
    %c0_i32_1 = arith.constant 0 : i32
    return %c0_i32, %c0_i32_0 : i32, i32
  }
  func.func @transform_5(%arg0: i32) -> (i32, i32) {
    %c0_i32 = arith.constant 0 : i32
    %c0_i32_0 = arith.constant 0 : i32
    %c0_i32_1 = arith.constant 0 : i32
    return %c0_i32, %c0_i32_0 : i32, i32
  }
  func.func @transform_6(%arg0: i32) -> (i32, i32) {
    %c0_i32 = arith.constant 0 : i32
    %c0_i32_0 = arith.constant 0 : i32
    %c0_i32_1 = arith.constant 0 : i32
    return %c0_i32, %c0_i32_0 : i32, i32
  }
  func.func @transform_7(%arg0: i32) -> (i32, i32) {
    %c0_i32 = arith.constant 0 : i32
    %c0_i32_0 = arith.constant 0 : i32
    %c0_i32_1 = arith.constant 0 : i32
    return %c0_i32, %c0_i32_0 : i32, i32
  }
}

</mosaic_0001>

<bundles_post_ra>
// kernel: resnet_forward.13
= control target key start
LH: loop header
LB: loop body
LE: loop exit
PB: predicated region body
PF: predicated region fallthrough
CT: control target
= control target key end

     0   :  { %vm350_vm0 = vcmask 1043456   ;;  %vm351_vm1 = vcmask 1044480   ;;  %vm253_vm2 = vcmask 72704   ;;  %v980_v1 = vmov 65535   ;;  %s1457_s1 = inlined_call_operand.vmem [shape: bf16[9,4], index: 1, kind: input, shape index: {}]   ;;  %s1458_s0 = inlined_call_operand.vmem [shape: bf16[512,9], index: 0, kind: input, shape index: {}]   ;;  %s1459_s2 = inlined_call_operand.vmem [shape: f32[1,4], index: 2, kind: input, shape index: {}]   ;;  %s1460_s3 = inlined_call_operand.vmem [shape: f32[512,4], index: 3, kind: output, shape index: {}]  }
   0x1   :  { %v947_v0 = vld [vmem:[%s1457_s1] sm:$0x1f]   ;;  %v352_v2 = vsel %vm350_vm0, 4294967295, %v980_v1  ;;  %v950_v7 = vld [vmem:[%s1458_s0 + $0x8] sm:$0xff]   ;;  %v952_v9 = vld [vmem:[%s1458_s0 + $0x10] sm:$0xff]   ;;  %vm710_vm3 = vcmask 31744  }
   0x2   :  { %v948_v3 = vld [vmem:[%s1458_s0] sm:$0xff]   ;;  %v353_v4 = vsel %vm351_vm1, %v352_v2, 0  ;;  %v951_v8 = vld [vmem:[%s1458_s0 + $0x88] sm:$0xff]   ;;  %v953_v10 = vld [vmem:[%s1458_s0 + $0x90] sm:$0xff]  }
   0x3   :  { %v949_v5 = vld [vmem:[%s1458_s0 + $0x80] sm:$0xff]   ;;  %v355_v6 = vand.u32 %v947_v0, %v353_v4  ;;  %880 = vmatprep.mubr.msk.bf16.mxu0 %vm253_vm2, %v948_v3  ;;  %v954_v11 = vld [vmem:[%s1458_s0 + $0x18] sm:$0xff]   ;;  %v958_v15 = vld [vmem:[%s1458_s0 + $0x28] sm:$0xff]  }
   0x4   :  { %912 = vmatprep.mubr.msk.bf16.mxu1 %vm253_vm2, %v949_v5  ;;  %v955_v12 = vld [vmem:[%s1458_s0 + $0x98] sm:$0xff]   ;;  %v956_v13 = vld [vmem:[%s1458_s0 + $0x20] sm:$0xff]   ;;  %v959_v16 = vld [vmem:[%s1458_s0 + $0xa8] sm:$0xff]  }
   0x5   :  { %878 = vmatprep.subr.bf16.mxu0 %v355_v6  ;;  %944 = vmatprep.subr.bf16.mxu1 %v355_v6  ;;  %v957_v14 = vld [vmem:[%s1458_s0 + $0xa0] sm:$0xff]   ;;  %v960_v17 = vld [vmem:[%s1458_s0 + $0x30] sm:$0xff]   ;;  %v962_v19 = vld [vmem:[%s1458_s0 + $0x38] sm:$0xff]  }
   0x6   :  { %879 = vmatpush3.bf16.msra.mxu0 %v355_v6  ;;  %945 = vmatpush3.bf16.msra.mxu1 %v355_v6  ;;  %v961_v18 = vld [vmem:[%s1458_s0 + $0xb0] sm:$0xff]   ;;  %v963_v20 = vld [vmem:[%s1458_s0 + $0xb8] sm:$0xff]   ;;  %v964_v21 = vld [vmem:[%s1458_s0 + $0x40] sm:$0xff]  }
   0x7   :  { %v965_v22 = vld [vmem:[%s1458_s0 + $0xc0] sm:$0xff]   ;;  %v966_v23 = vld [vmem:[%s1458_s0 + $0x48] sm:$0xff]   ;;  %v968_v25 = vld [vmem:[%s1458_s0 + $0x50] sm:$0xff]  }
   0x8   :  { %v967_v24 = vld [vmem:[%s1458_s0 + $0xc8] sm:$0xff]   ;;  %v969_v26 = vld [vmem:[%s1458_s0 + $0xd0] sm:$0xff]   ;;  %v970_v27 = vld [vmem:[%s1458_s0 + $0x58] sm:$0xff]  }
   0x9   :  { %881 = vmatmul.mubr.msk.bf16.vlgmr.msra.gmra.mrb[0].mxu0 %vm253_vm2, %v950_v7  ;;  %913 = vmatmul.mubr.msk.bf16.vlgmr.msra.gmra.mrb[0].mxu1 %vm253_vm2, %v951_v8  ;;  %v971_v28 = vld [vmem:[%s1458_s0 + $0xd8] sm:$0xff]   ;;  %v972_v29 = vld [vmem:[%s1458_s0 + $0x60] sm:$0xff]   ;;  %v974_v31 = vld [vmem:[%s1458_s0 + $0x68] sm:$0xff]  }
   0xa   :  { %884 = vmatprep.mubr.msk.bf16.mxu0 %vm253_vm2, %v952_v9  ;;  %916 = vmatprep.mubr.msk.bf16.mxu1 %vm253_vm2, %v953_v10  ;;  %v973_v30 = vld [vmem:[%s1458_s0 + $0xe0] sm:$0xff]   ;;  %v975_v32 = vld [vmem:[%s1458_s0 + $0xe8] sm:$0xff]   ;;  %v976_v33 = vld [vmem:[%s1458_s0 + $0x70] sm:$0xff]  }
   0xb   :  { %v977_v34 = vld [vmem:[%s1458_s0 + $0xf0] sm:$0xff]   ;;  %v978_v35 = vld [vmem:[%s1458_s0 + $0x78] sm:$0xff]   ;;  %v1135_v37 = vld [vmem:[%s1459_s2] ss:$0 sm:$0xff] }
   0xc   :  { %v979_v36 = vld [vmem:[%s1458_s0 + $0xf8] sm:$0xff]  }
  0x11   :  { %885 = vmatmul.mubr.msk.bf16.gmra.mrb[4].mxu0 %vm253_vm2, %v954_v11  ;;  %917 = vmatmul.mubr.msk.bf16.gmra.mrb[4].mxu1 %vm253_vm2, %v955_v12 }
  0x12   :  { %888 = vmatprep.mubr.msk.bf16.mxu0 %vm253_vm2, %v956_v13  ;;  %920 = vmatprep.mubr.msk.bf16.mxu1 %vm253_vm2, %v957_v14 }
  0x19   :  { %889 = vmatmul.mubr.msk.bf16.gmra.mrb[8].mxu0 %vm253_vm2, %v958_v15  ;;  %921 = vmatmul.mubr.msk.bf16.gmra.mrb[8].mxu1 %vm253_vm2, %v959_v16 }
  0x1a   :  { %892 = vmatprep.mubr.msk.bf16.mxu0 %vm253_vm2, %v960_v17  ;;  %924 = vmatprep.mubr.msk.bf16.mxu1 %vm253_vm2, %v961_v18 }
  0x21   :  { %893 = vmatmul.mubr.msk.bf16.gmra.mrb[12].mxu0 %vm253_vm2, %v962_v19  ;;  %925 = vmatmul.mubr.msk.bf16.gmra.mrb[12].mxu1 %vm253_vm2, %v963_v20 }
  0x22   :  { %896 = vmatprep.mubr.msk.bf16.mxu0 %vm253_vm2, %v964_v21  ;;  %928 = vmatprep.mubr.msk.bf16.mxu1 %vm253_vm2, %v965_v22 }
  0x29   :  { %897 = vmatmul.mubr.msk.bf16.gmra.mrb[16].mxu0 %vm253_vm2, %v966_v23  ;;  %929 = vmatmul.mubr.msk.bf16.gmra.mrb[16].mxu1 %vm253_vm2, %v967_v24 }
  0x2a   :  { %900 = vmatprep.mubr.msk.bf16.mxu0 %vm253_vm2, %v968_v25  ;;  %932 = vmatprep.mubr.msk.bf16.mxu1 %vm253_vm2, %v969_v26 }
  0x31   :  { %901 = vmatmul.mubr.msk.bf16.gmra.mrb[20].mxu0 %vm253_vm2, %v970_v27  ;;  %933 = vmatmul.mubr.msk.bf16.gmra.mrb[20].mxu1 %vm253_vm2, %v971_v28 }
  0x32   :  { %904 = vmatprep.mubr.msk.bf16.mxu0 %vm253_vm2, %v972_v29  ;;  %936 = vmatprep.mubr.msk.bf16.mxu1 %vm253_vm2, %v973_v30 }
  0x39   :  { %905 = vmatmul.mubr.msk.bf16.gmra.mrb[24].mxu0 %vm253_vm2, %v974_v31  ;;  %937 = vmatmul.mubr.msk.bf16.gmra.mrb[24].mxu1 %vm253_vm2, %v975_v32 }
  0x3a   :  { %908 = vmatprep.mubr.msk.bf16.mxu0 %vm253_vm2, %v976_v33  ;;  %940 = vmatprep.mubr.msk.bf16.mxu1 %vm253_vm2, %v977_v34 }
  0x41   :  { %909 = vmatmul.mubr.msk.bf16.gmra.mrb[28].mxu0 %vm253_vm2, %v978_v35  ;;  %941 = vmatmul.mubr.msk.bf16.gmra.mrb[28].mxu1 %vm253_vm2, %v979_v36 }
  0xdc   :  { %v882_v38 = vpop.f32.mrb[0].mxu0  ;;  %v914_v39 = vpop.f32.mrb[0].mxu1 }
  0xdd   :  { %v400_v40 = vadd.f32 %v882_v38, %v1135_v37  ;;  %v528_v41 = vadd.f32 %v914_v39, %v1135_v37  ;;  %v391_v42 = vpop.f32.mrb[1].mxu0  ;;  %v519_v43 = vpop.f32.mrb[1].mxu1 }
  0xde   :  { %v392_v44 = vadd.f32 %v1135_v37, %v391_v42  ;;  %v520_v45 = vadd.f32 %v1135_v37, %v519_v43  ;;  %v883_v46 = vpop.f32.mrb[2].mxu0  ;;  %v915_v47 = vpop.f32.mrb[2].mxu1 }
  0xdf   :  { %v648_v48 = vmax.f32 %v400_v40, 0.0  ;;  %v680_v49 = vmax.f32 %v528_v41, 0.0  ;;  %v403_v50 = vadd.f32 %v883_v46, %v1135_v37  ;;  %v531_v51 = vadd.f32 %v915_v47, %v1135_v37  ;;  %v394_v52 = vpop.f32.mrb[3].mxu0  ;;  %v522_v53 = vpop.f32.mrb[3].mxu1 }
  0xe0   :  { %v646_v54 = vmax.f32 %v392_v44, 0.0  ;;  %v678_v55 = vmax.f32 %v520_v45, 0.0  ;;  %v395_v56 = vadd.f32 %v1135_v37, %v394_v52  ;;  %v523_v57 = vadd.f32 %v1135_v37, %v522_v53 }
  0xe1   :  { %713 = vst.msk [vmem:[%s1460_s3 + $0x10] sm:$0xff] %vm710_vm3, %v648_v48  ;;  %745 = vst.msk [vmem:[%s1460_s3 + $0x110] sm:$0xff] %vm710_vm3, %v680_v49  ;;  %v649_v58 = vmax.f32 %v403_v50, 0.0  ;;  %v681_v59 = vmax.f32 %v531_v51, 0.0 }
  0xe2   :  { %711 = vst.msk [vmem:[%s1460_s3] sm:$0xff] %vm710_vm3, %v646_v54  ;;  %743 = vst.msk [vmem:[%s1460_s3 + $0x100] sm:$0xff] %vm710_vm3, %v678_v55  ;;  %v647_v60 = vmax.f32 %v395_v56, 0.0  ;;  %v679_v61 = vmax.f32 %v523_v57, 0.0 }
  0xe3   :  { %714 = vst.msk [vmem:[%s1460_s3 + $0x18] sm:$0xff] %vm710_vm3, %v649_v58  ;;  %746 = vst.msk [vmem:[%s1460_s3 + $0x118] sm:$0xff] %vm710_vm3, %v681_v59 }
  0xe4   :  { %712 = vst.msk [vmem:[%s1460_s3 + $0x8] sm:$0xff] %vm710_vm3, %v647_v60  ;;  %744 = vst.msk [vmem:[%s1460_s3 + $0x108] sm:$0xff] %vm710_vm3, %v679_v61  ;;  %v886_v62 = vpop.f32.mrb[4].mxu0  ;;  %v918_v63 = vpop.f32.mrb[4].mxu1 }
  0xe5   :  { %v416_v0 = vadd.f32 %v886_v62, %v1135_v37  ;;  %v544_v1 = vadd.f32 %v918_v63, %v1135_v37  ;;  %v407_v2 = vpop.f32.mrb[5].mxu0  ;;  %v535_v3 = vpop.f32.mrb[5].mxu1 }
  0xe6   :  { %v408_v4 = vadd.f32 %v1135_v37, %v407_v2  ;;  %v536_v5 = vadd.f32 %v1135_v37, %v535_v3  ;;  %v887_v6 = vpop.f32.mrb[6].mxu0  ;;  %v919_v7 = vpop.f32.mrb[6].mxu1 }
  0xe7   :  { %v652_v8 = vmax.f32 %v416_v0, 0.0  ;;  %v684_v9 = vmax.f32 %v544_v1, 0.0  ;;  %v419_v10 = vadd.f32 %v887_v6, %v1135_v37  ;;  %v547_v11 = vadd.f32 %v919_v7, %v1135_v37  ;;  %v410_v12 = vpop.f32.mrb[7].mxu0  ;;  %v538_v13 = vpop.f32.mrb[7].mxu1 }
  0xe8   :  { %v650_v14 = vmax.f32 %v408_v4, 0.0  ;;  %v682_v15 = vmax.f32 %v536_v5, 0.0  ;;  %v411_v16 = vadd.f32 %v1135_v37, %v410_v12  ;;  %v539_v17 = vadd.f32 %v1135_v37, %v538_v13 }
  0xe9   :  { %717 = vst.msk [vmem:[%s1460_s3 + $0x30] sm:$0xff] %vm710_vm3, %v652_v8  ;;  %749 = vst.msk [vmem:[%s1460_s3 + $0x130] sm:$0xff] %vm710_vm3, %v684_v9  ;;  %v653_v18 = vmax.f32 %v419_v10, 0.0  ;;  %v685_v19 = vmax.f32 %v547_v11, 0.0 }
  0xea   :  { %715 = vst.msk [vmem:[%s1460_s3 + $0x20] sm:$0xff] %vm710_vm3, %v650_v14  ;;  %747 = vst.msk [vmem:[%s1460_s3 + $0x120] sm:$0xff] %vm710_vm3, %v682_v15  ;;  %v651_v20 = vmax.f32 %v411_v16, 0.0  ;;  %v683_v21 = vmax.f32 %v539_v17, 0.0 }
  0xeb   :  { %718 = vst.msk [vmem:[%s1460_s3 + $0x38] sm:$0xff] %vm710_vm3, %v653_v18  ;;  %750 = vst.msk [vmem:[%s1460_s3 + $0x138] sm:$0xff] %vm710_vm3, %v685_v19 }
  0xec   :  { %716 = vst.msk [vmem:[%s1460_s3 + $0x28] sm:$0xff] %vm710_vm3, %v651_v20  ;;  %748 = vst.msk [vmem:[%s1460_s3 + $0x128] sm:$0xff] %vm710_vm3, %v683_v21  ;;  %v890_v22 = vpop.f32.mrb[8].mxu0  ;;  %v922_v23 = vpop.f32.mrb[8].mxu1 }
  0xed   :  { %v432_v24 = vadd.f32 %v890_v22, %v1135_v37  ;;  %v560_v25 = vadd.f32 %v922_v23, %v1135_v37  ;;  %v423_v26 = vpop.f32.mrb[9].mxu0  ;;  %v551_v27 = vpop.f32.mrb[9].mxu1 }
  0xee   :  { %v424_v28 = vadd.f32 %v1135_v37, %v423_v26  ;;  %v552_v29 = vadd.f32 %v1135_v37, %v551_v27  ;;  %v891_v30 = vpop.f32.mrb[10].mxu0  ;;  %v923_v31 = vpop.f32.mrb[10].mxu1 }
  0xef   :  { %v656_v32 = vmax.f32 %v432_v24, 0.0  ;;  %v688_v33 = vmax.f32 %v560_v25, 0.0  ;;  %v435_v34 = vadd.f32 %v891_v30, %v1135_v37  ;;  %v563_v35 = vadd.f32 %v923_v31, %v1135_v37  ;;  %v426_v36 = vpop.f32.mrb[11].mxu0  ;;  %v554_v38 = vpop.f32.mrb[11].mxu1 }
  0xf0   :  { %v654_v39 = vmax.f32 %v424_v28, 0.0  ;;  %v686_v40 = vmax.f32 %v552_v29, 0.0  ;;  %v427_v41 = vadd.f32 %v1135_v37, %v426_v36  ;;  %v555_v42 = vadd.f32 %v1135_v37, %v554_v38 }
  0xf1   :  { %721 = vst.msk [vmem:[%s1460_s3 + $0x50] sm:$0xff] %vm710_vm3, %v656_v32  ;;  %753 = vst.msk [vmem:[%s1460_s3 + $0x150] sm:$0xff] %vm710_vm3, %v688_v33  ;;  %v657_v43 = vmax.f32 %v435_v34, 0.0  ;;  %v689_v44 = vmax.f32 %v563_v35, 0.0 }
  0xf2   :  { %719 = vst.msk [vmem:[%s1460_s3 + $0x40] sm:$0xff] %vm710_vm3, %v654_v39  ;;  %751 = vst.msk [vmem:[%s1460_s3 + $0x140] sm:$0xff] %vm710_vm3, %v686_v40  ;;  %v655_v45 = vmax.f32 %v427_v41, 0.0  ;;  %v687_v46 = vmax.f32 %v555_v42, 0.0 }
  0xf3   :  { %722 = vst.msk [vmem:[%s1460_s3 + $0x58] sm:$0xff] %vm710_vm3, %v657_v43  ;;  %754 = vst.msk [vmem:[%s1460_s3 + $0x158] sm:$0xff] %vm710_vm3, %v689_v44 }
  0xf4   :  { %720 = vst.msk [vmem:[%s1460_s3 + $0x48] sm:$0xff] %vm710_vm3, %v655_v45  ;;  %752 = vst.msk [vmem:[%s1460_s3 + $0x148] sm:$0xff] %vm710_vm3, %v687_v46  ;;  %v894_v47 = vpop.f32.mrb[12].mxu0  ;;  %v926_v48 = vpop.f32.mrb[12].mxu1 }
  0xf5   :  { %v448_v49 = vadd.f32 %v894_v47, %v1135_v37  ;;  %v576_v50 = vadd.f32 %v926_v48, %v1135_v37  ;;  %v439_v51 = vpop.f32.mrb[13].mxu0  ;;  %v567_v52 = vpop.f32.mrb[13].mxu1 }
  0xf6   :  { %v440_v53 = vadd.f32 %v1135_v37, %v439_v51  ;;  %v568_v54 = vadd.f32 %v1135_v37, %v567_v52  ;;  %v895_v55 = vpop.f32.mrb[14].mxu0  ;;  %v927_v56 = vpop.f32.mrb[14].mxu1 }
  0xf7   :  { %v660_v57 = vmax.f32 %v448_v49, 0.0  ;;  %v692_v58 = vmax.f32 %v576_v50, 0.0  ;;  %v451_v59 = vadd.f32 %v895_v55, %v1135_v37  ;;  %v579_v60 = vadd.f32 %v927_v56, %v1135_v37  ;;  %v442_v61 = vpop.f32.mrb[15].mxu0  ;;  %v570_v62 = vpop.f32.mrb[15].mxu1 }
  0xf8   :  { %v658_v63 = vmax.f32 %v440_v53, 0.0  ;;  %v690_v0 = vmax.f32 %v568_v54, 0.0  ;;  %v443_v1 = vadd.f32 %v1135_v37, %v442_v61  ;;  %v571_v2 = vadd.f32 %v1135_v37, %v570_v62 }
  0xf9   :  { %725 = vst.msk [vmem:[%s1460_s3 + $0x70] sm:$0xff] %vm710_vm3, %v660_v57  ;;  %757 = vst.msk [vmem:[%s1460_s3 + $0x170] sm:$0xff] %vm710_vm3, %v692_v58  ;;  %v661_v3 = vmax.f32 %v451_v59, 0.0  ;;  %v693_v4 = vmax.f32 %v579_v60, 0.0 }
  0xfa   :  { %723 = vst.msk [vmem:[%s1460_s3 + $0x60] sm:$0xff] %vm710_vm3, %v658_v63  ;;  %755 = vst.msk [vmem:[%s1460_s3 + $0x160] sm:$0xff] %vm710_vm3, %v690_v0  ;;  %v659_v5 = vmax.f32 %v443_v1, 0.0  ;;  %v691_v6 = vmax.f32 %v571_v2, 0.0 }
  0xfb   :  { %726 = vst.msk [vmem:[%s1460_s3 + $0x78] sm:$0xff] %vm710_vm3, %v661_v3  ;;  %758 = vst.msk [vmem:[%s1460_s3 + $0x178] sm:$0xff] %vm710_vm3, %v693_v4 }
  0xfc   :  { %724 = vst.msk [vmem:[%s1460_s3 + $0x68] sm:$0xff] %vm710_vm3, %v659_v5  ;;  %756 = vst.msk [vmem:[%s1460_s3 + $0x168] sm:$0xff] %vm710_vm3, %v691_v6  ;;  %v898_v7 = vpop.f32.mrb[16].mxu0  ;;  %v930_v8 = vpop.f32.mrb[16].mxu1 }
  0xfd   :  { %v464_v9 = vadd.f32 %v898_v7, %v1135_v37  ;;  %v592_v10 = vadd.f32 %v930_v8, %v1135_v37  ;;  %v455_v11 = vpop.f32.mrb[17].mxu0  ;;  %v583_v12 = vpop.f32.mrb[17].mxu1 }
  0xfe   :  { %v456_v13 = vadd.f32 %v1135_v37, %v455_v11  ;;  %v584_v14 = vadd.f32 %v1135_v37, %v583_v12  ;;  %v899_v15 = vpop.f32.mrb[18].mxu0  ;;  %v931_v16 = vpop.f32.mrb[18].mxu1 }
  0xff   :  { %v664_v17 = vmax.f32 %v464_v9, 0.0  ;;  %v696_v18 = vmax.f32 %v592_v10, 0.0  ;;  %v467_v19 = vadd.f32 %v899_v15, %v1135_v37  ;;  %v595_v20 = vadd.f32 %v931_v16, %v1135_v37  ;;  %v458_v21 = vpop.f32.mrb[19].mxu0  ;;  %v586_v22 = vpop.f32.mrb[19].mxu1 }
 0x100   :  { %v662_v23 = vmax.f32 %v456_v13, 0.0  ;;  %v694_v24 = vmax.f32 %v584_v14, 0.0  ;;  %v459_v25 = vadd.f32 %v1135_v37, %v458_v21  ;;  %v587_v26 = vadd.f32 %v1135_v37, %v586_v22 }
 0x101   :  { %729 = vst.msk [vmem:[%s1460_s3 + $0x90] sm:$0xff] %vm710_vm3, %v664_v17  ;;  %761 = vst.msk [vmem:[%s1460_s3 + $0x190] sm:$0xff] %vm710_vm3, %v696_v18  ;;  %v665_v27 = vmax.f32 %v467_v19, 0.0  ;;  %v697_v28 = vmax.f32 %v595_v20, 0.0 }
 0x102   :  { %727 = vst.msk [vmem:[%s1460_s3 + $0x80] sm:$0xff] %vm710_vm3, %v662_v23  ;;  %759 = vst.msk [vmem:[%s1460_s3 + $0x180] sm:$0xff] %vm710_vm3, %v694_v24  ;;  %v663_v29 = vmax.f32 %v459_v25, 0.0  ;;  %v695_v30 = vmax.f32 %v587_v26, 0.0 }
 0x103   :  { %730 = vst.msk [vmem:[%s1460_s3 + $0x98] sm:$0xff] %vm710_vm3, %v665_v27  ;;  %762 = vst.msk [vmem:[%s1460_s3 + $0x198] sm:$0xff] %vm710_vm3, %v697_v28 }
 0x104   :  { %728 = vst.msk [vmem:[%s1460_s3 + $0x88] sm:$0xff] %vm710_vm3, %v663_v29  ;;  %760 = vst.msk [vmem:[%s1460_s3 + $0x188] sm:$0xff] %vm710_vm3, %v695_v30  ;;  %v902_v31 = vpop.f32.mrb[20].mxu0  ;;  %v934_v32 = vpop.f32.mrb[20].mxu1 }
 0x105   :  { %v480_v33 = vadd.f32 %v902_v31, %v1135_v37  ;;  %v608_v34 = vadd.f32 %v934_v32, %v1135_v37  ;;  %v471_v35 = vpop.f32.mrb[21].mxu0  ;;  %v599_v36 = vpop.f32.mrb[21].mxu1 }
 0x106   :  { %v472_v38 = vadd.f32 %v1135_v37, %v471_v35  ;;  %v600_v39 = vadd.f32 %v1135_v37, %v599_v36  ;;  %v903_v40 = vpop.f32.mrb[22].mxu0  ;;  %v935_v41 = vpop.f32.mrb[22].mxu1 }
 0x107   :  { %v668_v42 = vmax.f32 %v480_v33, 0.0  ;;  %v700_v43 = vmax.f32 %v608_v34, 0.0  ;;  %v483_v44 = vadd.f32 %v903_v40, %v1135_v37  ;;  %v611_v45 = vadd.f32 %v935_v41, %v1135_v37  ;;  %v474_v46 = vpop.f32.mrb[23].mxu0  ;;  %v602_v47 = vpop.f32.mrb[23].mxu1 }
 0x108   :  { %v666_v48 = vmax.f32 %v472_v38, 0.0  ;;  %v698_v49 = vmax.f32 %v600_v39, 0.0  ;;  %v475_v50 = vadd.f32 %v1135_v37, %v474_v46  ;;  %v603_v51 = vadd.f32 %v1135_v37, %v602_v47 }
 0x109   :  { %733 = vst.msk [vmem:[%s1460_s3 + $0xb0] sm:$0xff] %vm710_vm3, %v668_v42  ;;  %765 = vst.msk [vmem:[%s1460_s3 + $0x1b0] sm:$0xff] %vm710_vm3, %v700_v43  ;;  %v669_v52 = vmax.f32 %v483_v44, 0.0  ;;  %v701_v53 = vmax.f32 %v611_v45, 0.0 }
 0x10a   :  { %731 = vst.msk [vmem:[%s1460_s3 + $0xa0] sm:$0xff] %vm710_vm3, %v666_v48  ;;  %763 = vst.msk [vmem:[%s1460_s3 + $0x1a0] sm:$0xff] %vm710_vm3, %v698_v49  ;;  %v667_v54 = vmax.f32 %v475_v50, 0.0  ;;  %v699_v55 = vmax.f32 %v603_v51, 0.0 }
 0x10b   :  { %734 = vst.msk [vmem:[%s1460_s3 + $0xb8] sm:$0xff] %vm710_vm3, %v669_v52  ;;  %766 = vst.msk [vmem:[%s1460_s3 + $0x1b8] sm:$0xff] %vm710_vm3, %v701_v53 }
 0x10c   :  { %732 = vst.msk [vmem:[%s1460_s3 + $0xa8] sm:$0xff] %vm710_vm3, %v667_v54  ;;  %764 = vst.msk [vmem:[%s1460_s3 + $0x1a8] sm:$0xff] %vm710_vm3, %v699_v55  ;;  %v906_v56 = vpop.f32.mrb[24].mxu0  ;;  %v938_v57 = vpop.f32.mrb[24].mxu1 }
 0x10d   :  { %v496_v58 = vadd.f32 %v906_v56, %v1135_v37  ;;  %v624_v59 = vadd.f32 %v938_v57, %v1135_v37  ;;  %v487_v60 = vpop.f32.mrb[25].mxu0  ;;  %v615_v61 = vpop.f32.mrb[25].mxu1 }
 0x10e   :  { %v488_v62 = vadd.f32 %v1135_v37, %v487_v60  ;;  %v616_v63 = vadd.f32 %v1135_v37, %v615_v61  ;;  %v907_v0 = vpop.f32.mrb[26].mxu0  ;;  %v939_v1 = vpop.f32.mrb[26].mxu1 }
 0x10f   :  { %v672_v2 = vmax.f32 %v496_v58, 0.0  ;;  %v704_v3 = vmax.f32 %v624_v59, 0.0  ;;  %v499_v4 = vadd.f32 %v907_v0, %v1135_v37  ;;  %v627_v5 = vadd.f32 %v939_v1, %v1135_v37  ;;  %v490_v6 = vpop.f32.mrb[27].mxu0  ;;  %v618_v7 = vpop.f32.mrb[27].mxu1 }
 0x110   :  { %v670_v8 = vmax.f32 %v488_v62, 0.0  ;;  %v702_v9 = vmax.f32 %v616_v63, 0.0  ;;  %v491_v10 = vadd.f32 %v1135_v37, %v490_v6  ;;  %v619_v11 = vadd.f32 %v1135_v37, %v618_v7 }
 0x111   :  { %737 = vst.msk [vmem:[%s1460_s3 + $0xd0] sm:$0xff] %vm710_vm3, %v672_v2  ;;  %769 = vst.msk [vmem:[%s1460_s3 + $0x1d0] sm:$0xff] %vm710_vm3, %v704_v3  ;;  %v673_v12 = vmax.f32 %v499_v4, 0.0  ;;  %v705_v13 = vmax.f32 %v627_v5, 0.0 }
 0x112   :  { %735 = vst.msk [vmem:[%s1460_s3 + $0xc0] sm:$0xff] %vm710_vm3, %v670_v8  ;;  %767 = vst.msk [vmem:[%s1460_s3 + $0x1c0] sm:$0xff] %vm710_vm3, %v702_v9  ;;  %v671_v14 = vmax.f32 %v491_v10, 0.0  ;;  %v703_v15 = vmax.f32 %v619_v11, 0.0 }
 0x113   :  { %738 = vst.msk [vmem:[%s1460_s3 + $0xd8] sm:$0xff] %vm710_vm3, %v673_v12  ;;  %770 = vst.msk [vmem:[%s1460_s3 + $0x1d8] sm:$0xff] %vm710_vm3, %v705_v13 }
 0x114   :  { %736 = vst.msk [vmem:[%s1460_s3 + $0xc8] sm:$0xff] %vm710_vm3, %v671_v14  ;;  %768 = vst.msk [vmem:[%s1460_s3 + $0x1c8] sm:$0xff] %vm710_vm3, %v703_v15  ;;  %v910_v16 = vpop.f32.mrb[28].mxu0  ;;  %v942_v17 = vpop.f32.mrb[28].mxu1 }
 0x115   :  { %v512_v18 = vadd.f32 %v910_v16, %v1135_v37  ;;  %v640_v19 = vadd.f32 %v942_v17, %v1135_v37  ;;  %v503_v20 = vpop.f32.mrb[29].mxu0  ;;  %v631_v21 = vpop.f32.mrb[29].mxu1 }
 0x116   :  { %v504_v22 = vadd.f32 %v1135_v37, %v503_v20  ;;  %v632_v23 = vadd.f32 %v1135_v37, %v631_v21  ;;  %v911_v24 = vpop.f32.mrb[30].mxu0  ;;  %v943_v25 = vpop.f32.mrb[30].mxu1 }
 0x117   :  { %v676_v26 = vmax.f32 %v512_v18, 0.0  ;;  %v708_v27 = vmax.f32 %v640_v19, 0.0  ;;  %v515_v28 = vadd.f32 %v911_v24, %v1135_v37  ;;  %v643_v29 = vadd.f32 %v943_v25, %v1135_v37  ;;  %v506_v30 = vpop.f32.mrb[31].mxu0  ;;  %v634_v31 = vpop.f32.mrb[31].mxu1 }
 0x118   :  { %v674_v32 = vmax.f32 %v504_v22, 0.0  ;;  %v706_v33 = vmax.f32 %v632_v23, 0.0  ;;  %v507_v34 = vadd.f32 %v1135_v37, %v506_v30  ;;  %v635_v35 = vadd.f32 %v1135_v37, %v634_v31 }
 0x119   :  { %741 = vst.msk [vmem:[%s1460_s3 + $0xf0] sm:$0xff] %vm710_vm3, %v676_v26  ;;  %773 = vst.msk [vmem:[%s1460_s3 + $0x1f0] sm:$0xff] %vm710_vm3, %v708_v27  ;;  %v677_v36 = vmax.f32 %v515_v28, 0.0  ;;  %v709_v38 = vmax.f32 %v643_v29, 0.0 }
 0x11a   :  { %739 = vst.msk [vmem:[%s1460_s3 + $0xe0] sm:$0xff] %vm710_vm3, %v674_v32  ;;  %771 = vst.msk [vmem:[%s1460_s3 + $0x1e0] sm:$0xff] %vm710_vm3, %v706_v33  ;;  %v675_v37 = vmax.f32 %v507_v34, 0.0  ;;  %v707_v39 = vmax.f32 %v635_v35, 0.0 }
 0x11b   :  { %742 = vst.msk [vmem:[%s1460_s3 + $0xf8] sm:$0xff] %vm710_vm3, %v677_v36  ;;  %774 = vst.msk [vmem:[%s1460_s3 + $0x1f8] sm:$0xff] %vm710_vm3, %v709_v38 }
 0x11c   :  { %740 = vst.msk [vmem:[%s1460_s3 + $0xe8] sm:$0xff] %vm710_vm3, %v675_v37  ;;  %772 = vst.msk [vmem:[%s1460_s3 + $0x1e8] sm:$0xff] %vm710_vm3, %v707_v39 }

// kernel: resnet_forward.14
= control target key start
LH: loop header
LB: loop body
LE: loop exit
PB: predicated region body
PF: predicated region fallthrough
CT: control target
= control target key end

     0   :  { %vm266_vm0 = vcmask 293888   ;;  %vm363_vm1 = vcmask 1041408   ;;  %vm720_vm2 = vcmask 31744   ;;  %s1487_s1 = inlined_call_operand.vmem [shape: bf16[36,4], index: 1, kind: input, shape index: {}]   ;;  %s1488_s0 = inlined_call_operand.vmem [shape: bf16[512,36], index: 0, kind: input, shape index: {}]   ;;  %s1489_s2 = inlined_call_operand.vmem [shape: f32[1,4], index: 2, kind: input, shape index: {}]   ;;  %s1490_s3 = inlined_call_operand.vmem [shape: f32[512,4], index: 3, kind: output, shape index: {}]  }
   0x1   :  { %v970_v0 = vld [vmem:[%s1487_s1] sm:$0xff]   ;;  %v971_v1 = vld [vmem:[%s1487_s1 + $0x8] sm:$0xff]   ;;  %v972_v2 = vld [vmem:[%s1487_s1 + $0x10] ss:$0 sps:$4 sm:$0x33]  }
   0x2   :  { %892 = vmatprep.subr.bf16.mxu0 %v970_v0  ;;  %962 = vmatprep.subr.bf16.mxu1 %v970_v0  ;;  %v973_v3 = vld [vmem:[%s1488_s0] sm:$0xff]   ;;  %v365_v5 = vsel %vm363_vm1, %v972_v2, 0  ;;  %v975_v6 = vld [vmem:[%s1488_s0 + $0x8] sm:$0xff]   ;;  %v977_v8 = vld [vmem:[%s1488_s0 + $0x10] sm:$0xff]  }
   0x3   :  { %893 = vmatpush3.bf16.msra.mxu0 %v970_v0  ;;  %965 = vmatpush3.bf16.msra.mxu1 %v970_v0  ;;  %v974_v4 = vld [vmem:[%s1488_s0 + $0x80] sm:$0xff]   ;;  %v976_v7 = vld [vmem:[%s1488_s0 + $0x88] sm:$0xff]   ;;  %v978_v9 = vld [vmem:[%s1488_s0 + $0x90] sm:$0xff]  }
   0x4   :  { %894 = vmatprep.subr.bf16.mxu0 %v971_v1  ;;  %963 = vmatprep.subr.bf16.mxu1 %v971_v1  ;;  %v979_v10 = vld [vmem:[%s1488_s0 + $0x18] sm:$0xff]   ;;  %v981_v12 = vld [vmem:[%s1488_s0 + $0x20] sm:$0xff]   ;;  %v983_v14 = vld [vmem:[%s1488_s0 + $0x28] sm:$0xff]  }
   0x5   :  { %898 = vmatprep.mubr.msk.bf16.mxu0 %vm266_vm0, %v973_v3  ;;  %930 = vmatprep.mubr.msk.bf16.mxu1 %vm266_vm0, %v974_v4  ;;  %v980_v11 = vld [vmem:[%s1488_s0 + $0x98] sm:$0xff]   ;;  %v982_v13 = vld [vmem:[%s1488_s0 + $0xa0] sm:$0xff]   ;;  %v984_v15 = vld [vmem:[%s1488_s0 + $0xa8] sm:$0xff]  }
   0x6   :  { %v985_v16 = vld [vmem:[%s1488_s0 + $0x30] sm:$0xff]   ;;  %v987_v18 = vld [vmem:[%s1488_s0 + $0x38] sm:$0xff]   ;;  %v989_v20 = vld [vmem:[%s1488_s0 + $0x40] sm:$0xff]  }
   0x7   :  { %895 = vmatpush3.bf16.msra.mxu0 %v971_v1  ;;  %966 = vmatpush3.bf16.msra.mxu1 %v971_v1  ;;  %v986_v17 = vld [vmem:[%s1488_s0 + $0xb0] sm:$0xff]   ;;  %v988_v19 = vld [vmem:[%s1488_s0 + $0xb8] sm:$0xff]   ;;  %v990_v21 = vld [vmem:[%s1488_s0 + $0xc0] sm:$0xff]  }
   0x8   :  { %968 = vmatprep.subr.msk.bf16.mxu0 %vm363_vm1, %v972_v2  ;;  %969 = vmatprep.subr.msk.bf16.mxu1 %vm363_vm1, %v972_v2  ;;  %v991_v22 = vld [vmem:[%s1488_s0 + $0x48] sm:$0xff]   ;;  %v993_v24 = vld [vmem:[%s1488_s0 + $0x50] sm:$0xff]   ;;  %v995_v26 = vld [vmem:[%s1488_s0 + $0x58] sm:$0xff]  }
   0x9   :  { %v992_v23 = vld [vmem:[%s1488_s0 + $0xc8] sm:$0xff]   ;;  %v994_v25 = vld [vmem:[%s1488_s0 + $0xd0] sm:$0xff]   ;;  %v996_v27 = vld [vmem:[%s1488_s0 + $0xd8] sm:$0xff]  }
   0xa   :  { %v997_v28 = vld [vmem:[%s1488_s0 + $0x60] sm:$0xff]   ;;  %v999_v30 = vld [vmem:[%s1488_s0 + $0x68] sm:$0xff]   ;;  %v1001_v32 = vld [vmem:[%s1488_s0 + $0x70] sm:$0xff]  }
   0xb   :  { %897 = vmatpush3.bf16.msra.mxu0 %v365_v5  ;;  %967 = vmatpush3.bf16.msra.mxu1 %v365_v5  ;;  %v998_v29 = vld [vmem:[%s1488_s0 + $0xe0] sm:$0xff]   ;;  %v1000_v31 = vld [vmem:[%s1488_s0 + $0xe8] sm:$0xff]   ;;  %v1002_v33 = vld [vmem:[%s1488_s0 + $0xf0] sm:$0xff]  }
   0xc   :  { %v1003_v34 = vld [vmem:[%s1488_s0 + $0x78] sm:$0xff]   ;;  %v1165_v36 = vld [vmem:[%s1489_s2] ss:$0 sm:$0xff] }
   0xd   :  { %v1004_v35 = vld [vmem:[%s1488_s0 + $0xf8] sm:$0xff]  }
   0xe   :  { %899 = vmatmul.mubr.msk.bf16.vlgmr.msra.gmra.mrb[0].mxu0 %vm266_vm0, %v975_v6  ;;  %931 = vmatmul.mubr.msk.bf16.vlgmr.msra.gmra.mrb[0].mxu1 %vm266_vm0, %v976_v7 }
   0xf   :  { %902 = vmatprep.mubr.msk.bf16.mxu0 %vm266_vm0, %v977_v8  ;;  %934 = vmatprep.mubr.msk.bf16.mxu1 %vm266_vm0, %v978_v9 }
  0x16   :  { %903 = vmatmul.mubr.msk.bf16.gmra.mrb[4].mxu0 %vm266_vm0, %v979_v10  ;;  %935 = vmatmul.mubr.msk.bf16.gmra.mrb[4].mxu1 %vm266_vm0, %v980_v11 }
  0x17   :  { %906 = vmatprep.mubr.msk.bf16.mxu0 %vm266_vm0, %v981_v12  ;;  %938 = vmatprep.mubr.msk.bf16.mxu1 %vm266_vm0, %v982_v13 }
  0x1e   :  { %907 = vmatmul.mubr.msk.bf16.gmra.mrb[8].mxu0 %vm266_vm0, %v983_v14  ;;  %939 = vmatmul.mubr.msk.bf16.gmra.mrb[8].mxu1 %vm266_vm0, %v984_v15 }
  0x1f   :  { %910 = vmatprep.mubr.msk.bf16.mxu0 %vm266_vm0, %v985_v16  ;;  %942 = vmatprep.mubr.msk.bf16.mxu1 %vm266_vm0, %v986_v17 }
  0x26   :  { %911 = vmatmul.mubr.msk.bf16.gmra.mrb[12].mxu0 %vm266_vm0, %v987_v18  ;;  %943 = vmatmul.mubr.msk.bf16.gmra.mrb[12].mxu1 %vm266_vm0, %v988_v19 }
  0x27   :  { %914 = vmatprep.mubr.msk.bf16.mxu0 %vm266_vm0, %v989_v20  ;;  %946 = vmatprep.mubr.msk.bf16.mxu1 %vm266_vm0, %v990_v21 }
  0x2e   :  { %915 = vmatmul.mubr.msk.bf16.gmra.mrb[16].mxu0 %vm266_vm0, %v991_v22  ;;  %947 = vmatmul.mubr.msk.bf16.gmra.mrb[16].mxu1 %vm266_vm0, %v992_v23 }
  0x2f   :  { %918 = vmatprep.mubr.msk.bf16.mxu0 %vm266_vm0, %v993_v24  ;;  %950 = vmatprep.mubr.msk.bf16.mxu1 %vm266_vm0, %v994_v25 }
  0x36   :  { %919 = vmatmul.mubr.msk.bf16.gmra.mrb[20].mxu0 %vm266_vm0, %v995_v26  ;;  %951 = vmatmul.mubr.msk.bf16.gmra.mrb[20].mxu1 %vm266_vm0, %v996_v27 }
  0x37   :  { %922 = vmatprep.mubr.msk.bf16.mxu0 %vm266_vm0, %v997_v28  ;;  %954 = vmatprep.mubr.msk.bf16.mxu1 %vm266_vm0, %v998_v29 }
  0x3e   :  { %923 = vmatmul.mubr.msk.bf16.gmra.mrb[24].mxu0 %vm266_vm0, %v999_v30  ;;  %955 = vmatmul.mubr.msk.bf16.gmra.mrb[24].mxu1 %vm266_vm0, %v1000_v31 }
  0x3f   :  { %926 = vmatprep.mubr.msk.bf16.mxu0 %vm266_vm0, %v1001_v32  ;;  %958 = vmatprep.mubr.msk.bf16.mxu1 %vm266_vm0, %v1002_v33 }
  0x46   :  { %927 = vmatmul.mubr.msk.bf16.gmra.mrb[28].mxu0 %vm266_vm0, %v1003_v34  ;;  %959 = vmatmul.mubr.msk.bf16.gmra.mrb[28].mxu1 %vm266_vm0, %v1004_v35 }
  0xe1   :  { %v900_v37 = vpop.f32.mrb[0].mxu0  ;;  %v932_v38 = vpop.f32.mrb[0].mxu1 }
  0xe2   :  { %v410_v39 = vadd.f32 %v900_v37, %v1165_v36  ;;  %v538_v40 = vadd.f32 %v932_v38, %v1165_v36  ;;  %v401_v41 = vpop.f32.mrb[1].mxu0  ;;  %v529_v42 = vpop.f32.mrb[1].mxu1 }
  0xe3   :  { %v402_v43 = vadd.f32 %v1165_v36, %v401_v41  ;;  %v530_v44 = vadd.f32 %v1165_v36, %v529_v42  ;;  %v901_v45 = vpop.f32.mrb[2].mxu0  ;;  %v933_v46 = vpop.f32.mrb[2].mxu1 }
  0xe4   :  { %v658_v47 = vmax.f32 %v410_v39, 0.0  ;;  %v690_v48 = vmax.f32 %v538_v40, 0.0  ;;  %v413_v49 = vadd.f32 %v901_v45, %v1165_v36  ;;  %v541_v50 = vadd.f32 %v933_v46, %v1165_v36  ;;  %v404_v51 = vpop.f32.mrb[3].mxu0  ;;  %v532_v52 = vpop.f32.mrb[3].mxu1 }
  0xe5   :  { %v656_v53 = vmax.f32 %v402_v43, 0.0  ;;  %v688_v54 = vmax.f32 %v530_v44, 0.0  ;;  %v405_v55 = vadd.f32 %v1165_v36, %v404_v51  ;;  %v533_v56 = vadd.f32 %v1165_v36, %v532_v52 }
  0xe6   :  { %723 = vst.msk [vmem:[%s1490_s3 + $0x10] sm:$0xff] %vm720_vm2, %v658_v47  ;;  %755 = vst.msk [vmem:[%s1490_s3 + $0x110] sm:$0xff] %vm720_vm2, %v690_v48  ;;  %v659_v57 = vmax.f32 %v413_v49, 0.0  ;;  %v691_v58 = vmax.f32 %v541_v50, 0.0 }
  0xe7   :  { %721 = vst.msk [vmem:[%s1490_s3] sm:$0xff] %vm720_vm2, %v656_v53  ;;  %753 = vst.msk [vmem:[%s1490_s3 + $0x100] sm:$0xff] %vm720_vm2, %v688_v54  ;;  %v657_v59 = vmax.f32 %v405_v55, 0.0  ;;  %v689_v60 = vmax.f32 %v533_v56, 0.0 }
  0xe8   :  { %724 = vst.msk [vmem:[%s1490_s3 + $0x18] sm:$0xff] %vm720_vm2, %v659_v57  ;;  %756 = vst.msk [vmem:[%s1490_s3 + $0x118] sm:$0xff] %vm720_vm2, %v691_v58 }
  0xe9   :  { %722 = vst.msk [vmem:[%s1490_s3 + $0x8] sm:$0xff] %vm720_vm2, %v657_v59  ;;  %754 = vst.msk [vmem:[%s1490_s3 + $0x108] sm:$0xff] %vm720_vm2, %v689_v60  ;;  %v904_v61 = vpop.f32.mrb[4].mxu0  ;;  %v936_v62 = vpop.f32.mrb[4].mxu1 }
  0xea   :  { %v426_v63 = vadd.f32 %v904_v61, %v1165_v36  ;;  %v554_v0 = vadd.f32 %v936_v62, %v1165_v36  ;;  %v417_v1 = vpop.f32.mrb[5].mxu0  ;;  %v545_v2 = vpop.f32.mrb[5].mxu1 }
  0xeb   :  { %v418_v3 = vadd.f32 %v1165_v36, %v417_v1  ;;  %v546_v4 = vadd.f32 %v1165_v36, %v545_v2  ;;  %v905_v5 = vpop.f32.mrb[6].mxu0  ;;  %v937_v6 = vpop.f32.mrb[6].mxu1 }
  0xec   :  { %v662_v7 = vmax.f32 %v426_v63, 0.0  ;;  %v694_v8 = vmax.f32 %v554_v0, 0.0  ;;  %v429_v9 = vadd.f32 %v905_v5, %v1165_v36  ;;  %v557_v10 = vadd.f32 %v937_v6, %v1165_v36  ;;  %v420_v11 = vpop.f32.mrb[7].mxu0  ;;  %v548_v12 = vpop.f32.mrb[7].mxu1 }
  0xed   :  { %v660_v13 = vmax.f32 %v418_v3, 0.0  ;;  %v692_v14 = vmax.f32 %v546_v4, 0.0  ;;  %v421_v15 = vadd.f32 %v1165_v36, %v420_v11  ;;  %v549_v16 = vadd.f32 %v1165_v36, %v548_v12 }
  0xee   :  { %727 = vst.msk [vmem:[%s1490_s3 + $0x30] sm:$0xff] %vm720_vm2, %v662_v7  ;;  %759 = vst.msk [vmem:[%s1490_s3 + $0x130] sm:$0xff] %vm720_vm2, %v694_v8  ;;  %v663_v17 = vmax.f32 %v429_v9, 0.0  ;;  %v695_v18 = vmax.f32 %v557_v10, 0.0 }
  0xef   :  { %725 = vst.msk [vmem:[%s1490_s3 + $0x20] sm:$0xff] %vm720_vm2, %v660_v13  ;;  %757 = vst.msk [vmem:[%s1490_s3 + $0x120] sm:$0xff] %vm720_vm2, %v692_v14  ;;  %v661_v19 = vmax.f32 %v421_v15, 0.0  ;;  %v693_v20 = vmax.f32 %v549_v16, 0.0 }
  0xf0   :  { %728 = vst.msk [vmem:[%s1490_s3 + $0x38] sm:$0xff] %vm720_vm2, %v663_v17  ;;  %760 = vst.msk [vmem:[%s1490_s3 + $0x138] sm:$0xff] %vm720_vm2, %v695_v18 }
  0xf1   :  { %726 = vst.msk [vmem:[%s1490_s3 + $0x28] sm:$0xff] %vm720_vm2, %v661_v19  ;;  %758 = vst.msk [vmem:[%s1490_s3 + $0x128] sm:$0xff] %vm720_vm2, %v693_v20  ;;  %v908_v21 = vpop.f32.mrb[8].mxu0  ;;  %v940_v22 = vpop.f32.mrb[8].mxu1 }
  0xf2   :  { %v442_v23 = vadd.f32 %v908_v21, %v1165_v36  ;;  %v570_v24 = vadd.f32 %v940_v22, %v1165_v36  ;;  %v433_v25 = vpop.f32.mrb[9].mxu0  ;;  %v561_v26 = vpop.f32.mrb[9].mxu1 }
  0xf3   :  { %v434_v27 = vadd.f32 %v1165_v36, %v433_v25  ;;  %v562_v28 = vadd.f32 %v1165_v36, %v561_v26  ;;  %v909_v29 = vpop.f32.mrb[10].mxu0  ;;  %v941_v30 = vpop.f32.mrb[10].mxu1 }
  0xf4   :  { %v666_v31 = vmax.f32 %v442_v23, 0.0  ;;  %v698_v32 = vmax.f32 %v570_v24, 0.0  ;;  %v445_v33 = vadd.f32 %v909_v29, %v1165_v36  ;;  %v573_v34 = vadd.f32 %v941_v30, %v1165_v36  ;;  %v436_v35 = vpop.f32.mrb[11].mxu0  ;;  %v564_v37 = vpop.f32.mrb[11].mxu1 }
  0xf5   :  { %v664_v38 = vmax.f32 %v434_v27, 0.0  ;;  %v696_v39 = vmax.f32 %v562_v28, 0.0  ;;  %v437_v40 = vadd.f32 %v1165_v36, %v436_v35  ;;  %v565_v41 = vadd.f32 %v1165_v36, %v564_v37 }
  0xf6   :  { %731 = vst.msk [vmem:[%s1490_s3 + $0x50] sm:$0xff] %vm720_vm2, %v666_v31  ;;  %763 = vst.msk [vmem:[%s1490_s3 + $0x150] sm:$0xff] %vm720_vm2, %v698_v32  ;;  %v667_v42 = vmax.f32 %v445_v33, 0.0  ;;  %v699_v43 = vmax.f32 %v573_v34, 0.0 }
  0xf7   :  { %729 = vst.msk [vmem:[%s1490_s3 + $0x40] sm:$0xff] %vm720_vm2, %v664_v38  ;;  %761 = vst.msk [vmem:[%s1490_s3 + $0x140] sm:$0xff] %vm720_vm2, %v696_v39  ;;  %v665_v44 = vmax.f32 %v437_v40, 0.0  ;;  %v697_v45 = vmax.f32 %v565_v41, 0.0 }
  0xf8   :  { %732 = vst.msk [vmem:[%s1490_s3 + $0x58] sm:$0xff] %vm720_vm2, %v667_v42  ;;  %764 = vst.msk [vmem:[%s1490_s3 + $0x158] sm:$0xff] %vm720_vm2, %v699_v43 }
  0xf9   :  { %730 = vst.msk [vmem:[%s1490_s3 + $0x48] sm:$0xff] %vm720_vm2, %v665_v44  ;;  %762 = vst.msk [vmem:[%s1490_s3 + $0x148] sm:$0xff] %vm720_vm2, %v697_v45  ;;  %v912_v46 = vpop.f32.mrb[12].mxu0  ;;  %v944_v47 = vpop.f32.mrb[12].mxu1 }
  0xfa   :  { %v458_v48 = vadd.f32 %v912_v46, %v1165_v36  ;;  %v586_v49 = vadd.f32 %v944_v47, %v1165_v36  ;;  %v449_v50 = vpop.f32.mrb[13].mxu0  ;;  %v577_v51 = vpop.f32.mrb[13].mxu1 }
  0xfb   :  { %v450_v52 = vadd.f32 %v1165_v36, %v449_v50  ;;  %v578_v53 = vadd.f32 %v1165_v36, %v577_v51  ;;  %v913_v54 = vpop.f32.mrb[14].mxu0  ;;  %v945_v55 = vpop.f32.mrb[14].mxu1 }
  0xfc   :  { %v670_v56 = vmax.f32 %v458_v48, 0.0  ;;  %v702_v57 = vmax.f32 %v586_v49, 0.0  ;;  %v461_v58 = vadd.f32 %v913_v54, %v1165_v36  ;;  %v589_v59 = vadd.f32 %v945_v55, %v1165_v36  ;;  %v452_v60 = vpop.f32.mrb[15].mxu0  ;;  %v580_v61 = vpop.f32.mrb[15].mxu1 }
  0xfd   :  { %v668_v62 = vmax.f32 %v450_v52, 0.0  ;;  %v700_v63 = vmax.f32 %v578_v53, 0.0  ;;  %v453_v0 = vadd.f32 %v1165_v36, %v452_v60  ;;  %v581_v1 = vadd.f32 %v1165_v36, %v580_v61 }
  0xfe   :  { %735 = vst.msk [vmem:[%s1490_s3 + $0x70] sm:$0xff] %vm720_vm2, %v670_v56  ;;  %767 = vst.msk [vmem:[%s1490_s3 + $0x170] sm:$0xff] %vm720_vm2, %v702_v57  ;;  %v671_v2 = vmax.f32 %v461_v58, 0.0  ;;  %v703_v3 = vmax.f32 %v589_v59, 0.0 }
  0xff   :  { %733 = vst.msk [vmem:[%s1490_s3 + $0x60] sm:$0xff] %vm720_vm2, %v668_v62  ;;  %765 = vst.msk [vmem:[%s1490_s3 + $0x160] sm:$0xff] %vm720_vm2, %v700_v63  ;;  %v669_v4 = vmax.f32 %v453_v0, 0.0  ;;  %v701_v5 = vmax.f32 %v581_v1, 0.0 }
 0x100   :  { %736 = vst.msk [vmem:[%s1490_s3 + $0x78] sm:$0xff] %vm720_vm2, %v671_v2  ;;  %768 = vst.msk [vmem:[%s1490_s3 + $0x178] sm:$0xff] %vm720_vm2, %v703_v3 }
 0x101   :  { %734 = vst.msk [vmem:[%s1490_s3 + $0x68] sm:$0xff] %vm720_vm2, %v669_v4  ;;  %766 = vst.msk [vmem:[%s1490_s3 + $0x168] sm:$0xff] %vm720_vm2, %v701_v5  ;;  %v916_v6 = vpop.f32.mrb[16].mxu0  ;;  %v948_v7 = vpop.f32.mrb[16].mxu1 }
 0x102   :  { %v474_v8 = vadd.f32 %v916_v6, %v1165_v36  ;;  %v602_v9 = vadd.f32 %v948_v7, %v1165_v36  ;;  %v465_v10 = vpop.f32.mrb[17].mxu0  ;;  %v593_v11 = vpop.f32.mrb[17].mxu1 }
 0x103   :  { %v466_v12 = vadd.f32 %v1165_v36, %v465_v10  ;;  %v594_v13 = vadd.f32 %v1165_v36, %v593_v11  ;;  %v917_v14 = vpop.f32.mrb[18].mxu0  ;;  %v949_v15 = vpop.f32.mrb[18].mxu1 }
 0x104   :  { %v674_v16 = vmax.f32 %v474_v8, 0.0  ;;  %v706_v17 = vmax.f32 %v602_v9, 0.0  ;;  %v477_v18 = vadd.f32 %v917_v14, %v1165_v36  ;;  %v605_v19 = vadd.f32 %v949_v15, %v1165_v36  ;;  %v468_v20 = vpop.f32.mrb[19].mxu0  ;;  %v596_v21 = vpop.f32.mrb[19].mxu1 }
 0x105   :  { %v672_v22 = vmax.f32 %v466_v12, 0.0  ;;  %v704_v23 = vmax.f32 %v594_v13, 0.0  ;;  %v469_v24 = vadd.f32 %v1165_v36, %v468_v20  ;;  %v597_v25 = vadd.f32 %v1165_v36, %v596_v21 }
 0x106   :  { %739 = vst.msk [vmem:[%s1490_s3 + $0x90] sm:$0xff] %vm720_vm2, %v674_v16  ;;  %771 = vst.msk [vmem:[%s1490_s3 + $0x190] sm:$0xff] %vm720_vm2, %v706_v17  ;;  %v675_v26 = vmax.f32 %v477_v18, 0.0  ;;  %v707_v27 = vmax.f32 %v605_v19, 0.0 }
 0x107   :  { %737 = vst.msk [vmem:[%s1490_s3 + $0x80] sm:$0xff] %vm720_vm2, %v672_v22  ;;  %769 = vst.msk [vmem:[%s1490_s3 + $0x180] sm:$0xff] %vm720_vm2, %v704_v23  ;;  %v673_v28 = vmax.f32 %v469_v24, 0.0  ;;  %v705_v29 = vmax.f32 %v597_v25, 0.0 }
 0x108   :  { %740 = vst.msk [vmem:[%s1490_s3 + $0x98] sm:$0xff] %vm720_vm2, %v675_v26  ;;  %772 = vst.msk [vmem:[%s1490_s3 + $0x198] sm:$0xff] %vm720_vm2, %v707_v27 }
 0x109   :  { %738 = vst.msk [vmem:[%s1490_s3 + $0x88] sm:$0xff] %vm720_vm2, %v673_v28  ;;  %770 = vst.msk [vmem:[%s1490_s3 + $0x188] sm:$0xff] %vm720_vm2, %v705_v29  ;;  %v920_v30 = vpop.f32.mrb[20].mxu0  ;;  %v952_v31 = vpop.f32.mrb[20].mxu1 }
 0x10a   :  { %v490_v32 = vadd.f32 %v920_v30, %v1165_v36  ;;  %v618_v33 = vadd.f32 %v952_v31, %v1165_v36  ;;  %v481_v34 = vpop.f32.mrb[21].mxu0  ;;  %v609_v35 = vpop.f32.mrb[21].mxu1 }
 0x10b   :  { %v482_v37 = vadd.f32 %v1165_v36, %v481_v34  ;;  %v610_v38 = vadd.f32 %v1165_v36, %v609_v35  ;;  %v921_v39 = vpop.f32.mrb[22].mxu0  ;;  %v953_v40 = vpop.f32.mrb[22].mxu1 }
 0x10c   :  { %v678_v41 = vmax.f32 %v490_v32, 0.0  ;;  %v710_v42 = vmax.f32 %v618_v33, 0.0  ;;  %v493_v43 = vadd.f32 %v921_v39, %v1165_v36  ;;  %v621_v44 = vadd.f32 %v953_v40, %v1165_v36  ;;  %v484_v45 = vpop.f32.mrb[23].mxu0  ;;  %v612_v46 = vpop.f32.mrb[23].mxu1 }
 0x10d   :  { %v676_v47 = vmax.f32 %v482_v37, 0.0  ;;  %v708_v48 = vmax.f32 %v610_v38, 0.0  ;;  %v485_v49 = vadd.f32 %v1165_v36, %v484_v45  ;;  %v613_v50 = vadd.f32 %v1165_v36, %v612_v46 }
 0x10e   :  { %743 = vst.msk [vmem:[%s1490_s3 + $0xb0] sm:$0xff] %vm720_vm2, %v678_v41  ;;  %775 = vst.msk [vmem:[%s1490_s3 + $0x1b0] sm:$0xff] %vm720_vm2, %v710_v42  ;;  %v679_v51 = vmax.f32 %v493_v43, 0.0  ;;  %v711_v52 = vmax.f32 %v621_v44, 0.0 }
 0x10f   :  { %741 = vst.msk [vmem:[%s1490_s3 + $0xa0] sm:$0xff] %vm720_vm2, %v676_v47  ;;  %773 = vst.msk [vmem:[%s1490_s3 + $0x1a0] sm:$0xff] %vm720_vm2, %v708_v48  ;;  %v677_v53 = vmax.f32 %v485_v49, 0.0  ;;  %v709_v54 = vmax.f32 %v613_v50, 0.0 }
 0x110   :  { %744 = vst.msk [vmem:[%s1490_s3 + $0xb8] sm:$0xff] %vm720_vm2, %v679_v51  ;;  %776 = vst.msk [vmem:[%s1490_s3 + $0x1b8] sm:$0xff] %vm720_vm2, %v711_v52 }
 0x111   :  { %742 = vst.msk [vmem:[%s1490_s3 + $0xa8] sm:$0xff] %vm720_vm2, %v677_v53  ;;  %774 = vst.msk [vmem:[%s1490_s3 + $0x1a8] sm:$0xff] %vm720_vm2, %v709_v54  ;;  %v924_v55 = vpop.f32.mrb[24].mxu0  ;;  %v956_v56 = vpop.f32.mrb[24].mxu1 }
 0x112   :  { %v506_v57 = vadd.f32 %v924_v55, %v1165_v36  ;;  %v634_v58 = vadd.f32 %v956_v56, %v1165_v36  ;;  %v497_v59 = vpop.f32.mrb[25].mxu0  ;;  %v625_v60 = vpop.f32.mrb[25].mxu1 }
 0x113   :  { %v498_v61 = vadd.f32 %v1165_v36, %v497_v59  ;;  %v626_v62 = vadd.f32 %v1165_v36, %v625_v60  ;;  %v925_v63 = vpop.f32.mrb[26].mxu0  ;;  %v957_v0 = vpop.f32.mrb[26].mxu1 }
 0x114   :  { %v682_v1 = vmax.f32 %v506_v57, 0.0  ;;  %v714_v2 = vmax.f32 %v634_v58, 0.0  ;;  %v509_v3 = vadd.f32 %v925_v63, %v1165_v36  ;;  %v637_v4 = vadd.f32 %v957_v0, %v1165_v36  ;;  %v500_v5 = vpop.f32.mrb[27].mxu0  ;;  %v628_v6 = vpop.f32.mrb[27].mxu1 }
 0x115   :  { %v680_v7 = vmax.f32 %v498_v61, 0.0  ;;  %v712_v8 = vmax.f32 %v626_v62, 0.0  ;;  %v501_v9 = vadd.f32 %v1165_v36, %v500_v5  ;;  %v629_v10 = vadd.f32 %v1165_v36, %v628_v6 }
 0x116   :  { %747 = vst.msk [vmem:[%s1490_s3 + $0xd0] sm:$0xff] %vm720_vm2, %v682_v1  ;;  %779 = vst.msk [vmem:[%s1490_s3 + $0x1d0] sm:$0xff] %vm720_vm2, %v714_v2  ;;  %v683_v11 = vmax.f32 %v509_v3, 0.0  ;;  %v715_v12 = vmax.f32 %v637_v4, 0.0 }
 0x117   :  { %745 = vst.msk [vmem:[%s1490_s3 + $0xc0] sm:$0xff] %vm720_vm2, %v680_v7  ;;  %777 = vst.msk [vmem:[%s1490_s3 + $0x1c0] sm:$0xff] %vm720_vm2, %v712_v8  ;;  %v681_v13 = vmax.f32 %v501_v9, 0.0  ;;  %v713_v14 = vmax.f32 %v629_v10, 0.0 }
 0x118   :  { %748 = vst.msk [vmem:[%s1490_s3 + $0xd8] sm:$0xff] %vm720_vm2, %v683_v11  ;;  %780 = vst.msk [vmem:[%s1490_s3 + $0x1d8] sm:$0xff] %vm720_vm2, %v715_v12 }
 0x119   :  { %746 = vst.msk [vmem:[%s1490_s3 + $0xc8] sm:$0xff] %vm720_vm2, %v681_v13  ;;  %778 = vst.msk [vmem:[%s1490_s3 + $0x1c8] sm:$0xff] %vm720_vm2, %v713_v14  ;;  %v928_v15 = vpop.f32.mrb[28].mxu0  ;;  %v960_v16 = vpop.f32.mrb[28].mxu1 }
 0x11a   :  { %v522_v17 = vadd.f32 %v928_v15, %v1165_v36  ;;  %v650_v18 = vadd.f32 %v960_v16, %v1165_v36  ;;  %v513_v19 = vpop.f32.mrb[29].mxu0  ;;  %v641_v20 = vpop.f32.mrb[29].mxu1 }
 0x11b   :  { %v514_v21 = vadd.f32 %v1165_v36, %v513_v19  ;;  %v642_v22 = vadd.f32 %v1165_v36, %v641_v20  ;;  %v929_v23 = vpop.f32.mrb[30].mxu0  ;;  %v961_v24 = vpop.f32.mrb[30].mxu1 }
 0x11c   :  { %v686_v25 = vmax.f32 %v522_v17, 0.0  ;;  %v718_v26 = vmax.f32 %v650_v18, 0.0  ;;  %v525_v27 = vadd.f32 %v929_v23, %v1165_v36  ;;  %v653_v28 = vadd.f32 %v961_v24, %v1165_v36  ;;  %v516_v29 = vpop.f32.mrb[31].mxu0  ;;  %v644_v30 = vpop.f32.mrb[31].mxu1 }
 0x11d   :  { %v684_v31 = vmax.f32 %v514_v21, 0.0  ;;  %v716_v32 = vmax.f32 %v642_v22, 0.0  ;;  %v517_v33 = vadd.f32 %v1165_v36, %v516_v29  ;;  %v645_v34 = vadd.f32 %v1165_v36, %v644_v30 }
 0x11e   :  { %751 = vst.msk [vmem:[%s1490_s3 + $0xf0] sm:$0xff] %vm720_vm2, %v686_v25  ;;  %783 = vst.msk [vmem:[%s1490_s3 + $0x1f0] sm:$0xff] %vm720_vm2, %v718_v26  ;;  %v687_v35 = vmax.f32 %v525_v27, 0.0  ;;  %v719_v37 = vmax.f32 %v653_v28, 0.0 }
 0x11f   :  { %749 = vst.msk [vmem:[%s1490_s3 + $0xe0] sm:$0xff] %vm720_vm2, %v684_v31  ;;  %781 = vst.msk [vmem:[%s1490_s3 + $0x1e0] sm:$0xff] %vm720_vm2, %v716_v32  ;;  %v685_v36 = vmax.f32 %v517_v33, 0.0  ;;  %v717_v38 = vmax.f32 %v645_v34, 0.0 }
 0x120   :  { %752 = vst.msk [vmem:[%s1490_s3 + $0xf8] sm:$0xff] %vm720_vm2, %v687_v35  ;;  %784 = vst.msk [vmem:[%s1490_s3 + $0x1f8] sm:$0xff] %vm720_vm2, %v719_v37 }
 0x121   :  { %750 = vst.msk [vmem:[%s1490_s3 + $0xe8] sm:$0xff] %vm720_vm2, %v685_v36  ;;  %782 = vst.msk [vmem:[%s1490_s3 + $0x1e8] sm:$0xff] %vm720_vm2, %v717_v38 }

// kernel: resnet_forward.15
= control target key start
LH: loop header
LB: loop body
LE: loop exit
PB: predicated region body
PF: predicated region fallthrough
CT: control target
= control target key end

     0   :  { %vm269_vm0 = vcmask 293888   ;;  %vm366_vm1 = vcmask 1041408   ;;  %vm851_vm2 = vcmask 31744   ;;  %s1815_s1 = inlined_call_operand.vmem [shape: bf16[36,4], index: 1, kind: input, shape index: {}]   ;;  %s1816_s0 = inlined_call_operand.vmem [shape: bf16[512,36], index: 0, kind: input, shape index: {}]   ;;  %s1817_s2 = inlined_call_operand.vmem [shape: f32[1,4], index: 2, kind: input, shape index: {}]   ;;  %s1818_s3 = inlined_call_operand.vmem [shape: f32[512,4], index: 3, kind: input, shape index: {}]   ;;  %s1819_s4 = inlined_call_operand.vmem [shape: f32[512,4], index: 4, kind: output, shape index: {}]  }
   0x1   :  { %v1101_v0 = vld [vmem:[%s1815_s1] sm:$0xff]   ;;  %v1102_v1 = vld [vmem:[%s1815_s1 + $0x8] sm:$0xff]   ;;  %v1103_v2 = vld [vmem:[%s1815_s1 + $0x10] ss:$0 sps:$4 sm:$0x33]  }
   0x2   :  { %1023 = vmatprep.subr.bf16.mxu0 %v1101_v0  ;;  %1093 = vmatprep.subr.bf16.mxu1 %v1101_v0  ;;  %v1104_v3 = vld [vmem:[%s1816_s0] sm:$0xff]   ;;  %v368_v5 = vsel %vm366_vm1, %v1103_v2, 0  ;;  %v1106_v6 = vld [vmem:[%s1816_s0 + $0x8] sm:$0xff]   ;;  %v1108_v8 = vld [vmem:[%s1816_s0 + $0x10] sm:$0xff]  }
   0x3   :  { %1024 = vmatpush3.bf16.msra.mxu0 %v1101_v0  ;;  %1096 = vmatpush3.bf16.msra.mxu1 %v1101_v0  ;;  %v1105_v4 = vld [vmem:[%s1816_s0 + $0x80] sm:$0xff]   ;;  %v1107_v7 = vld [vmem:[%s1816_s0 + $0x88] sm:$0xff]   ;;  %v1109_v9 = vld [vmem:[%s1816_s0 + $0x90] sm:$0xff]  }
   0x4   :  { %1025 = vmatprep.subr.bf16.mxu0 %v1102_v1  ;;  %1094 = vmatprep.subr.bf16.mxu1 %v1102_v1  ;;  %v1110_v10 = vld [vmem:[%s1816_s0 + $0x18] sm:$0xff]   ;;  %v1112_v12 = vld [vmem:[%s1816_s0 + $0x20] sm:$0xff]   ;;  %v1114_v14 = vld [vmem:[%s1816_s0 + $0x28] sm:$0xff]  }
   0x5   :  { %1029 = vmatprep.mubr.msk.bf16.mxu0 %vm269_vm0, %v1104_v3  ;;  %1061 = vmatprep.mubr.msk.bf16.mxu1 %vm269_vm0, %v1105_v4  ;;  %v1111_v11 = vld [vmem:[%s1816_s0 + $0x98] sm:$0xff]   ;;  %v1113_v13 = vld [vmem:[%s1816_s0 + $0xa0] sm:$0xff]   ;;  %v1115_v15 = vld [vmem:[%s1816_s0 + $0xa8] sm:$0xff]  }
   0x6   :  { %v1116_v16 = vld [vmem:[%s1816_s0 + $0x30] sm:$0xff]   ;;  %v1118_v18 = vld [vmem:[%s1816_s0 + $0x38] sm:$0xff]   ;;  %v1120_v20 = vld [vmem:[%s1816_s0 + $0x40] sm:$0xff]  }
   0x7   :  { %1026 = vmatpush3.bf16.msra.mxu0 %v1102_v1  ;;  %1097 = vmatpush3.bf16.msra.mxu1 %v1102_v1  ;;  %v1117_v17 = vld [vmem:[%s1816_s0 + $0xb0] sm:$0xff]   ;;  %v1119_v19 = vld [vmem:[%s1816_s0 + $0xb8] sm:$0xff]   ;;  %v1121_v21 = vld [vmem:[%s1816_s0 + $0xc0] sm:$0xff]  }
   0x8   :  { %1099 = vmatprep.subr.msk.bf16.mxu0 %vm366_vm1, %v1103_v2  ;;  %1100 = vmatprep.subr.msk.bf16.mxu1 %vm366_vm1, %v1103_v2  ;;  %v1122_v22 = vld [vmem:[%s1816_s0 + $0x48] sm:$0xff]   ;;  %v1124_v24 = vld [vmem:[%s1816_s0 + $0x50] sm:$0xff]   ;;  %v1126_v26 = vld [vmem:[%s1816_s0 + $0x58] sm:$0xff]  }
   0x9   :  { %v1123_v23 = vld [vmem:[%s1816_s0 + $0xc8] sm:$0xff]   ;;  %v1125_v25 = vld [vmem:[%s1816_s0 + $0xd0] sm:$0xff]   ;;  %v1127_v27 = vld [vmem:[%s1816_s0 + $0xd8] sm:$0xff]  }
   0xa   :  { %v1128_v28 = vld [vmem:[%s1816_s0 + $0x60] sm:$0xff]   ;;  %v1130_v30 = vld [vmem:[%s1816_s0 + $0x68] sm:$0xff]   ;;  %v1132_v32 = vld [vmem:[%s1816_s0 + $0x70] sm:$0xff]  }
   0xb   :  { %1028 = vmatpush3.bf16.msra.mxu0 %v368_v5  ;;  %1098 = vmatpush3.bf16.msra.mxu1 %v368_v5  ;;  %v1129_v29 = vld [vmem:[%s1816_s0 + $0xe0] sm:$0xff]   ;;  %v1131_v31 = vld [vmem:[%s1816_s0 + $0xe8] sm:$0xff]   ;;  %v1133_v33 = vld [vmem:[%s1816_s0 + $0xf0] sm:$0xff]  }
   0xc   :  { %v1134_v34 = vld [vmem:[%s1816_s0 + $0x78] sm:$0xff]   ;;  %v1301_v36 = vld [vmem:[%s1817_s2] ss:$0 sm:$0xff]  ;;  %v661_v38 = vld [vmem:[%s1818_s3 + $0x10] sm:$0xff] }
   0xd   :  { %v1135_v35 = vld [vmem:[%s1816_s0 + $0xf8] sm:$0xff]   ;;  %v693_v40 = vld [vmem:[%s1818_s3 + $0x110] sm:$0xff]  ;;  %v659_v44 = vld [vmem:[%s1818_s3] sm:$0xff] }
   0xe   :  { %1030 = vmatmul.mubr.msk.bf16.vlgmr.msra.gmra.mrb[0].mxu0 %vm269_vm0, %v1106_v6  ;;  %1062 = vmatmul.mubr.msk.bf16.vlgmr.msra.gmra.mrb[0].mxu1 %vm269_vm0, %v1107_v7  ;;  %v691_v46 = vld [vmem:[%s1818_s3 + $0x100] sm:$0xff]  ;;  %v662_v50 = vld [vmem:[%s1818_s3 + $0x18] sm:$0xff]  ;;  %v660_v58 = vld [vmem:[%s1818_s3 + $0x8] sm:$0xff] }
   0xf   :  { %1033 = vmatprep.mubr.msk.bf16.mxu0 %vm269_vm0, %v1108_v8  ;;  %1065 = vmatprep.mubr.msk.bf16.mxu1 %vm269_vm0, %v1109_v9  ;;  %v694_v52 = vld [vmem:[%s1818_s3 + $0x118] sm:$0xff]  ;;  %v692_v60 = vld [vmem:[%s1818_s3 + $0x108] sm:$0xff] }
  0x16   :  { %1034 = vmatmul.mubr.msk.bf16.gmra.mrb[4].mxu0 %vm269_vm0, %v1110_v10  ;;  %1066 = vmatmul.mubr.msk.bf16.gmra.mrb[4].mxu1 %vm269_vm0, %v1111_v11 }
  0x17   :  { %1037 = vmatprep.mubr.msk.bf16.mxu0 %vm269_vm0, %v1112_v12  ;;  %1069 = vmatprep.mubr.msk.bf16.mxu1 %vm269_vm0, %v1113_v13 }
  0x1e   :  { %1038 = vmatmul.mubr.msk.bf16.gmra.mrb[8].mxu0 %vm269_vm0, %v1114_v14  ;;  %1070 = vmatmul.mubr.msk.bf16.gmra.mrb[8].mxu1 %vm269_vm0, %v1115_v15  ;;  %v665_v14 = vld [vmem:[%s1818_s3 + $0x30] sm:$0xff] }
  0x1f   :  { %1041 = vmatprep.mubr.msk.bf16.mxu0 %vm269_vm0, %v1116_v16  ;;  %1073 = vmatprep.mubr.msk.bf16.mxu1 %vm269_vm0, %v1117_v17  ;;  %v697_v16 = vld [vmem:[%s1818_s3 + $0x130] sm:$0xff] }
  0x26   :  { %1042 = vmatmul.mubr.msk.bf16.gmra.mrb[12].mxu0 %vm269_vm0, %v1118_v18  ;;  %1074 = vmatmul.mubr.msk.bf16.gmra.mrb[12].mxu1 %vm269_vm0, %v1119_v19 }
  0x27   :  { %1045 = vmatprep.mubr.msk.bf16.mxu0 %vm269_vm0, %v1120_v20  ;;  %1077 = vmatprep.mubr.msk.bf16.mxu1 %vm269_vm0, %v1121_v21  ;;  %v663_v20 = vld [vmem:[%s1818_s3 + $0x20] sm:$0xff] }
  0x2e   :  { %1046 = vmatmul.mubr.msk.bf16.gmra.mrb[16].mxu0 %vm269_vm0, %v1122_v22  ;;  %1078 = vmatmul.mubr.msk.bf16.gmra.mrb[16].mxu1 %vm269_vm0, %v1123_v23  ;;  %v695_v22 = vld [vmem:[%s1818_s3 + $0x120] sm:$0xff] }
  0x2f   :  { %1049 = vmatprep.mubr.msk.bf16.mxu0 %vm269_vm0, %v1124_v24  ;;  %1081 = vmatprep.mubr.msk.bf16.mxu1 %vm269_vm0, %v1125_v25 }
  0x36   :  { %1050 = vmatmul.mubr.msk.bf16.gmra.mrb[20].mxu0 %vm269_vm0, %v1126_v26  ;;  %1082 = vmatmul.mubr.msk.bf16.gmra.mrb[20].mxu1 %vm269_vm0, %v1127_v27  ;;  %v666_v26 = vld [vmem:[%s1818_s3 + $0x38] sm:$0xff] }
  0x37   :  { %1053 = vmatprep.mubr.msk.bf16.mxu0 %vm269_vm0, %v1128_v28  ;;  %1085 = vmatprep.mubr.msk.bf16.mxu1 %vm269_vm0, %v1129_v29  ;;  %v698_v28 = vld [vmem:[%s1818_s3 + $0x138] sm:$0xff] }
  0x3e   :  { %1054 = vmatmul.mubr.msk.bf16.gmra.mrb[24].mxu0 %vm269_vm0, %v1130_v30  ;;  %1086 = vmatmul.mubr.msk.bf16.gmra.mrb[24].mxu1 %vm269_vm0, %v1131_v31 }
  0x3f   :  { %1057 = vmatprep.mubr.msk.bf16.mxu0 %vm269_vm0, %v1132_v32  ;;  %1089 = vmatprep.mubr.msk.bf16.mxu1 %vm269_vm0, %v1133_v33 }
  0x46   :  { %1058 = vmatmul.mubr.msk.bf16.gmra.mrb[28].mxu0 %vm269_vm0, %v1134_v34  ;;  %1090 = vmatmul.mubr.msk.bf16.gmra.mrb[28].mxu1 %vm269_vm0, %v1135_v35  ;;  %v664_v34 = vld [vmem:[%s1818_s3 + $0x28] sm:$0xff] }
  0xe1   :  { %v1031_v37 = vpop.f32.mrb[0].mxu0  ;;  %v1063_v39 = vpop.f32.mrb[0].mxu1 }
  0xe2   :  { %v413_v41 = vadd.f32 %v1031_v37, %v1301_v36  ;;  %v541_v42 = vadd.f32 %v1063_v39, %v1301_v36  ;;  %v404_v43 = vpop.f32.mrb[1].mxu0  ;;  %v532_v45 = vpop.f32.mrb[1].mxu1  ;;  %v696_v37 = vld [vmem:[%s1818_s3 + $0x128] sm:$0xff] }
  0xe3   :  { %v405_v47 = vadd.f32 %v1301_v36, %v404_v43  ;;  %v533_v48 = vadd.f32 %v1301_v36, %v532_v45  ;;  %v1032_v49 = vpop.f32.mrb[2].mxu0  ;;  %v1064_v51 = vpop.f32.mrb[2].mxu1 }
  0xe4   :  { %v725_v53 = vadd.f32 %v661_v38, %v413_v41  ;;  %v757_v54 = vadd.f32 %v693_v40, %v541_v42  ;;  %v416_v55 = vadd.f32 %v1032_v49, %v1301_v36  ;;  %v544_v56 = vadd.f32 %v1064_v51, %v1301_v36  ;;  %v407_v57 = vpop.f32.mrb[3].mxu0  ;;  %v535_v59 = vpop.f32.mrb[3].mxu1 }
  0xe5   :  { %v723_v61 = vadd.f32 %v659_v44, %v405_v47  ;;  %v755_v62 = vadd.f32 %v691_v46, %v533_v48  ;;  %v408_v63 = vadd.f32 %v1301_v36, %v407_v57  ;;  %v536_v0 = vadd.f32 %v1301_v36, %v535_v59  ;;  %v701_v57 = vld [vmem:[%s1818_s3 + $0x150] sm:$0xff] }
  0xe6   :  { %v789_v1 = vmax.f32 %v725_v53, 0.0  ;;  %v821_v2 = vmax.f32 %v757_v54, 0.0  ;;  %v726_v3 = vadd.f32 %v662_v50, %v416_v55  ;;  %v758_v4 = vadd.f32 %v694_v52, %v544_v56  ;;  %v669_v55 = vld [vmem:[%s1818_s3 + $0x50] sm:$0xff] }
  0xe7   :  { %v787_v5 = vmax.f32 %v723_v61, 0.0  ;;  %v819_v6 = vmax.f32 %v755_v62, 0.0  ;;  %v724_v7 = vadd.f32 %v660_v58, %v408_v63  ;;  %v756_v8 = vadd.f32 %v692_v60, %v536_v0  ;;  %v667_v61 = vld [vmem:[%s1818_s3 + $0x40] sm:$0xff] }
  0xe8   :  { %854 = vst.msk [vmem:[%s1819_s4 + $0x10] sm:$0xff] %vm851_vm2, %v789_v1  ;;  %886 = vst.msk [vmem:[%s1819_s4 + $0x110] sm:$0xff] %vm851_vm2, %v821_v2  ;;  %v790_v9 = vmax.f32 %v726_v3, 0.0  ;;  %v822_v10 = vmax.f32 %v758_v4, 0.0  ;;  %v699_v63 = vld [vmem:[%s1818_s3 + $0x140] sm:$0xff]  ;;  %v670_v3 = vld [vmem:[%s1818_s3 + $0x58] sm:$0xff] }
  0xe9   :  { %852 = vst.msk [vmem:[%s1819_s4] sm:$0xff] %vm851_vm2, %v787_v5  ;;  %884 = vst.msk [vmem:[%s1819_s4 + $0x100] sm:$0xff] %vm851_vm2, %v819_v6  ;;  %v788_v11 = vmax.f32 %v724_v7, 0.0  ;;  %v820_v12 = vmax.f32 %v756_v8, 0.0  ;;  %v1035_v13 = vpop.f32.mrb[4].mxu0  ;;  %v1067_v15 = vpop.f32.mrb[4].mxu1 }
  0xea   :  { %855 = vst.msk [vmem:[%s1819_s4 + $0x18] sm:$0xff] %vm851_vm2, %v790_v9  ;;  %887 = vst.msk [vmem:[%s1819_s4 + $0x118] sm:$0xff] %vm851_vm2, %v822_v10  ;;  %v429_v17 = vadd.f32 %v1035_v13, %v1301_v36  ;;  %v557_v18 = vadd.f32 %v1067_v15, %v1301_v36  ;;  %v420_v19 = vpop.f32.mrb[5].mxu0  ;;  %v548_v21 = vpop.f32.mrb[5].mxu1  ;;  %v702_v5 = vld [vmem:[%s1818_s3 + $0x158] sm:$0xff]  ;;  %v700_v13 = vld [vmem:[%s1818_s3 + $0x148] sm:$0xff] }
  0xeb   :  { %853 = vst.msk [vmem:[%s1819_s4 + $0x8] sm:$0xff] %vm851_vm2, %v788_v11  ;;  %885 = vst.msk [vmem:[%s1819_s4 + $0x108] sm:$0xff] %vm851_vm2, %v820_v12  ;;  %v421_v23 = vadd.f32 %v1301_v36, %v420_v19  ;;  %v549_v24 = vadd.f32 %v1301_v36, %v548_v21  ;;  %v1036_v25 = vpop.f32.mrb[6].mxu0  ;;  %v1068_v27 = vpop.f32.mrb[6].mxu1  ;;  %v668_v11 = vld [vmem:[%s1818_s3 + $0x48] sm:$0xff] }
  0xec   :  { %v729_v29 = vadd.f32 %v665_v14, %v429_v17  ;;  %v761_v30 = vadd.f32 %v697_v16, %v557_v18  ;;  %v432_v31 = vadd.f32 %v1036_v25, %v1301_v36  ;;  %v560_v32 = vadd.f32 %v1068_v27, %v1301_v36  ;;  %v423_v33 = vpop.f32.mrb[7].mxu0  ;;  %v551_v35 = vpop.f32.mrb[7].mxu1 }
  0xed   :  { %v727_v38 = vadd.f32 %v663_v20, %v421_v23  ;;  %v759_v39 = vadd.f32 %v695_v22, %v549_v24  ;;  %v424_v40 = vadd.f32 %v1301_v36, %v423_v33  ;;  %v552_v41 = vadd.f32 %v1301_v36, %v551_v35  ;;  %v705_v33 = vld [vmem:[%s1818_s3 + $0x170] sm:$0xff] }
  0xee   :  { %v793_v42 = vmax.f32 %v729_v29, 0.0  ;;  %v825_v43 = vmax.f32 %v761_v30, 0.0  ;;  %v730_v44 = vadd.f32 %v666_v26, %v432_v31  ;;  %v762_v45 = vadd.f32 %v698_v28, %v560_v32  ;;  %v673_v31 = vld [vmem:[%s1818_s3 + $0x70] sm:$0xff] }
  0xef   :  { %v791_v46 = vmax.f32 %v727_v38, 0.0  ;;  %v823_v47 = vmax.f32 %v759_v39, 0.0  ;;  %v728_v48 = vadd.f32 %v664_v34, %v424_v40  ;;  %v760_v49 = vadd.f32 %v696_v37, %v552_v41  ;;  %v671_v38 = vld [vmem:[%s1818_s3 + $0x60] sm:$0xff] }
  0xf0   :  { %858 = vst.msk [vmem:[%s1819_s4 + $0x30] sm:$0xff] %vm851_vm2, %v793_v42  ;;  %890 = vst.msk [vmem:[%s1819_s4 + $0x130] sm:$0xff] %vm851_vm2, %v825_v43  ;;  %v794_v50 = vmax.f32 %v730_v44, 0.0  ;;  %v826_v51 = vmax.f32 %v762_v45, 0.0  ;;  %v703_v40 = vld [vmem:[%s1818_s3 + $0x160] sm:$0xff]  ;;  %v674_v44 = vld [vmem:[%s1818_s3 + $0x78] sm:$0xff] }
  0xf1   :  { %856 = vst.msk [vmem:[%s1819_s4 + $0x20] sm:$0xff] %vm851_vm2, %v791_v46  ;;  %888 = vst.msk [vmem:[%s1819_s4 + $0x120] sm:$0xff] %vm851_vm2, %v823_v47  ;;  %v792_v52 = vmax.f32 %v728_v48, 0.0  ;;  %v824_v53 = vmax.f32 %v760_v49, 0.0  ;;  %v1039_v54 = vpop.f32.mrb[8].mxu0  ;;  %v1071_v56 = vpop.f32.mrb[8].mxu1 }
  0xf2   :  { %859 = vst.msk [vmem:[%s1819_s4 + $0x38] sm:$0xff] %vm851_vm2, %v794_v50  ;;  %891 = vst.msk [vmem:[%s1819_s4 + $0x138] sm:$0xff] %vm851_vm2, %v826_v51  ;;  %v445_v58 = vadd.f32 %v1039_v54, %v1301_v36  ;;  %v573_v59 = vadd.f32 %v1071_v56, %v1301_v36  ;;  %v436_v60 = vpop.f32.mrb[9].mxu0  ;;  %v564_v62 = vpop.f32.mrb[9].mxu1  ;;  %v706_v46 = vld [vmem:[%s1818_s3 + $0x178] sm:$0xff]  ;;  %v704_v54 = vld [vmem:[%s1818_s3 + $0x168] sm:$0xff] }
  0xf3   :  { %857 = vst.msk [vmem:[%s1819_s4 + $0x28] sm:$0xff] %vm851_vm2, %v792_v52  ;;  %889 = vst.msk [vmem:[%s1819_s4 + $0x128] sm:$0xff] %vm851_vm2, %v824_v53  ;;  %v437_v0 = vadd.f32 %v1301_v36, %v436_v60  ;;  %v565_v1 = vadd.f32 %v1301_v36, %v564_v62  ;;  %v1040_v2 = vpop.f32.mrb[10].mxu0  ;;  %v1072_v4 = vpop.f32.mrb[10].mxu1  ;;  %v672_v52 = vld [vmem:[%s1818_s3 + $0x68] sm:$0xff] }
  0xf4   :  { %v733_v6 = vadd.f32 %v669_v55, %v445_v58  ;;  %v765_v7 = vadd.f32 %v701_v57, %v573_v59  ;;  %v448_v8 = vadd.f32 %v1040_v2, %v1301_v36  ;;  %v576_v9 = vadd.f32 %v1072_v4, %v1301_v36  ;;  %v439_v10 = vpop.f32.mrb[11].mxu0  ;;  %v567_v12 = vpop.f32.mrb[11].mxu1 }
  0xf5   :  { %v731_v14 = vadd.f32 %v667_v61, %v437_v0  ;;  %v763_v15 = vadd.f32 %v699_v63, %v565_v1  ;;  %v440_v16 = vadd.f32 %v1301_v36, %v439_v10  ;;  %v568_v17 = vadd.f32 %v1301_v36, %v567_v12  ;;  %v709_v10 = vld [vmem:[%s1818_s3 + $0x190] sm:$0xff] }
  0xf6   :  { %v797_v18 = vmax.f32 %v733_v6, 0.0  ;;  %v829_v19 = vmax.f32 %v765_v7, 0.0  ;;  %v734_v20 = vadd.f32 %v670_v3, %v448_v8  ;;  %v766_v21 = vadd.f32 %v702_v5, %v576_v9  ;;  %v677_v8 = vld [vmem:[%s1818_s3 + $0x90] sm:$0xff] }
  0xf7   :  { %v795_v22 = vmax.f32 %v731_v14, 0.0  ;;  %v827_v23 = vmax.f32 %v763_v15, 0.0  ;;  %v732_v24 = vadd.f32 %v668_v11, %v440_v16  ;;  %v764_v25 = vadd.f32 %v700_v13, %v568_v17  ;;  %v675_v14 = vld [vmem:[%s1818_s3 + $0x80] sm:$0xff] }
  0xf8   :  { %862 = vst.msk [vmem:[%s1819_s4 + $0x50] sm:$0xff] %vm851_vm2, %v797_v18  ;;  %894 = vst.msk [vmem:[%s1819_s4 + $0x150] sm:$0xff] %vm851_vm2, %v829_v19  ;;  %v798_v26 = vmax.f32 %v734_v20, 0.0  ;;  %v830_v27 = vmax.f32 %v766_v21, 0.0  ;;  %v707_v16 = vld [vmem:[%s1818_s3 + $0x180] sm:$0xff]  ;;  %v678_v20 = vld [vmem:[%s1818_s3 + $0x98] sm:$0xff] }
  0xf9   :  { %860 = vst.msk [vmem:[%s1819_s4 + $0x40] sm:$0xff] %vm851_vm2, %v795_v22  ;;  %892 = vst.msk [vmem:[%s1819_s4 + $0x140] sm:$0xff] %vm851_vm2, %v827_v23  ;;  %v796_v28 = vmax.f32 %v732_v24, 0.0  ;;  %v828_v29 = vmax.f32 %v764_v25, 0.0  ;;  %v1043_v30 = vpop.f32.mrb[12].mxu0  ;;  %v1075_v32 = vpop.f32.mrb[12].mxu1 }
  0xfa   :  { %863 = vst.msk [vmem:[%s1819_s4 + $0x58] sm:$0xff] %vm851_vm2, %v798_v26  ;;  %895 = vst.msk [vmem:[%s1819_s4 + $0x158] sm:$0xff] %vm851_vm2, %v830_v27  ;;  %v461_v34 = vadd.f32 %v1043_v30, %v1301_v36  ;;  %v589_v35 = vadd.f32 %v1075_v32, %v1301_v36  ;;  %v452_v37 = vpop.f32.mrb[13].mxu0  ;;  %v580_v39 = vpop.f32.mrb[13].mxu1  ;;  %v710_v22 = vld [vmem:[%s1818_s3 + $0x198] sm:$0xff]  ;;  %v708_v30 = vld [vmem:[%s1818_s3 + $0x188] sm:$0xff] }
  0xfb   :  { %861 = vst.msk [vmem:[%s1819_s4 + $0x48] sm:$0xff] %vm851_vm2, %v796_v28  ;;  %893 = vst.msk [vmem:[%s1819_s4 + $0x148] sm:$0xff] %vm851_vm2, %v828_v29  ;;  %v453_v41 = vadd.f32 %v1301_v36, %v452_v37  ;;  %v581_v42 = vadd.f32 %v1301_v36, %v580_v39  ;;  %v1044_v43 = vpop.f32.mrb[14].mxu0  ;;  %v1076_v45 = vpop.f32.mrb[14].mxu1  ;;  %v676_v28 = vld [vmem:[%s1818_s3 + $0x88] sm:$0xff] }
  0xfc   :  { %v737_v47 = vadd.f32 %v673_v31, %v461_v34  ;;  %v769_v48 = vadd.f32 %v705_v33, %v589_v35  ;;  %v464_v49 = vadd.f32 %v1044_v43, %v1301_v36  ;;  %v592_v50 = vadd.f32 %v1076_v45, %v1301_v36  ;;  %v455_v51 = vpop.f32.mrb[15].mxu0  ;;  %v583_v53 = vpop.f32.mrb[15].mxu1 }
  0xfd   :  { %v735_v55 = vadd.f32 %v671_v38, %v453_v41  ;;  %v767_v56 = vadd.f32 %v703_v40, %v581_v42  ;;  %v456_v57 = vadd.f32 %v1301_v36, %v455_v51  ;;  %v584_v58 = vadd.f32 %v1301_v36, %v583_v53  ;;  %v713_v51 = vld [vmem:[%s1818_s3 + $0x1b0] sm:$0xff] }
  0xfe   :  { %v801_v59 = vmax.f32 %v737_v47, 0.0  ;;  %v833_v60 = vmax.f32 %v769_v48, 0.0  ;;  %v738_v61 = vadd.f32 %v674_v44, %v464_v49  ;;  %v770_v62 = vadd.f32 %v706_v46, %v592_v50  ;;  %v681_v49 = vld [vmem:[%s1818_s3 + $0xb0] sm:$0xff] }
  0xff   :  { %v799_v63 = vmax.f32 %v735_v55, 0.0  ;;  %v831_v0 = vmax.f32 %v767_v56, 0.0  ;;  %v736_v1 = vadd.f32 %v672_v52, %v456_v57  ;;  %v768_v2 = vadd.f32 %v704_v54, %v584_v58  ;;  %v679_v55 = vld [vmem:[%s1818_s3 + $0xa0] sm:$0xff] }
 0x100   :  { %866 = vst.msk [vmem:[%s1819_s4 + $0x70] sm:$0xff] %vm851_vm2, %v801_v59  ;;  %898 = vst.msk [vmem:[%s1819_s4 + $0x170] sm:$0xff] %vm851_vm2, %v833_v60  ;;  %v802_v3 = vmax.f32 %v738_v61, 0.0  ;;  %v834_v4 = vmax.f32 %v770_v62, 0.0  ;;  %v711_v57 = vld [vmem:[%s1818_s3 + $0x1a0] sm:$0xff]  ;;  %v682_v61 = vld [vmem:[%s1818_s3 + $0xb8] sm:$0xff] }
 0x101   :  { %864 = vst.msk [vmem:[%s1819_s4 + $0x60] sm:$0xff] %vm851_vm2, %v799_v63  ;;  %896 = vst.msk [vmem:[%s1819_s4 + $0x160] sm:$0xff] %vm851_vm2, %v831_v0  ;;  %v800_v5 = vmax.f32 %v736_v1, 0.0  ;;  %v832_v6 = vmax.f32 %v768_v2, 0.0  ;;  %v1047_v7 = vpop.f32.mrb[16].mxu0  ;;  %v1079_v9 = vpop.f32.mrb[16].mxu1 }
 0x102   :  { %867 = vst.msk [vmem:[%s1819_s4 + $0x78] sm:$0xff] %vm851_vm2, %v802_v3  ;;  %899 = vst.msk [vmem:[%s1819_s4 + $0x178] sm:$0xff] %vm851_vm2, %v834_v4  ;;  %v477_v11 = vadd.f32 %v1047_v7, %v1301_v36  ;;  %v605_v12 = vadd.f32 %v1079_v9, %v1301_v36  ;;  %v468_v13 = vpop.f32.mrb[17].mxu0  ;;  %v596_v15 = vpop.f32.mrb[17].mxu1  ;;  %v714_v63 = vld [vmem:[%s1818_s3 + $0x1b8] sm:$0xff]  ;;  %v712_v7 = vld [vmem:[%s1818_s3 + $0x1a8] sm:$0xff] }
 0x103   :  { %865 = vst.msk [vmem:[%s1819_s4 + $0x68] sm:$0xff] %vm851_vm2, %v800_v5  ;;  %897 = vst.msk [vmem:[%s1819_s4 + $0x168] sm:$0xff] %vm851_vm2, %v832_v6  ;;  %v469_v17 = vadd.f32 %v1301_v36, %v468_v13  ;;  %v597_v18 = vadd.f32 %v1301_v36, %v596_v15  ;;  %v1048_v19 = vpop.f32.mrb[18].mxu0  ;;  %v1080_v21 = vpop.f32.mrb[18].mxu1  ;;  %v680_v5 = vld [vmem:[%s1818_s3 + $0xa8] sm:$0xff] }
 0x104   :  { %v741_v23 = vadd.f32 %v677_v8, %v477_v11  ;;  %v773_v24 = vadd.f32 %v709_v10, %v605_v12  ;;  %v480_v25 = vadd.f32 %v1048_v19, %v1301_v36  ;;  %v608_v26 = vadd.f32 %v1080_v21, %v1301_v36  ;;  %v471_v27 = vpop.f32.mrb[19].mxu0  ;;  %v599_v29 = vpop.f32.mrb[19].mxu1 }
 0x105   :  { %v739_v31 = vadd.f32 %v675_v14, %v469_v17  ;;  %v771_v32 = vadd.f32 %v707_v16, %v597_v18  ;;  %v472_v33 = vadd.f32 %v1301_v36, %v471_v27  ;;  %v600_v34 = vadd.f32 %v1301_v36, %v599_v29  ;;  %v717_v27 = vld [vmem:[%s1818_s3 + $0x1d0] sm:$0xff] }
 0x106   :  { %v805_v35 = vmax.f32 %v741_v23, 0.0  ;;  %v837_v37 = vmax.f32 %v773_v24, 0.0  ;;  %v742_v38 = vadd.f32 %v678_v20, %v480_v25  ;;  %v774_v39 = vadd.f32 %v710_v22, %v608_v26  ;;  %v685_v25 = vld [vmem:[%s1818_s3 + $0xd0] sm:$0xff] }
 0x107   :  { %v803_v40 = vmax.f32 %v739_v31, 0.0  ;;  %v835_v41 = vmax.f32 %v771_v32, 0.0  ;;  %v740_v42 = vadd.f32 %v676_v28, %v472_v33  ;;  %v772_v43 = vadd.f32 %v708_v30, %v600_v34  ;;  %v683_v31 = vld [vmem:[%s1818_s3 + $0xc0] sm:$0xff] }
 0x108   :  { %870 = vst.msk [vmem:[%s1819_s4 + $0x90] sm:$0xff] %vm851_vm2, %v805_v35  ;;  %902 = vst.msk [vmem:[%s1819_s4 + $0x190] sm:$0xff] %vm851_vm2, %v837_v37  ;;  %v806_v44 = vmax.f32 %v742_v38, 0.0  ;;  %v838_v45 = vmax.f32 %v774_v39, 0.0  ;;  %v715_v33 = vld [vmem:[%s1818_s3 + $0x1c0] sm:$0xff]  ;;  %v686_v38 = vld [vmem:[%s1818_s3 + $0xd8] sm:$0xff] }
 0x109   :  { %868 = vst.msk [vmem:[%s1819_s4 + $0x80] sm:$0xff] %vm851_vm2, %v803_v40  ;;  %900 = vst.msk [vmem:[%s1819_s4 + $0x180] sm:$0xff] %vm851_vm2, %v835_v41  ;;  %v804_v46 = vmax.f32 %v740_v42, 0.0  ;;  %v836_v47 = vmax.f32 %v772_v43, 0.0  ;;  %v1051_v48 = vpop.f32.mrb[20].mxu0  ;;  %v1083_v50 = vpop.f32.mrb[20].mxu1 }
 0x10a   :  { %871 = vst.msk [vmem:[%s1819_s4 + $0x98] sm:$0xff] %vm851_vm2, %v806_v44  ;;  %903 = vst.msk [vmem:[%s1819_s4 + $0x198] sm:$0xff] %vm851_vm2, %v838_v45  ;;  %v493_v52 = vadd.f32 %v1051_v48, %v1301_v36  ;;  %v621_v53 = vadd.f32 %v1083_v50, %v1301_v36  ;;  %v484_v54 = vpop.f32.mrb[21].mxu0  ;;  %v612_v56 = vpop.f32.mrb[21].mxu1  ;;  %v718_v40 = vld [vmem:[%s1818_s3 + $0x1d8] sm:$0xff]  ;;  %v716_v48 = vld [vmem:[%s1818_s3 + $0x1c8] sm:$0xff] }
 0x10b   :  { %869 = vst.msk [vmem:[%s1819_s4 + $0x88] sm:$0xff] %vm851_vm2, %v804_v46  ;;  %901 = vst.msk [vmem:[%s1819_s4 + $0x188] sm:$0xff] %vm851_vm2, %v836_v47  ;;  %v485_v58 = vadd.f32 %v1301_v36, %v484_v54  ;;  %v613_v59 = vadd.f32 %v1301_v36, %v612_v56  ;;  %v1052_v60 = vpop.f32.mrb[22].mxu0  ;;  %v1084_v62 = vpop.f32.mrb[22].mxu1  ;;  %v684_v46 = vld [vmem:[%s1818_s3 + $0xc8] sm:$0xff] }
 0x10c   :  { %v745_v0 = vadd.f32 %v681_v49, %v493_v52  ;;  %v777_v1 = vadd.f32 %v713_v51, %v621_v53  ;;  %v496_v2 = vadd.f32 %v1052_v60, %v1301_v36  ;;  %v624_v3 = vadd.f32 %v1084_v62, %v1301_v36  ;;  %v487_v4 = vpop.f32.mrb[23].mxu0  ;;  %v615_v6 = vpop.f32.mrb[23].mxu1 }
 0x10d   :  { %v743_v8 = vadd.f32 %v679_v55, %v485_v58  ;;  %v775_v9 = vadd.f32 %v711_v57, %v613_v59  ;;  %v488_v10 = vadd.f32 %v1301_v36, %v487_v4  ;;  %v616_v11 = vadd.f32 %v1301_v36, %v615_v6  ;;  %v721_v4 = vld [vmem:[%s1818_s3 + $0x1f0] sm:$0xff] }
 0x10e   :  { %v809_v12 = vmax.f32 %v745_v0, 0.0  ;;  %v841_v13 = vmax.f32 %v777_v1, 0.0  ;;  %v746_v14 = vadd.f32 %v682_v61, %v496_v2  ;;  %v778_v15 = vadd.f32 %v714_v63, %v624_v3  ;;  %v689_v2 = vld [vmem:[%s1818_s3 + $0xf0] sm:$0xff] }
 0x10f   :  { %v807_v16 = vmax.f32 %v743_v8, 0.0  ;;  %v839_v17 = vmax.f32 %v775_v9, 0.0  ;;  %v744_v18 = vadd.f32 %v680_v5, %v488_v10  ;;  %v776_v19 = vadd.f32 %v712_v7, %v616_v11  ;;  %v687_v8 = vld [vmem:[%s1818_s3 + $0xe0] sm:$0xff] }
 0x110   :  { %874 = vst.msk [vmem:[%s1819_s4 + $0xb0] sm:$0xff] %vm851_vm2, %v809_v12  ;;  %906 = vst.msk [vmem:[%s1819_s4 + $0x1b0] sm:$0xff] %vm851_vm2, %v841_v13  ;;  %v810_v20 = vmax.f32 %v746_v14, 0.0  ;;  %v842_v21 = vmax.f32 %v778_v15, 0.0  ;;  %v719_v10 = vld [vmem:[%s1818_s3 + $0x1e0] sm:$0xff]  ;;  %v690_v14 = vld [vmem:[%s1818_s3 + $0xf8] sm:$0xff] }
 0x111   :  { %872 = vst.msk [vmem:[%s1819_s4 + $0xa0] sm:$0xff] %vm851_vm2, %v807_v16  ;;  %904 = vst.msk [vmem:[%s1819_s4 + $0x1a0] sm:$0xff] %vm851_vm2, %v839_v17  ;;  %v808_v22 = vmax.f32 %v744_v18, 0.0  ;;  %v840_v23 = vmax.f32 %v776_v19, 0.0  ;;  %v1055_v24 = vpop.f32.mrb[24].mxu0  ;;  %v1087_v26 = vpop.f32.mrb[24].mxu1 }
 0x112   :  { %875 = vst.msk [vmem:[%s1819_s4 + $0xb8] sm:$0xff] %vm851_vm2, %v810_v20  ;;  %907 = vst.msk [vmem:[%s1819_s4 + $0x1b8] sm:$0xff] %vm851_vm2, %v842_v21  ;;  %v509_v28 = vadd.f32 %v1055_v24, %v1301_v36  ;;  %v637_v29 = vadd.f32 %v1087_v26, %v1301_v36  ;;  %v500_v30 = vpop.f32.mrb[25].mxu0  ;;  %v628_v32 = vpop.f32.mrb[25].mxu1  ;;  %v722_v16 = vld [vmem:[%s1818_s3 + $0x1f8] sm:$0xff]  ;;  %v720_v24 = vld [vmem:[%s1818_s3 + $0x1e8] sm:$0xff] }
 0x113   :  { %873 = vst.msk [vmem:[%s1819_s4 + $0xa8] sm:$0xff] %vm851_vm2, %v808_v22  ;;  %905 = vst.msk [vmem:[%s1819_s4 + $0x1a8] sm:$0xff] %vm851_vm2, %v840_v23  ;;  %v501_v34 = vadd.f32 %v1301_v36, %v500_v30  ;;  %v629_v35 = vadd.f32 %v1301_v36, %v628_v32  ;;  %v1056_v37 = vpop.f32.mrb[26].mxu0  ;;  %v1088_v39 = vpop.f32.mrb[26].mxu1  ;;  %v688_v22 = vld [vmem:[%s1818_s3 + $0xe8] sm:$0xff] }
 0x114   :  { %v749_v41 = vadd.f32 %v685_v25, %v509_v28  ;;  %v781_v42 = vadd.f32 %v717_v27, %v637_v29  ;;  %v512_v43 = vadd.f32 %v1056_v37, %v1301_v36  ;;  %v640_v44 = vadd.f32 %v1088_v39, %v1301_v36  ;;  %v503_v45 = vpop.f32.mrb[27].mxu0  ;;  %v631_v47 = vpop.f32.mrb[27].mxu1 }
 0x115   :  { %v747_v49 = vadd.f32 %v683_v31, %v501_v34  ;;  %v779_v50 = vadd.f32 %v715_v33, %v629_v35  ;;  %v504_v51 = vadd.f32 %v1301_v36, %v503_v45  ;;  %v632_v52 = vadd.f32 %v1301_v36, %v631_v47 }
 0x116   :  { %v813_v53 = vmax.f32 %v749_v41, 0.0  ;;  %v845_v54 = vmax.f32 %v781_v42, 0.0  ;;  %v750_v55 = vadd.f32 %v686_v38, %v512_v43  ;;  %v782_v56 = vadd.f32 %v718_v40, %v640_v44 }
 0x117   :  { %v811_v57 = vmax.f32 %v747_v49, 0.0  ;;  %v843_v58 = vmax.f32 %v779_v50, 0.0  ;;  %v748_v59 = vadd.f32 %v684_v46, %v504_v51  ;;  %v780_v60 = vadd.f32 %v716_v48, %v632_v52 }
 0x118   :  { %878 = vst.msk [vmem:[%s1819_s4 + $0xd0] sm:$0xff] %vm851_vm2, %v813_v53  ;;  %910 = vst.msk [vmem:[%s1819_s4 + $0x1d0] sm:$0xff] %vm851_vm2, %v845_v54  ;;  %v814_v61 = vmax.f32 %v750_v55, 0.0  ;;  %v846_v62 = vmax.f32 %v782_v56, 0.0 }
 0x119   :  { %876 = vst.msk [vmem:[%s1819_s4 + $0xc0] sm:$0xff] %vm851_vm2, %v811_v57  ;;  %908 = vst.msk [vmem:[%s1819_s4 + $0x1c0] sm:$0xff] %vm851_vm2, %v843_v58  ;;  %v812_v63 = vmax.f32 %v748_v59, 0.0  ;;  %v844_v0 = vmax.f32 %v780_v60, 0.0  ;;  %v1059_v1 = vpop.f32.mrb[28].mxu0  ;;  %v1091_v3 = vpop.f32.mrb[28].mxu1 }
 0x11a   :  { %879 = vst.msk [vmem:[%s1819_s4 + $0xd8] sm:$0xff] %vm851_vm2, %v814_v61  ;;  %911 = vst.msk [vmem:[%s1819_s4 + $0x1d8] sm:$0xff] %vm851_vm2, %v846_v62  ;;  %v525_v5 = vadd.f32 %v1059_v1, %v1301_v36  ;;  %v653_v6 = vadd.f32 %v1091_v3, %v1301_v36  ;;  %v516_v7 = vpop.f32.mrb[29].mxu0  ;;  %v644_v9 = vpop.f32.mrb[29].mxu1 }
 0x11b   :  { %877 = vst.msk [vmem:[%s1819_s4 + $0xc8] sm:$0xff] %vm851_vm2, %v812_v63  ;;  %909 = vst.msk [vmem:[%s1819_s4 + $0x1c8] sm:$0xff] %vm851_vm2, %v844_v0  ;;  %v517_v11 = vadd.f32 %v1301_v36, %v516_v7  ;;  %v645_v12 = vadd.f32 %v1301_v36, %v644_v9  ;;  %v1060_v13 = vpop.f32.mrb[30].mxu0  ;;  %v1092_v15 = vpop.f32.mrb[30].mxu1 }
 0x11c   :  { %v753_v17 = vadd.f32 %v689_v2, %v525_v5  ;;  %v785_v18 = vadd.f32 %v721_v4, %v653_v6  ;;  %v528_v19 = vadd.f32 %v1060_v13, %v1301_v36  ;;  %v656_v20 = vadd.f32 %v1092_v15, %v1301_v36  ;;  %v519_v21 = vpop.f32.mrb[31].mxu0  ;;  %v647_v23 = vpop.f32.mrb[31].mxu1 }
 0x11d   :  { %v751_v25 = vadd.f32 %v687_v8, %v517_v11  ;;  %v783_v26 = vadd.f32 %v719_v10, %v645_v12  ;;  %v520_v27 = vadd.f32 %v1301_v36, %v519_v21  ;;  %v648_v28 = vadd.f32 %v1301_v36, %v647_v23 }
 0x11e   :  { %v817_v29 = vmax.f32 %v753_v17, 0.0  ;;  %v849_v30 = vmax.f32 %v785_v18, 0.0  ;;  %v754_v31 = vadd.f32 %v690_v14, %v528_v19  ;;  %v786_v32 = vadd.f32 %v722_v16, %v656_v20 }
 0x11f   :  { %v815_v33 = vmax.f32 %v751_v25, 0.0  ;;  %v847_v34 = vmax.f32 %v783_v26, 0.0  ;;  %v752_v35 = vadd.f32 %v688_v22, %v520_v27  ;;  %v784_v37 = vadd.f32 %v720_v24, %v648_v28 }
 0x120   :  { %882 = vst.msk [vmem:[%s1819_s4 + $0xf0] sm:$0xff] %vm851_vm2, %v817_v29  ;;  %914 = vst.msk [vmem:[%s1819_s4 + $0x1f0] sm:$0xff] %vm851_vm2, %v849_v30  ;;  %v818_v38 = vmax.f32 %v754_v31, 0.0  ;;  %v850_v36 = vmax.f32 %v786_v32, 0.0 }
 0x121   :  { %880 = vst.msk [vmem:[%s1819_s4 + $0xe0] sm:$0xff] %vm851_vm2, %v815_v33  ;;  %912 = vst.msk [vmem:[%s1819_s4 + $0x1e0] sm:$0xff] %vm851_vm2, %v847_v34  ;;  %v816_v39 = vmax.f32 %v752_v35, 0.0  ;;  %v848_v40 = vmax.f32 %v784_v37, 0.0 }
 0x122   :  { %883 = vst.msk [vmem:[%s1819_s4 + $0xf8] sm:$0xff] %vm851_vm2, %v818_v38  ;;  %915 = vst.msk [vmem:[%s1819_s4 + $0x1f8] sm:$0xff] %vm851_vm2, %v850_v36 }
 0x123   :  { %881 = vst.msk [vmem:[%s1819_s4 + $0xe8] sm:$0xff] %vm851_vm2, %v816_v39  ;;  %913 = vst.msk [vmem:[%s1819_s4 + $0x1e8] sm:$0xff] %vm851_vm2, %v848_v40 }

// kernel: resnet_forward.17
= control target key start
LH: loop header
LB: loop body
LE: loop exit
PB: predicated region body
PF: predicated region fallthrough
CT: control target
= control target key end

     0   :  { %vm104_vm0 = vcmask 1041408   ;;  %vm79_vm1 = vcmask 31744   ;;  %vm205_vm2 = vcmask 64512   ;;  %s404_s1 = inlined_call_operand.vmem [shape: bf16[4,8], index: 1, kind: input, shape index: {}]   ;;  %s405_s0 = inlined_call_operand.vmem [shape: bf16[128,4], index: 0, kind: input, shape index: {}]   ;;  %s406_s2 = inlined_call_operand.vmem [shape: f32[1,8], index: 2, kind: input, shape index: {}]   ;;  %s407_s3 = inlined_call_operand.vmem [shape: f32[128,8], index: 3, kind: output, shape index: {}]  }
   0x1   :  { %v31_v0 = vld [vmem:[%s404_s1] sm:$0x3]  ;;  %v276_v4 = vld [vmem:[%s405_s0 + $0x8] sm:$0xff]   ;;  %v278_v6 = vld [vmem:[%s405_s0 + $0x10] sm:$0xff]  }
   0x2   :  { %272 = vmatprep.subr.msk.bf16.mxu0 %vm104_vm0, %v31_v0  ;;  %273 = vmatprep.subr.msk.bf16.mxu1 %vm104_vm0, %v31_v0  ;;  %v106_v1 = vsel %vm104_vm0, %v31_v0, 0  ;;  %v274_v2 = vld [vmem:[%s405_s0] sm:$0xff]   ;;  %v277_v5 = vld [vmem:[%s405_s0 + $0x28] sm:$0xff]   ;;  %v279_v7 = vld [vmem:[%s405_s0 + $0x30] sm:$0xff]  }
   0x3   :  { %253 = vmatpush3.bf16.msra.mxu0 %v106_v1  ;;  %271 = vmatpush3.bf16.msra.mxu1 %v106_v1  ;;  %v275_v3 = vld [vmem:[%s405_s0 + $0x20] sm:$0xff]   ;;  %v280_v8 = vld [vmem:[%s405_s0 + $0x18] sm:$0xff]  }
   0x4   :  { %254 = vmatprep.mubr.msk.bf16.mxu0 %vm79_vm1, %v274_v2  ;;  %262 = vmatprep.mubr.msk.bf16.mxu1 %vm79_vm1, %v275_v3  ;;  %v281_v9 = vld [vmem:[%s405_s0 + $0x38] sm:$0xff]   ;;  %v226_v10 = vld [vmem:[%s406_s2] ss:$0 sm:$0xff] }
   0x6   :  { %255 = vmatmul.mubr.msk.bf16.vlgmr.msra.gmra.mrb[0].mxu0 %vm79_vm1, %v276_v4  ;;  %263 = vmatmul.mubr.msk.bf16.vlgmr.msra.gmra.mrb[0].mxu1 %vm79_vm1, %v277_v5 }
   0x7   :  { %258 = vmatprep.mubr.msk.bf16.mxu0 %vm79_vm1, %v278_v6  ;;  %266 = vmatprep.mubr.msk.bf16.mxu1 %vm79_vm1, %v279_v7 }
   0xe   :  { %259 = vmatmul.mubr.msk.bf16.gmra.mrb[4].mxu0 %vm79_vm1, %v280_v8  ;;  %267 = vmatmul.mubr.msk.bf16.gmra.mrb[4].mxu1 %vm79_vm1, %v281_v9 }
  0xd9   :  { %v256_v11 = vpop.f32.mrb[0].mxu0  ;;  %v264_v13 = vpop.f32.mrb[0].mxu1 }
  0xda   :  { %v151_v12 = vadd.f32 %v256_v11, %v226_v10  ;;  %v142_v14 = vpop.f32.mrb[1].mxu0  ;;  %v183_v15 = vadd.f32 %v264_v13, %v226_v10  ;;  %v174_v17 = vpop.f32.mrb[1].mxu1 }
  0xdb   :  { %v143_v16 = vadd.f32 %v226_v10, %v142_v14  ;;  %v257_v18 = vpop.f32.mrb[2].mxu0  ;;  %v175_v19 = vadd.f32 %v226_v10, %v174_v17  ;;  %v265_v21 = vpop.f32.mrb[2].mxu1 }
  0xdc   :  { %208 = vst.msk [vmem:[%s407_s3 + $0x10] sm:$0xff] %vm205_vm2, %v151_v12  ;;  %v154_v20 = vadd.f32 %v257_v18, %v226_v10  ;;  %v145_v22 = vpop.f32.mrb[3].mxu0  ;;  %216 = vst.msk [vmem:[%s407_s3 + $0x50] sm:$0xff] %vm205_vm2, %v183_v15  ;;  %v186_v23 = vadd.f32 %v265_v21, %v226_v10  ;;  %v177_v25 = vpop.f32.mrb[3].mxu1 }
  0xdd   :  { %206 = vst.msk [vmem:[%s407_s3] sm:$0xff] %vm205_vm2, %v143_v16  ;;  %v146_v24 = vadd.f32 %v226_v10, %v145_v22  ;;  %214 = vst.msk [vmem:[%s407_s3 + $0x40] sm:$0xff] %vm205_vm2, %v175_v19  ;;  %v178_v26 = vadd.f32 %v226_v10, %v177_v25 }
  0xde   :  { %209 = vst.msk [vmem:[%s407_s3 + $0x18] sm:$0xff] %vm205_vm2, %v154_v20  ;;  %217 = vst.msk [vmem:[%s407_s3 + $0x58] sm:$0xff] %vm205_vm2, %v186_v23 }
  0xdf   :  { %207 = vst.msk [vmem:[%s407_s3 + $0x8] sm:$0xff] %vm205_vm2, %v146_v24  ;;  %215 = vst.msk [vmem:[%s407_s3 + $0x48] sm:$0xff] %vm205_vm2, %v178_v26 }
  0xe1   :  { %v260_v27 = vpop.f32.mrb[4].mxu0  ;;  %v268_v29 = vpop.f32.mrb[4].mxu1 }
  0xe2   :  { %v167_v28 = vadd.f32 %v260_v27, %v226_v10  ;;  %v158_v30 = vpop.f32.mrb[5].mxu0  ;;  %v199_v31 = vadd.f32 %v268_v29, %v226_v10  ;;  %v190_v33 = vpop.f32.mrb[5].mxu1 }
  0xe3   :  { %v159_v32 = vadd.f32 %v226_v10, %v158_v30  ;;  %v261_v34 = vpop.f32.mrb[6].mxu0  ;;  %v191_v35 = vadd.f32 %v226_v10, %v190_v33  ;;  %v269_v37 = vpop.f32.mrb[6].mxu1 }
  0xe4   :  { %212 = vst.msk [vmem:[%s407_s3 + $0x30] sm:$0xff] %vm205_vm2, %v167_v28  ;;  %v170_v36 = vadd.f32 %v261_v34, %v226_v10  ;;  %v161_v38 = vpop.f32.mrb[7].mxu0  ;;  %220 = vst.msk [vmem:[%s407_s3 + $0x70] sm:$0xff] %vm205_vm2, %v199_v31  ;;  %v202_v39 = vadd.f32 %v269_v37, %v226_v10  ;;  %v193_v41 = vpop.f32.mrb[7].mxu1 }
  0xe5   :  { %210 = vst.msk [vmem:[%s407_s3 + $0x20] sm:$0xff] %vm205_vm2, %v159_v32  ;;  %v162_v40 = vadd.f32 %v226_v10, %v161_v38  ;;  %218 = vst.msk [vmem:[%s407_s3 + $0x60] sm:$0xff] %vm205_vm2, %v191_v35  ;;  %v194_v42 = vadd.f32 %v226_v10, %v193_v41 }
  0xe6   :  { %213 = vst.msk [vmem:[%s407_s3 + $0x38] sm:$0xff] %vm205_vm2, %v170_v36  ;;  %221 = vst.msk [vmem:[%s407_s3 + $0x78] sm:$0xff] %vm205_vm2, %v202_v39 }
  0xe7   :  { %211 = vst.msk [vmem:[%s407_s3 + $0x28] sm:$0xff] %vm205_vm2, %v162_v40  ;;  %219 = vst.msk [vmem:[%s407_s3 + $0x68] sm:$0xff] %vm205_vm2, %v194_v42 }

// kernel: resnet_forward.16
= control target key start
LH: loop header
LB: loop body
LE: loop exit
PB: predicated region body
PF: predicated region fallthrough
CT: control target
= control target key end

     0   :  { %vm98_vm0 = vcmask 293888   ;;  %vm123_vm1 = vcmask 1041408   ;;  %vm240_vm2 = vcmask 64512   ;;  %s461_s1 = inlined_call_operand.vmem [shape: bf16[36,8], index: 1, kind: input, shape index: {}]   ;;  %s462_s0 = inlined_call_operand.vmem [shape: bf16[128,36], index: 0, kind: input, shape index: {}]   ;;  %s463_s2 = inlined_call_operand.vmem [shape: f32[1,8], index: 2, kind: input, shape index: {}]   ;;  %s464_s3 = inlined_call_operand.vmem [shape: f32[128,8], index: 3, kind: output, shape index: {}]  }
   0x1   :  { %v322_v0 = vld [vmem:[%s461_s1] sm:$0xff]   ;;  %v323_v1 = vld [vmem:[%s461_s1 + $0x8] sm:$0xff]   ;;  %v324_v2 = vld [vmem:[%s461_s1 + $0x10] ss:$0 sps:$4 sm:$0x33]  }
   0x2   :  { %292 = vmatprep.subr.bf16.mxu0 %v322_v0  ;;  %314 = vmatprep.subr.bf16.mxu1 %v322_v0  ;;  %v325_v3 = vld [vmem:[%s462_s0] sm:$0xff]   ;;  %v125_v5 = vsel %vm123_vm1, %v324_v2, 0  ;;  %v327_v6 = vld [vmem:[%s462_s0 + $0x8] sm:$0xff]   ;;  %v329_v8 = vld [vmem:[%s462_s0 + $0x10] sm:$0xff]  }
   0x3   :  { %293 = vmatpush3.bf16.msra.mxu0 %v322_v0  ;;  %317 = vmatpush3.bf16.msra.mxu1 %v322_v0  ;;  %v326_v4 = vld [vmem:[%s462_s0 + $0x20] sm:$0xff]   ;;  %v328_v7 = vld [vmem:[%s462_s0 + $0x28] sm:$0xff]   ;;  %v330_v9 = vld [vmem:[%s462_s0 + $0x30] sm:$0xff]  }
   0x4   :  { %294 = vmatprep.subr.bf16.mxu0 %v323_v1  ;;  %315 = vmatprep.subr.bf16.mxu1 %v323_v1  ;;  %v331_v10 = vld [vmem:[%s462_s0 + $0x18] sm:$0xff]   ;;  %v261_v12 = vld [vmem:[%s463_s2] ss:$0 sm:$0xff] }
   0x5   :  { %298 = vmatprep.mubr.msk.bf16.mxu0 %vm98_vm0, %v325_v3  ;;  %306 = vmatprep.mubr.msk.bf16.mxu1 %vm98_vm0, %v326_v4  ;;  %v332_v11 = vld [vmem:[%s462_s0 + $0x38] sm:$0xff]  }
   0x7   :  { %295 = vmatpush3.bf16.msra.mxu0 %v323_v1  ;;  %318 = vmatpush3.bf16.msra.mxu1 %v323_v1 }
   0x8   :  { %320 = vmatprep.subr.msk.bf16.mxu0 %vm123_vm1, %v324_v2  ;;  %321 = vmatprep.subr.msk.bf16.mxu1 %vm123_vm1, %v324_v2 }
   0xb   :  { %297 = vmatpush3.bf16.msra.mxu0 %v125_v5  ;;  %319 = vmatpush3.bf16.msra.mxu1 %v125_v5 }
   0xe   :  { %299 = vmatmul.mubr.msk.bf16.vlgmr.msra.gmra.mrb[0].mxu0 %vm98_vm0, %v327_v6  ;;  %307 = vmatmul.mubr.msk.bf16.vlgmr.msra.gmra.mrb[0].mxu1 %vm98_vm0, %v328_v7 }
   0xf   :  { %302 = vmatprep.mubr.msk.bf16.mxu0 %vm98_vm0, %v329_v8  ;;  %310 = vmatprep.mubr.msk.bf16.mxu1 %vm98_vm0, %v330_v9 }
  0x16   :  { %303 = vmatmul.mubr.msk.bf16.gmra.mrb[4].mxu0 %vm98_vm0, %v331_v10  ;;  %311 = vmatmul.mubr.msk.bf16.gmra.mrb[4].mxu1 %vm98_vm0, %v332_v11 }
  0xe1   :  { %v300_v13 = vpop.f32.mrb[0].mxu0  ;;  %v308_v14 = vpop.f32.mrb[0].mxu1 }
  0xe2   :  { %v170_v15 = vadd.f32 %v300_v13, %v261_v12  ;;  %v202_v16 = vadd.f32 %v308_v14, %v261_v12  ;;  %v161_v17 = vpop.f32.mrb[1].mxu0  ;;  %v193_v18 = vpop.f32.mrb[1].mxu1 }
  0xe3   :  { %v162_v19 = vadd.f32 %v261_v12, %v161_v17  ;;  %v194_v20 = vadd.f32 %v261_v12, %v193_v18  ;;  %v301_v21 = vpop.f32.mrb[2].mxu0  ;;  %v309_v22 = vpop.f32.mrb[2].mxu1 }
  0xe4   :  { %v226_v23 = vmax.f32 %v170_v15, 0.0  ;;  %v234_v24 = vmax.f32 %v202_v16, 0.0  ;;  %v173_v25 = vadd.f32 %v301_v21, %v261_v12  ;;  %v205_v26 = vadd.f32 %v309_v22, %v261_v12  ;;  %v164_v27 = vpop.f32.mrb[3].mxu0  ;;  %v196_v28 = vpop.f32.mrb[3].mxu1 }
  0xe5   :  { %v224_v29 = vmax.f32 %v162_v19, 0.0  ;;  %v232_v30 = vmax.f32 %v194_v20, 0.0  ;;  %v165_v31 = vadd.f32 %v261_v12, %v164_v27  ;;  %v197_v32 = vadd.f32 %v261_v12, %v196_v28 }
  0xe6   :  { %243 = vst.msk [vmem:[%s464_s3 + $0x10] sm:$0xff] %vm240_vm2, %v226_v23  ;;  %251 = vst.msk [vmem:[%s464_s3 + $0x50] sm:$0xff] %vm240_vm2, %v234_v24  ;;  %v227_v33 = vmax.f32 %v173_v25, 0.0  ;;  %v235_v34 = vmax.f32 %v205_v26, 0.0 }
  0xe7   :  { %241 = vst.msk [vmem:[%s464_s3] sm:$0xff] %vm240_vm2, %v224_v29  ;;  %249 = vst.msk [vmem:[%s464_s3 + $0x40] sm:$0xff] %vm240_vm2, %v232_v30  ;;  %v225_v35 = vmax.f32 %v165_v31, 0.0  ;;  %v233_v36 = vmax.f32 %v197_v32, 0.0 }
  0xe8   :  { %244 = vst.msk [vmem:[%s464_s3 + $0x18] sm:$0xff] %vm240_vm2, %v227_v33  ;;  %252 = vst.msk [vmem:[%s464_s3 + $0x58] sm:$0xff] %vm240_vm2, %v235_v34 }
  0xe9   :  { %242 = vst.msk [vmem:[%s464_s3 + $0x8] sm:$0xff] %vm240_vm2, %v225_v35  ;;  %250 = vst.msk [vmem:[%s464_s3 + $0x48] sm:$0xff] %vm240_vm2, %v233_v36  ;;  %v304_v37 = vpop.f32.mrb[4].mxu0  ;;  %v312_v38 = vpop.f32.mrb[4].mxu1 }
  0xea   :  { %v186_v39 = vadd.f32 %v304_v37, %v261_v12  ;;  %v218_v40 = vadd.f32 %v312_v38, %v261_v12  ;;  %v177_v41 = vpop.f32.mrb[5].mxu0  ;;  %v209_v42 = vpop.f32.mrb[5].mxu1 }
  0xeb   :  { %v178_v43 = vadd.f32 %v261_v12, %v177_v41  ;;  %v210_v44 = vadd.f32 %v261_v12, %v209_v42  ;;  %v305_v45 = vpop.f32.mrb[6].mxu0  ;;  %v313_v46 = vpop.f32.mrb[6].mxu1 }
  0xec   :  { %v230_v47 = vmax.f32 %v186_v39, 0.0  ;;  %v238_v48 = vmax.f32 %v218_v40, 0.0  ;;  %v189_v49 = vadd.f32 %v305_v45, %v261_v12  ;;  %v221_v50 = vadd.f32 %v313_v46, %v261_v12  ;;  %v180_v51 = vpop.f32.mrb[7].mxu0  ;;  %v212_v52 = vpop.f32.mrb[7].mxu1 }
  0xed   :  { %v228_v53 = vmax.f32 %v178_v43, 0.0  ;;  %v236_v54 = vmax.f32 %v210_v44, 0.0  ;;  %v181_v55 = vadd.f32 %v261_v12, %v180_v51  ;;  %v213_v56 = vadd.f32 %v261_v12, %v212_v52 }
  0xee   :  { %247 = vst.msk [vmem:[%s464_s3 + $0x30] sm:$0xff] %vm240_vm2, %v230_v47  ;;  %255 = vst.msk [vmem:[%s464_s3 + $0x70] sm:$0xff] %vm240_vm2, %v238_v48  ;;  %v231_v57 = vmax.f32 %v189_v49, 0.0  ;;  %v239_v58 = vmax.f32 %v221_v50, 0.0 }
  0xef   :  { %245 = vst.msk [vmem:[%s464_s3 + $0x20] sm:$0xff] %vm240_vm2, %v228_v53  ;;  %253 = vst.msk [vmem:[%s464_s3 + $0x60] sm:$0xff] %vm240_vm2, %v236_v54  ;;  %v229_v59 = vmax.f32 %v181_v55, 0.0  ;;  %v237_v60 = vmax.f32 %v213_v56, 0.0 }
  0xf0   :  { %248 = vst.msk [vmem:[%s464_s3 + $0x38] sm:$0xff] %vm240_vm2, %v231_v57  ;;  %256 = vst.msk [vmem:[%s464_s3 + $0x78] sm:$0xff] %vm240_vm2, %v239_v58 }
  0xf1   :  { %246 = vst.msk [vmem:[%s464_s3 + $0x28] sm:$0xff] %vm240_vm2, %v229_v59  ;;  %254 = vst.msk [vmem:[%s464_s3 + $0x68] sm:$0xff] %vm240_vm2, %v237_v60 }

// kernel: resnet_forward.18
= control target key start
LH: loop header
LB: loop body
LE: loop exit
PB: predicated region body
PF: predicated region fallthrough
CT: control target
= control target key end

     0   :  { %vm117_vm0 = vcmask 588800   ;;  %vm142_vm1 = vcmask 1043456   ;;  %vm291_vm2 = vcmask 64512   ;;  %s603_s1 = inlined_call_operand.vmem [shape: bf16[72,8], index: 1, kind: input, shape index: {}]   ;;  %s604_s0 = inlined_call_operand.vmem [shape: bf16[128,72], index: 0, kind: input, shape index: {}]   ;;  %s605_s2 = inlined_call_operand.vmem [shape: f32[1,8], index: 2, kind: input, shape index: {}]   ;;  %s606_s3 = inlined_call_operand.vmem [shape: f32[128,8], index: 3, kind: input, shape index: {}]   ;;  %s607_s4 = inlined_call_operand.vmem [shape: f32[128,8], index: 4, kind: output, shape index: {}]  }
   0x1   :  { %v385_v0 = vld [vmem:[%s603_s1] sm:$0xff]   ;;  %v386_v1 = vld [vmem:[%s603_s1 + $0x8] sm:$0xff]   ;;  %v387_v2 = vld [vmem:[%s603_s1 + $0x10] sm:$0xff]  }
   0x2   :  { %347 = vmatprep.subr.bf16.mxu0 %v385_v0  ;;  %373 = vmatprep.subr.bf16.mxu1 %v385_v0  ;;  %v390_v3 = vld [vmem:[%s604_s0] sm:$0xff]   ;;  %v388_v5 = vld [vmem:[%s603_s1 + $0x18] sm:$0xff]   ;;  %v392_v8 = vld [vmem:[%s604_s0 + $0x8] sm:$0xff]  }
   0x3   :  { %348 = vmatpush3.bf16.msra.mxu0 %v385_v0  ;;  %378 = vmatpush3.bf16.msra.mxu1 %v385_v0  ;;  %v391_v4 = vld [vmem:[%s604_s0 + $0x20] sm:$0xff]   ;;  %v393_v9 = vld [vmem:[%s604_s0 + $0x28] sm:$0xff]   ;;  %v394_v10 = vld [vmem:[%s604_s0 + $0x10] sm:$0xff]  }
   0x4   :  { %349 = vmatprep.subr.bf16.mxu0 %v386_v1  ;;  %374 = vmatprep.subr.bf16.mxu1 %v386_v1  ;;  %v389_v6 = vld [vmem:[%s603_s1 + $0x20] ss:$0 sps:$4 sm:$0xff]   ;;  %v395_v11 = vld [vmem:[%s604_s0 + $0x30] sm:$0xff]   ;;  %v396_v12 = vld [vmem:[%s604_s0 + $0x18] sm:$0xff]  }
   0x5   :  { %357 = vmatprep.mubr.msk.bf16.mxu0 %vm117_vm0, %v390_v3  ;;  %365 = vmatprep.mubr.msk.bf16.mxu1 %vm117_vm0, %v391_v4  ;;  %v144_v7 = vsel %vm142_vm1, %v389_v6, 0  ;;  %v397_v13 = vld [vmem:[%s604_s0 + $0x38] sm:$0xff]   ;;  %v473_v14 = vld [vmem:[%s605_s2] ss:$0 sm:$0xff]  ;;  %v245_v16 = vld [vmem:[%s606_s3 + $0x10] sm:$0xff] }
   0x6   :  { %v253_v18 = vld [vmem:[%s606_s3 + $0x50] sm:$0xff]  ;;  %v243_v22 = vld [vmem:[%s606_s3] sm:$0xff]  ;;  %v246_v28 = vld [vmem:[%s606_s3 + $0x18] sm:$0xff] }
   0x7   :  { %350 = vmatpush3.bf16.msra.mxu0 %v386_v1  ;;  %379 = vmatpush3.bf16.msra.mxu1 %v386_v1  ;;  %v251_v24 = vld [vmem:[%s606_s3 + $0x40] sm:$0xff]  ;;  %v254_v30 = vld [vmem:[%s606_s3 + $0x58] sm:$0xff]  ;;  %v244_v36 = vld [vmem:[%s606_s3 + $0x8] sm:$0xff] }
   0x8   :  { %351 = vmatprep.subr.bf16.mxu0 %v387_v2  ;;  %375 = vmatprep.subr.bf16.mxu1 %v387_v2  ;;  %v252_v38 = vld [vmem:[%s606_s3 + $0x48] sm:$0xff]  ;;  %v249_v56 = vld [vmem:[%s606_s3 + $0x30] sm:$0xff]  ;;  %v247_v62 = vld [vmem:[%s606_s3 + $0x20] sm:$0xff] }
   0x9   :  { %v257_v58 = vld [vmem:[%s606_s3 + $0x70] sm:$0xff]  ;;  %v255_v0 = vld [vmem:[%s606_s3 + $0x60] sm:$0xff]  ;;  %v250_v4 = vld [vmem:[%s606_s3 + $0x38] sm:$0xff] }
   0xb   :  { %352 = vmatpush3.bf16.msra.mxu0 %v387_v2  ;;  %380 = vmatpush3.bf16.msra.mxu1 %v387_v2 }
   0xc   :  { %353 = vmatprep.subr.bf16.mxu0 %v388_v5  ;;  %376 = vmatprep.subr.bf16.mxu1 %v388_v5 }
   0xf   :  { %354 = vmatpush3.bf16.msra.mxu0 %v388_v5  ;;  %381 = vmatpush3.bf16.msra.mxu1 %v388_v5 }
  0x10   :  { %383 = vmatprep.subr.msk.bf16.mxu0 %vm142_vm1, %v389_v6  ;;  %384 = vmatprep.subr.msk.bf16.mxu1 %vm142_vm1, %v389_v6  ;;  %v258_v6 = vld [vmem:[%s606_s3 + $0x78] sm:$0xff] }
  0x13   :  { %356 = vmatpush3.bf16.msra.mxu0 %v144_v7  ;;  %382 = vmatpush3.bf16.msra.mxu1 %v144_v7 }
  0x16   :  { %358 = vmatmul.mubr.msk.bf16.vlgmr.msra.gmra.mrb[0].mxu0 %vm117_vm0, %v392_v8  ;;  %366 = vmatmul.mubr.msk.bf16.vlgmr.msra.gmra.mrb[0].mxu1 %vm117_vm0, %v393_v9 }
  0x17   :  { %361 = vmatprep.mubr.msk.bf16.mxu0 %vm117_vm0, %v394_v10  ;;  %369 = vmatprep.mubr.msk.bf16.mxu1 %vm117_vm0, %v395_v11 }
  0x1e   :  { %362 = vmatmul.mubr.msk.bf16.gmra.mrb[4].mxu0 %vm117_vm0, %v396_v12  ;;  %370 = vmatmul.mubr.msk.bf16.gmra.mrb[4].mxu1 %vm117_vm0, %v397_v13  ;;  %v248_v12 = vld [vmem:[%s606_s3 + $0x28] sm:$0xff] }
  0xe9   :  { %v359_v15 = vpop.f32.mrb[0].mxu0  ;;  %v367_v17 = vpop.f32.mrb[0].mxu1 }
  0xea   :  { %v189_v19 = vadd.f32 %v359_v15, %v473_v14  ;;  %v221_v20 = vadd.f32 %v367_v17, %v473_v14  ;;  %v180_v21 = vpop.f32.mrb[1].mxu0  ;;  %v212_v23 = vpop.f32.mrb[1].mxu1  ;;  %v256_v15 = vld [vmem:[%s606_s3 + $0x68] sm:$0xff] }
  0xeb   :  { %v181_v25 = vadd.f32 %v473_v14, %v180_v21  ;;  %v213_v26 = vadd.f32 %v473_v14, %v212_v23  ;;  %v360_v27 = vpop.f32.mrb[2].mxu0  ;;  %v368_v29 = vpop.f32.mrb[2].mxu1 }
  0xec   :  { %v261_v31 = vadd.f32 %v245_v16, %v189_v19  ;;  %v269_v32 = vadd.f32 %v253_v18, %v221_v20  ;;  %v192_v33 = vadd.f32 %v360_v27, %v473_v14  ;;  %v224_v34 = vadd.f32 %v368_v29, %v473_v14  ;;  %v183_v35 = vpop.f32.mrb[3].mxu0  ;;  %v215_v37 = vpop.f32.mrb[3].mxu1 }
  0xed   :  { %v259_v39 = vadd.f32 %v243_v22, %v181_v25  ;;  %v267_v40 = vadd.f32 %v251_v24, %v213_v26  ;;  %v184_v41 = vadd.f32 %v473_v14, %v183_v35  ;;  %v216_v42 = vadd.f32 %v473_v14, %v215_v37 }
  0xee   :  { %v277_v43 = vmax.f32 %v261_v31, 0.0  ;;  %v285_v44 = vmax.f32 %v269_v32, 0.0  ;;  %v262_v45 = vadd.f32 %v246_v28, %v192_v33  ;;  %v270_v46 = vadd.f32 %v254_v30, %v224_v34 }
  0xef   :  { %v275_v47 = vmax.f32 %v259_v39, 0.0  ;;  %v283_v48 = vmax.f32 %v267_v40, 0.0  ;;  %v260_v49 = vadd.f32 %v244_v36, %v184_v41  ;;  %v268_v50 = vadd.f32 %v252_v38, %v216_v42 }
  0xf0   :  { %294 = vst.msk [vmem:[%s607_s4 + $0x10] sm:$0xff] %vm291_vm2, %v277_v43  ;;  %302 = vst.msk [vmem:[%s607_s4 + $0x50] sm:$0xff] %vm291_vm2, %v285_v44  ;;  %v278_v51 = vmax.f32 %v262_v45, 0.0  ;;  %v286_v52 = vmax.f32 %v270_v46, 0.0 }
  0xf1   :  { %292 = vst.msk [vmem:[%s607_s4] sm:$0xff] %vm291_vm2, %v275_v47  ;;  %300 = vst.msk [vmem:[%s607_s4 + $0x40] sm:$0xff] %vm291_vm2, %v283_v48  ;;  %v276_v53 = vmax.f32 %v260_v49, 0.0  ;;  %v284_v54 = vmax.f32 %v268_v50, 0.0  ;;  %v363_v55 = vpop.f32.mrb[4].mxu0  ;;  %v371_v57 = vpop.f32.mrb[4].mxu1 }
  0xf2   :  { %295 = vst.msk [vmem:[%s607_s4 + $0x18] sm:$0xff] %vm291_vm2, %v278_v51  ;;  %303 = vst.msk [vmem:[%s607_s4 + $0x58] sm:$0xff] %vm291_vm2, %v286_v52  ;;  %v205_v59 = vadd.f32 %v363_v55, %v473_v14  ;;  %v237_v60 = vadd.f32 %v371_v57, %v473_v14  ;;  %v196_v61 = vpop.f32.mrb[5].mxu0  ;;  %v228_v63 = vpop.f32.mrb[5].mxu1 }
  0xf3   :  { %293 = vst.msk [vmem:[%s607_s4 + $0x8] sm:$0xff] %vm291_vm2, %v276_v53  ;;  %301 = vst.msk [vmem:[%s607_s4 + $0x48] sm:$0xff] %vm291_vm2, %v284_v54  ;;  %v197_v1 = vadd.f32 %v473_v14, %v196_v61  ;;  %v229_v2 = vadd.f32 %v473_v14, %v228_v63  ;;  %v364_v3 = vpop.f32.mrb[6].mxu0  ;;  %v372_v5 = vpop.f32.mrb[6].mxu1 }
  0xf4   :  { %v265_v7 = vadd.f32 %v249_v56, %v205_v59  ;;  %v273_v8 = vadd.f32 %v257_v58, %v237_v60  ;;  %v208_v9 = vadd.f32 %v364_v3, %v473_v14  ;;  %v240_v10 = vadd.f32 %v372_v5, %v473_v14  ;;  %v199_v11 = vpop.f32.mrb[7].mxu0  ;;  %v231_v13 = vpop.f32.mrb[7].mxu1 }
  0xf5   :  { %v263_v16 = vadd.f32 %v247_v62, %v197_v1  ;;  %v271_v17 = vadd.f32 %v255_v0, %v229_v2  ;;  %v200_v18 = vadd.f32 %v473_v14, %v199_v11  ;;  %v232_v19 = vadd.f32 %v473_v14, %v231_v13 }
  0xf6   :  { %v281_v20 = vmax.f32 %v265_v7, 0.0  ;;  %v289_v21 = vmax.f32 %v273_v8, 0.0  ;;  %v266_v22 = vadd.f32 %v250_v4, %v208_v9  ;;  %v274_v23 = vadd.f32 %v258_v6, %v240_v10 }
  0xf7   :  { %v279_v24 = vmax.f32 %v263_v16, 0.0  ;;  %v287_v25 = vmax.f32 %v271_v17, 0.0  ;;  %v264_v26 = vadd.f32 %v248_v12, %v200_v18  ;;  %v272_v27 = vadd.f32 %v256_v15, %v232_v19 }
  0xf8   :  { %298 = vst.msk [vmem:[%s607_s4 + $0x30] sm:$0xff] %vm291_vm2, %v281_v20  ;;  %306 = vst.msk [vmem:[%s607_s4 + $0x70] sm:$0xff] %vm291_vm2, %v289_v21  ;;  %v282_v28 = vmax.f32 %v266_v22, 0.0  ;;  %v290_v14 = vmax.f32 %v274_v23, 0.0 }
  0xf9   :  { %296 = vst.msk [vmem:[%s607_s4 + $0x20] sm:$0xff] %vm291_vm2, %v279_v24  ;;  %304 = vst.msk [vmem:[%s607_s4 + $0x60] sm:$0xff] %vm291_vm2, %v287_v25  ;;  %v280_v29 = vmax.f32 %v264_v26, 0.0  ;;  %v288_v30 = vmax.f32 %v272_v27, 0.0 }
  0xfa   :  { %299 = vst.msk [vmem:[%s607_s4 + $0x38] sm:$0xff] %vm291_vm2, %v282_v28  ;;  %307 = vst.msk [vmem:[%s607_s4 + $0x78] sm:$0xff] %vm291_vm2, %v290_v14 }
  0xfb   :  { %297 = vst.msk [vmem:[%s607_s4 + $0x28] sm:$0xff] %vm291_vm2, %v280_v29  ;;  %305 = vst.msk [vmem:[%s607_s4 + $0x68] sm:$0xff] %vm291_vm2, %v288_v30 }

// kernel: resnet_forward.20
= control target key start
LH: loop header
LB: loop body
LE: loop exit
PB: predicated region body
PF: predicated region fallthrough
CT: control target
= control target key end

     0   :  { %vm44_vm0 = vcmask 1043456   ;;  %vm37_vm1 = vcmask 64512   ;;  %vm97_vm2 = vcmask 130048   ;;  %s167_s1 = inlined_call_operand.vmem [shape: bf16[8,16], index: 1, kind: input, shape index: {}]   ;;  %s168_s0 = inlined_call_operand.vmem [shape: bf16[32,8], index: 0, kind: input, shape index: {}]   ;;  %s169_s2 = inlined_call_operand.vmem [shape: f32[1,16], index: 2, kind: input, shape index: {}]   ;;  %s170_s3 = inlined_call_operand.vmem [shape: f32[32,16], index: 3, kind: output, shape index: {}]  }
   0x1   :  { %v19_v0 = vld [vmem:[%s167_s1] sm:$0xf]  ;;  %v122_v3 = vld [vmem:[%s168_s0 + $0x8] sm:$0xff]  }
   0x2   :  { %120 = vmatprep.subr.msk.bf16.mxu0 %vm44_vm0, %v19_v0  ;;  %v46_v1 = vsel %vm44_vm0, %v19_v0, 0  ;;  %v121_v2 = vld [vmem:[%s168_s0] sm:$0xff]  }
   0x3   :  { %115 = vmatpush3.bf16.msra.mxu0 %v46_v1  ;;  %116 = vmatprep.mubr.msk.bf16.mxu0 %vm37_vm1, %v121_v2  ;;  %v106_v4 = vld [vmem:[%s169_s2] ss:$0 sm:$0xff] }
   0x6   :  { %117 = vmatmul.mubr.msk.bf16.vlgmr.msra.gmra.mrb[0].mxu0 %vm37_vm1, %v122_v3 }
  0xd9   :  { %v118_v5 = vpop.f32.mrb[0].mxu0 }
  0xda   :  { %v91_v6 = vadd.f32 %v118_v5, %v106_v4  ;;  %v82_v7 = vpop.f32.mrb[1].mxu0 }
  0xdb   :  { %v83_v8 = vadd.f32 %v106_v4, %v82_v7  ;;  %v119_v9 = vpop.f32.mrb[2].mxu0 }
  0xdc   :  { %100 = vst.msk [vmem:[%s170_s3 + $0x10] sm:$0xff] %vm97_vm2, %v91_v6  ;;  %v94_v10 = vadd.f32 %v119_v9, %v106_v4  ;;  %v85_v11 = vpop.f32.mrb[3].mxu0 }
  0xdd   :  { %98 = vst.msk [vmem:[%s170_s3] sm:$0xff] %vm97_vm2, %v83_v8  ;;  %v86_v12 = vadd.f32 %v106_v4, %v85_v11 }
  0xde   :  { %101 = vst.msk [vmem:[%s170_s3 + $0x18] sm:$0xff] %vm97_vm2, %v94_v10 }
  0xdf   :  { %99 = vst.msk [vmem:[%s170_s3 + $0x8] sm:$0xff] %vm97_vm2, %v86_v12 }

// kernel: resnet_forward.19
= control target key start
LH: loop header
LB: loop body
LE: loop exit
PB: predicated region body
PF: predicated region fallthrough
CT: control target
= control target key end

     0   :  { %vm72_vm0 = vcmask 588800   ;;  %vm79_vm1 = vcmask 1043456   ;;  %vm136_vm2 = vcmask 130048   ;;  %s240_s1 = inlined_call_operand.vmem [shape: bf16[72,16], index: 1, kind: input, shape index: {}]   ;;  %s241_s0 = inlined_call_operand.vmem [shape: bf16[32,72], index: 0, kind: input, shape index: {}]   ;;  %s242_s2 = inlined_call_operand.vmem [shape: f32[1,16], index: 2, kind: input, shape index: {}]   ;;  %s243_s3 = inlined_call_operand.vmem [shape: f32[32,16], index: 3, kind: output, shape index: {}]  }
   0x1   :  { %v177_v0 = vld [vmem:[%s240_s1] sm:$0xff]   ;;  %v178_v1 = vld [vmem:[%s240_s1 + $0x8] sm:$0xff]   ;;  %v179_v2 = vld [vmem:[%s240_s1 + $0x10] sm:$0xff]  }
   0x2   :  { %162 = vmatprep.subr.bf16.mxu0 %v177_v0  ;;  %v182_v3 = vld [vmem:[%s241_s0] sm:$0xff]   ;;  %v180_v4 = vld [vmem:[%s240_s1 + $0x18] sm:$0xff]   ;;  %v183_v7 = vld [vmem:[%s241_s0 + $0x8] sm:$0xff]  }
   0x3   :  { %163 = vmatpush3.bf16.msra.mxu0 %v177_v0  ;;  %172 = vmatprep.mubr.msk.bf16.mxu0 %vm72_vm0, %v182_v3  ;;  %v181_v5 = vld [vmem:[%s240_s1 + $0x20] ss:$0 sps:$4 sm:$0xff]  }
   0x4   :  { %164 = vmatprep.subr.bf16.mxu0 %v178_v1  ;;  %v81_v6 = vsel %vm79_vm1, %v181_v5, 0  ;;  %v145_v8 = vld [vmem:[%s242_s2] ss:$0 sm:$0xff] }
   0x7   :  { %165 = vmatpush3.bf16.msra.mxu0 %v178_v1 }
   0x8   :  { %166 = vmatprep.subr.bf16.mxu0 %v179_v2 }
   0xb   :  { %167 = vmatpush3.bf16.msra.mxu0 %v179_v2 }
   0xc   :  { %168 = vmatprep.subr.bf16.mxu0 %v180_v4 }
   0xf   :  { %169 = vmatpush3.bf16.msra.mxu0 %v180_v4 }
  0x10   :  { %176 = vmatprep.subr.msk.bf16.mxu0 %vm79_vm1, %v181_v5 }
  0x13   :  { %171 = vmatpush3.bf16.msra.mxu0 %v81_v6 }
  0x16   :  { %173 = vmatmul.mubr.msk.bf16.vlgmr.msra.gmra.mrb[0].mxu0 %vm72_vm0, %v183_v7 }
  0xe9   :  { %v174_v9 = vpop.f32.mrb[0].mxu0 }
  0xea   :  { %v126_v10 = vadd.f32 %v174_v9, %v145_v8  ;;  %v117_v11 = vpop.f32.mrb[1].mxu0 }
  0xeb   :  { %v118_v12 = vadd.f32 %v145_v8, %v117_v11  ;;  %v175_v13 = vpop.f32.mrb[2].mxu0 }
  0xec   :  { %v134_v14 = vmax.f32 %v126_v10, 0.0  ;;  %v129_v15 = vadd.f32 %v175_v13, %v145_v8  ;;  %v120_v16 = vpop.f32.mrb[3].mxu0 }
  0xed   :  { %v132_v17 = vmax.f32 %v118_v12, 0.0  ;;  %v121_v18 = vadd.f32 %v145_v8, %v120_v16 }
  0xee   :  { %139 = vst.msk [vmem:[%s243_s3 + $0x10] sm:$0xff] %vm136_vm2, %v134_v14  ;;  %v135_v19 = vmax.f32 %v129_v15, 0.0 }
  0xef   :  { %137 = vst.msk [vmem:[%s243_s3] sm:$0xff] %vm136_vm2, %v132_v17  ;;  %v133_v20 = vmax.f32 %v121_v18, 0.0 }
  0xf0   :  { %140 = vst.msk [vmem:[%s243_s3 + $0x18] sm:$0xff] %vm136_vm2, %v135_v19 }
  0xf1   :  { %138 = vst.msk [vmem:[%s243_s3 + $0x8] sm:$0xff] %vm136_vm2, %v133_v20 }

// kernel: resnet_forward.23
= control target key start
LH: loop header
LB: loop body
LE: loop exit
PB: predicated region body
PF: predicated region fallthrough
CT: control target
= control target key end

     0   :  { %v95_v0 = vmov 0.0   ;;  %vm96_vm0 = vmmov 0   ;;  %vm31_vm1 = vcmask 130048   ;;  %vm75_vm2 = vcmask 261120   ;;  %s129_s1 = inlined_call_operand.vmem [shape: bf16[16,32], index: 1, kind: input, shape index: {}]   ;;  %s130_s0 = inlined_call_operand.vmem [shape: bf16[8,16], index: 0, kind: input, shape index: {}]   ;;  %s131_s2 = inlined_call_operand.vmem [shape: f32[1,32], index: 2, kind: input, shape index: {}]   ;;  %s132_s3 = inlined_call_operand.vmem [shape: f32[8,32], index: 3, kind: output, shape index: {}]  }
   0x1   :  { %86 = vmatprep.subr.bf16.mxu0 %v95_v0  ;;  %v94_v1 = vld [vmem:[%s129_s1] sm:$0xff]   ;;  %88 = vmatprep.mubr.msk.bf16.mxu0 %vm96_vm0, %v95_v0 }
   0x2   :  { %87 = vmatpush3.bf16.msra.mxu0 %v94_v1  ;;  %v15_v2 = vld [vmem:[%s130_s0] sm:$0xf] }
   0x3   :  { %v81_v3 = vld [vmem:[%s131_s2] ss:$0 sm:$0xff] }
   0x5   :  { %89 = vmatmul.mubr.msk.bf16.vlgmr.msra.gmra.mrb[0].mxu0 %vm31_vm1, %v15_v2 }
  0xd8   :  { %v69_v4 = vpop.f32.mrb[0].mxu0 }
  0xd9   :  { %v70_v5 = vadd.f32 %v81_v3, %v69_v4  ;;  %v90_v6 = vpop.f32.mrb[1].mxu0 }
  0xda   :  { %v72_v7 = vpop.f32.mrb[2].mxu0 }
  0xdb   :  { %76 = vst.msk [vmem:[%s132_s3] sm:$0xff] %vm75_vm2, %v70_v5  ;;  %v91_v8 = vpop.f32.mrb[3].mxu0 }

// kernel: resnet_forward.21
= control target key start
LH: loop header
LB: loop body
LE: loop exit
PB: predicated region body
PF: predicated region fallthrough
CT: control target
= control target key end

     0   :  { %v245_v0 = vmov 0   ;;  %vm119_vm0 = vcmask 130048   ;;  %s343_s1 = inlined_call_operand.vmem [shape: bf16[144,16], index: 1, kind: input, shape index: {}]   ;;  %s344_s0 = inlined_call_operand.vmem [shape: bf16[32,144], index: 0, kind: input, shape index: {}]   ;;  %s345_s2 = inlined_call_operand.vmem [shape: f32[1,16], index: 2, kind: input, shape index: {}]   ;;  %s346_s3 = inlined_call_operand.vmem [shape: f32[32,16], index: 3, kind: input, shape index: {}]   ;;  %s347_s4 = inlined_call_operand.vmem [shape: f32[32,16], index: 4, kind: output, shape index: {}]  }
   0x1   :  { %126 = vmatprep.subr.bf16.mxu0 %v245_v0  ;;  %211 = vmatprep.subr.bf16.mxu1 %v245_v0  ;;  %v230_v1 = vld [vmem:[%s343_s1] sm:$0xff]   ;;  %v231_v2 = vld [vmem:[%s343_s1 + $0x8] sm:$0xff]   ;;  %v232_v3 = vld [vmem:[%s343_s1 + $0x10] sm:$0xff]  }
   0x2   :  { %127 = vmatpush1.bf16.msra.mxu0 %v230_v1  ;;  %220 = vmatpush1.bf16.msra.mxu1 %v230_v1  ;;  %v233_v4 = vld [vmem:[%s343_s1 + $0x18] sm:$0xff]   ;;  %v241_v5 = vld [vmem:[%s344_s0 + $0x4] ss:$8 sps:$4 sm:$0xff]   ;;  %v236_v9 = vld [vmem:[%s343_s1 + $0x30] sm:$0xff]  }
   0x3   :  { %128 = vmatprep.subr.bf16.mxu0 %v245_v0  ;;  %212 = vmatprep.subr.bf16.mxu1 %v245_v0  ;;  %v244_v6 = vld [vmem:[%s344_s0 + $0x14] ss:$8 sps:$4 sm:$0xff]   ;;  %v234_v7 = vld [vmem:[%s343_s1 + $0x20] sm:$0xff]   ;;  %v235_v8 = vld [vmem:[%s343_s1 + $0x28] sm:$0xff]  }
   0x4   :  { %209 = vmatprep.mubr.msk.bf16.mxu0 %vm119_vm0, %v241_v5  ;;  %210 = vmatprep.mubr.msk.bf16.mxu1 %vm119_vm0, %v244_v6  ;;  %v237_v10 = vld [vmem:[%s343_s1 + $0x38] sm:$0xff]   ;;  %v238_v11 = vld [vmem:[%s343_s1 + $0x40] sm:$0xff]   ;;  %v177_v18 = vld [vmem:[%s346_s3 + $0x10] sm:$0xff] }
   0x5   :  { %v239_v12 = vld [vmem:[%s344_s0] ss:$8 sps:$4 sm:$0xff]   ;;  %v242_v13 = vld [vmem:[%s344_s0 + $0x10] ss:$8 sps:$4 sm:$0xff]  }
   0x6   :  { %129 = vmatpush1.bf16.msra.mxu0 %v231_v2  ;;  %221 = vmatpush1.bf16.msra.mxu1 %v231_v2  ;;  %v195_v14 = vld [vmem:[%s345_s2] ss:$0 sm:$0xff]  ;;  %v176_v24 = vld [vmem:[%s346_s3 + $0x8] sm:$0xff]  ;;  %v178_v26 = vld [vmem:[%s346_s3 + $0x18] sm:$0xff] }
   0x7   :  { %130 = vmatprep.subr.bf16.mxu0 %v245_v0  ;;  %213 = vmatprep.subr.bf16.mxu1 %v245_v0  ;;  %v175_v16 = vld [vmem:[%s346_s3] sm:$0xff] }
   0xa   :  { %131 = vmatpush1.bf16.msra.mxu0 %v232_v3  ;;  %222 = vmatpush1.bf16.msra.mxu1 %v232_v3 }
   0xb   :  { %132 = vmatprep.subr.bf16.mxu0 %v245_v0  ;;  %214 = vmatprep.subr.bf16.mxu1 %v245_v0 }
   0xe   :  { %133 = vmatpush1.bf16.msra.mxu0 %v233_v4  ;;  %223 = vmatpush1.bf16.msra.mxu1 %v233_v4 }
   0xf   :  { %134 = vmatprep.subr.bf16.mxu0 %v245_v0  ;;  %215 = vmatprep.subr.bf16.mxu1 %v245_v0 }
  0x12   :  { %135 = vmatpush1.bf16.msra.mxu0 %v234_v7  ;;  %224 = vmatpush1.bf16.msra.mxu1 %v234_v7 }
  0x13   :  { %136 = vmatprep.subr.bf16.mxu0 %v245_v0  ;;  %216 = vmatprep.subr.bf16.mxu1 %v245_v0 }
  0x16   :  { %137 = vmatpush1.bf16.msra.mxu0 %v235_v8  ;;  %225 = vmatpush1.bf16.msra.mxu1 %v235_v8 }
  0x17   :  { %138 = vmatprep.subr.bf16.mxu0 %v245_v0  ;;  %217 = vmatprep.subr.bf16.mxu1 %v245_v0 }
  0x1a   :  { %139 = vmatpush1.bf16.msra.mxu0 %v236_v9  ;;  %226 = vmatpush1.bf16.msra.mxu1 %v236_v9 }
  0x1b   :  { %140 = vmatprep.subr.bf16.mxu0 %v245_v0  ;;  %218 = vmatprep.subr.bf16.mxu1 %v245_v0 }
  0x1e   :  { %141 = vmatpush1.bf16.msra.mxu0 %v237_v10  ;;  %227 = vmatpush1.bf16.msra.mxu1 %v237_v10 }
  0x1f   :  { %142 = vmatprep.subr.bf16.mxu0 %v245_v0  ;;  %219 = vmatprep.subr.bf16.mxu1 %v245_v0 }
  0x22   :  { %143 = vmatpush1.bf16.msra.mxu0 %v238_v11  ;;  %228 = vmatpush1.bf16.msra.mxu1 %v238_v11 }
  0x25   :  { %159 = vmatmul.mubr.bf16.vlgmr.msra.gmra.mrb[0].mxu0 %v239_v12  ;;  %167 = vmatmul.mubr.bf16.vlgmr.msra.gmra.mrb[0].mxu1 %v242_v13 }
  0xf8   :  { %v160_v15 = vpop.f32.mrb[0].mxu0  ;;  %v168_v17 = vpop.f32.mrb[0].mxu1 }
  0xf9   :  { %v161_v19 = vadd.f32 %v195_v14, %v160_v15  ;;  %v169_v20 = vadd.f32 %v195_v14, %v168_v17  ;;  %v162_v21 = vpop.f32.mrb[1].mxu0  ;;  %v170_v22 = vpop.f32.mrb[1].mxu1 }
  0xfa   :  { %v163_v23 = vpop.f32.mrb[2].mxu0  ;;  %v171_v25 = vpop.f32.mrb[2].mxu1 }
  0xfb   :  { %v179_v27 = vadd.f32 %v175_v16, %v161_v19  ;;  %v181_v28 = vadd.f32 %v177_v18, %v169_v20  ;;  %v164_v29 = vadd.f32 %v195_v14, %v163_v23  ;;  %v172_v30 = vadd.f32 %v195_v14, %v171_v25  ;;  %v165_v31 = vpop.f32.mrb[3].mxu0  ;;  %v173_v32 = vpop.f32.mrb[3].mxu1 }
  0xfd   :  { %v183_v33 = vmax.f32 %v179_v27, 0.0  ;;  %v185_v34 = vmax.f32 %v181_v28, 0.0  ;;  %v180_v35 = vadd.f32 %v176_v24, %v164_v29  ;;  %v182_v36 = vadd.f32 %v178_v26, %v172_v30 }
  0xff   :  { %187 = vst.msk [vmem:[%s347_s4] sm:$0xff] %vm119_vm0, %v183_v33  ;;  %189 = vst.msk [vmem:[%s347_s4 + $0x10] sm:$0xff] %vm119_vm0, %v185_v34  ;;  %v184_v37 = vmax.f32 %v180_v35, 0.0  ;;  %v186_v38 = vmax.f32 %v182_v36, 0.0 }
 0x101   :  { %188 = vst.msk [vmem:[%s347_s4 + $0x8] sm:$0xff] %vm119_vm0, %v184_v37  ;;  %190 = vst.msk [vmem:[%s347_s4 + $0x18] sm:$0xff] %vm119_vm0, %v186_v38 }

// kernel: resnet_forward.22
= control target key start
LH: loop header
LB: loop body
LE: loop exit
PB: predicated region body
PF: predicated region fallthrough
CT: control target
= control target key end

     0   :  { %v177_v0 = vmov 0   ;;  %vm101_vm0 = vcmask 130048   ;;  %vm146_vm1 = vcmask 261120   ;;  %s234_s1 = inlined_call_operand.vmem [shape: bf16[144,32], index: 1, kind: input, shape index: {}]   ;;  %s235_s0 = inlined_call_operand.vmem [shape: bf16[8,144], index: 0, kind: input, shape index: {}]   ;;  %s236_s2 = inlined_call_operand.vmem [shape: f32[1,32], index: 2, kind: input, shape index: {}]   ;;  %s237_s3 = inlined_call_operand.vmem [shape: f32[8,32], index: 3, kind: output, shape index: {}]  }
   0x1   :  { %105 = vmatprep.subr.bf16.mxu0 %v177_v0  ;;  %v166_v1 = vld [vmem:[%s234_s1] sm:$0xff]   ;;  %v167_v2 = vld [vmem:[%s234_s1 + $0x8] sm:$0xff]   ;;  %v168_v3 = vld [vmem:[%s234_s1 + $0x10] sm:$0xff]  }
   0x2   :  { %106 = vmatpush1.bf16.msra.mxu0 %v166_v1  ;;  %v15_v4 = vld [vmem:[%s235_s0] sm:$0xff]  ;;  %v169_v5 = vld [vmem:[%s234_s1 + $0x18] sm:$0xff]   ;;  %v171_v8 = vld [vmem:[%s234_s1 + $0x28] sm:$0xff]  }
   0x3   :  { %107 = vmatprep.subr.bf16.mxu0 %v177_v0  ;;  %v154_v6 = vcombine.high %v15_v4, %v15_v4  ;;  %v170_v7 = vld [vmem:[%s234_s1 + $0x20] sm:$0xff]   ;;  %v172_v9 = vld [vmem:[%s234_s1 + $0x30] sm:$0xff]   ;;  %v173_v10 = vld [vmem:[%s234_s1 + $0x38] sm:$0xff]   ;;  %v153_v12 = vcombine.low %v15_v4, %v15_v4 }
   0x4   :  { %v174_v11 = vld [vmem:[%s234_s1 + $0x40] sm:$0xff]  }
   0x5   :  { %164 = vmatprep.mubr.msk.bf16.mxu0 %vm101_vm0, %v154_v6  ;;  %v152_v13 = vld [vmem:[%s236_s2] ss:$0 sm:$0xff] }
   0x6   :  { %108 = vmatpush1.bf16.msra.mxu0 %v167_v2 }
   0x7   :  { %109 = vmatprep.subr.bf16.mxu0 %v177_v0 }
   0xa   :  { %110 = vmatpush1.bf16.msra.mxu0 %v168_v3 }
   0xb   :  { %111 = vmatprep.subr.bf16.mxu0 %v177_v0 }
   0xe   :  { %112 = vmatpush1.bf16.msra.mxu0 %v169_v5 }
   0xf   :  { %113 = vmatprep.subr.bf16.mxu0 %v177_v0 }
  0x12   :  { %114 = vmatpush1.bf16.msra.mxu0 %v170_v7 }
  0x13   :  { %115 = vmatprep.subr.bf16.mxu0 %v177_v0 }
  0x16   :  { %116 = vmatpush1.bf16.msra.mxu0 %v171_v8 }
  0x17   :  { %117 = vmatprep.subr.bf16.mxu0 %v177_v0 }
  0x1a   :  { %118 = vmatpush1.bf16.msra.mxu0 %v172_v9 }
  0x1b   :  { %119 = vmatprep.subr.bf16.mxu0 %v177_v0 }
  0x1e   :  { %120 = vmatpush1.bf16.msra.mxu0 %v173_v10 }
  0x1f   :  { %121 = vmatprep.subr.bf16.mxu0 %v177_v0 }
  0x22   :  { %122 = vmatpush1.bf16.msra.mxu0 %v174_v11 }
  0x25   :  { %138 = vmatmul.mubr.bf16.vlgmr.msra.gmra.mrb[0].mxu0 %v153_v12 }
  0xf8   :  { %v139_v14 = vpop.f32.mrb[0].mxu0 }
  0xf9   :  { %v140_v15 = vadd.f32 %v152_v13, %v139_v14  ;;  %v141_v16 = vpop.f32.mrb[1].mxu0 }
  0xfa   :  { %v142_v17 = vpop.f32.mrb[2].mxu0 }
  0xfb   :  { %v145_v18 = vmax.f32 %v140_v15, 0.0  ;;  %v143_v19 = vpop.f32.mrb[3].mxu0 }
  0xfd   :  { %147 = vst.msk [vmem:[%s237_s3] sm:$0xff] %vm146_vm1, %v145_v18 }

// kernel: resnet_forward.24
= control target key start
LH: loop header
LB: loop body
LE: loop exit
PB: predicated region body
PF: predicated region fallthrough
CT: control target
= control target key end

     0   :  { %v352_v1 = vmov 0.0   ;;  %vm353_vm0 = vmmov 0   ;;  %vm181_vm1 = vcmask 261120   ;;  %s450_s1 = inlined_call_operand.vmem [shape: bf16[288,32], index: 1, kind: input, shape index: {}]   ;;  %s451_s0 = inlined_call_operand.vmem [shape: bf16[8,288], index: 0, kind: input, shape index: {}]   ;;  %s452_s2 = inlined_call_operand.vmem [shape: f32[1,32], index: 2, kind: input, shape index: {}]   ;;  %s453_s3 = inlined_call_operand.vmem [shape: f32[8,32], index: 3, kind: input, shape index: {}]   ;;  %s454_s4 = inlined_call_operand.vmem [shape: f32[8,32], index: 4, kind: output, shape index: {}]  }
   0x1   :  { %v331_v0 = vld [vmem:[%s450_s1 + $0x40] sm:$0xff]   ;;  %321 = vmatprep.subr.bf16.mxu1 %v352_v1  ;;  %325 = vmatprep.mubr.msk.bf16.mxu1 %vm353_vm0, %v352_v1  ;;  %v333_v3 = vld [vmem:[%s450_s1 + $0x48] sm:$0xff]   ;;  %v335_v5 = vld [vmem:[%s450_s1 + $0x50] sm:$0xff]  }
   0x2   :  { %v332_v2 = vld [vmem:[%s450_s1] sm:$0xff]   ;;  %296 = vmatprep.subr.bf16.mxu0 %v331_v0  ;;  %v334_v4 = vld [vmem:[%s450_s1 + $0x8] sm:$0xff]   ;;  %v336_v6 = vld [vmem:[%s450_s1 + $0x10] sm:$0xff]  }
   0x3   :  { %297 = vmatpush3.bf16.msra.mxu0 %v332_v2  ;;  %v337_v7 = vld [vmem:[%s450_s1 + $0x58] sm:$0xff]   ;;  %v339_v9 = vld [vmem:[%s450_s1 + $0x60] sm:$0xff]   ;;  %v341_v12 = vld [vmem:[%s450_s1 + $0x68] sm:$0xff]  }
   0x4   :  { %298 = vmatprep.subr.bf16.mxu0 %v333_v3  ;;  %v338_v8 = vld [vmem:[%s450_s1 + $0x18] sm:$0xff]   ;;  %v345_v10 = vld [vmem:[%s450_s1 + $0x80] sm:$0xff]   ;;  %v351_v15 = vld [vmem:[%s450_s1 + $0x88] sm:$0xff]  }
   0x5   :  { %v340_v11 = vld [vmem:[%s450_s1 + $0x20] sm:$0xff]   ;;  %322 = vmatpush3.bf16.msra.mxu1 %v345_v10  ;;  %v342_v16 = vld [vmem:[%s450_s1 + $0x28] sm:$0xff]   ;;  %v343_v17 = vld [vmem:[%s450_s1 + $0x70] sm:$0xff]  }
   0x6   :  { %323 = vmatprep.subr.bf16.mxu1 %v352_v1  ;;  %v18_v13 = vld [vmem:[%s451_s0] sm:$0xff]  ;;  %v350_v18 = vld [vmem:[%s451_s0 + $0x8] ss:$0 sps:$4 sm:$0xff]   ;;  %v344_v19 = vld [vmem:[%s450_s1 + $0x30] sm:$0xff]  }
   0x7   :  { %299 = vmatpush3.bf16.msra.mxu0 %v334_v4  ;;  %v275_v14 = vcombine.high %v18_v13, %v18_v13  ;;  %v346_v20 = vld [vmem:[%s450_s1 + $0x78] sm:$0xff]   ;;  %v274_v22 = vcombine.low %v18_v13, %v18_v13  ;;  %v273_v29 = vld [vmem:[%s452_s2] ss:$0 sm:$0xff] }
   0x8   :  { %300 = vmatprep.subr.bf16.mxu0 %v335_v5  ;;  %v347_v21 = vld [vmem:[%s450_s1 + $0x38] sm:$0xff]   ;;  %v265_v34 = vld [vmem:[%s453_s3] sm:$0xff] }
   0x9   :  { %217 = vmatprep.mubr.bf16.mxu0 %v275_v14  ;;  %324 = vmatpush3.bf16.msra.mxu1 %v351_v15 }
   0xb   :  { %301 = vmatpush3.bf16.msra.mxu0 %v336_v6 }
   0xc   :  { %302 = vmatprep.subr.bf16.mxu0 %v337_v7  ;;  %326 = vmatmul.mubr.msk.bf16.vlgmr.msra.gmra.mrb[0].mxu1 %vm181_vm1, %v350_v18 }
   0xf   :  { %303 = vmatpush3.bf16.msra.mxu0 %v338_v8 }
  0x10   :  { %304 = vmatprep.subr.bf16.mxu0 %v339_v9 }
  0x13   :  { %305 = vmatpush3.bf16.msra.mxu0 %v340_v11 }
  0x14   :  { %306 = vmatprep.subr.bf16.mxu0 %v341_v12 }
  0x17   :  { %307 = vmatpush3.bf16.msra.mxu0 %v342_v16 }
  0x18   :  { %308 = vmatprep.subr.bf16.mxu0 %v343_v17 }
  0x1b   :  { %309 = vmatpush3.bf16.msra.mxu0 %v344_v19 }
  0x1c   :  { %310 = vmatprep.subr.bf16.mxu0 %v346_v20 }
  0x1f   :  { %311 = vmatpush3.bf16.msra.mxu0 %v347_v21 }
  0x22   :  { %218 = vmatmul.mubr.bf16.vlgmr.msra.gmra.mrb[0].mxu0 %v274_v22 }
  0xdf   :  { %v259_v23 = vpop.f32.mrb[0].mxu1 }
  0xe0   :  { %v327_v24 = vpop.f32.mrb[1].mxu1 }
  0xe1   :  { %v262_v25 = vpop.f32.mrb[2].mxu1 }
  0xe2   :  { %v328_v26 = vpop.f32.mrb[3].mxu1 }
  0xf5   :  { %v312_v27 = vpop.f32.mrb[0].mxu0 }
  0xf6   :  { %v313_v28 = vpop.f32.mrb[1].mxu0 }
  0xf7   :  { %v314_v30 = vadd.f32 %v313_v28, %v312_v27  ;;  %v315_v31 = vpop.f32.mrb[2].mxu0 }
  0xf8   :  { %v316_v32 = vpop.f32.mrb[3].mxu0 }
  0xf9   :  { %v220_v33 = vadd.f32 %v314_v30, %v273_v29 }
  0xfb   :  { %v260_v35 = vadd.f32 %v259_v23, %v220_v33 }
  0xfd   :  { %v266_v36 = vadd.f32 %v265_v34, %v260_v35 }
  0xff   :  { %v267_v37 = vmax.f32 %v266_v36, 0.0 }
 0x101   :  { %268 = vst.msk [vmem:[%s454_s4] sm:$0xff] %vm181_vm1, %v267_v37 }

// kernel: resnet_forward.25
= control target key start
LH: loop header
LB: loop body
LE: loop exit
PB: predicated region body
PF: predicated region fallthrough
CT: control target
= control target key end

     0   :  { %13 = vsyncpa [#allocation3], 0  ;;  %v536_v3 = vmov 0.0|0.0   ;;  %vm537_vm0 = vmmov 0   ;;  %v538_v11 = vmov 0.0   ;;  %vm29_vm1 = vcmask 517120   ;;  %s703_s0 = inlined_call_operand.vmem [shape: f32[2,2,64], index: 0, kind: input, shape index: {}]   ;;  %s704_s1 = inlined_call_operand.vmem [shape: f32[64,32], index: 1, kind: input, shape index: {}]   ;;  %s705_s2 = inlined_call_operand.vmem [shape: f32[64,32], index: 2, kind: input, shape index: {}]   ;;  %s706_s3 = inlined_call_operand.vmem [shape: f32[1,32], index: 3, kind: input, shape index: {}]   ;;  %s707_s4 = inlined_call_operand.vmem [shape: f32[32,32], index: 4, kind: input, shape index: {}]   ;;  %s708_s5 = inlined_call_operand.vmem [shape: f32[1,32], index: 5, kind: input, shape index: {}]   ;;  %s709_s6 = inlined_call_operand.hbm [shape: f32[2,32], index: 6, kind: output, shape index: {0}]   ;;  %s710_s7 = inlined_call_operand.hbm [shape: f32[2,32], index: 7, kind: output, shape index: {1}]  }
   0x1   :  { %v79_v0 = vld [vmem:[%s704_s1] sm:$0xff]  ;;  %v80_v1 = vld [vmem:[%s704_s1 + $0x8] sm:$0xff]  ;;  %461 = vmatprep.subr.bf16.mxu1 %v536_v3  ;;  %449 = vmatprep.subr.bf16.mxu0 %v536_v3  ;;  %v81_v6 = vld [vmem:[%s704_s1 + $0x10] sm:$0xff] }
   0x2   :  { %v87_v2 = vld [vmem:[%s705_s2] sm:$0xff]  ;;  %v462_v4 = vpack.c.bf16 %v80_v1, %v79_v0  ;;  %v88_v5 = vld [vmem:[%s705_s2 + $0x8] sm:$0xff]  ;;  %v82_v7 = vld [vmem:[%s704_s1 + $0x18] sm:$0xff]  ;;  %435 = vmatprep.mubr.msk.f32.mxu1 %vm537_vm0, %v538_v11  ;;  %416 = vmatprep.mubr.msk.f32.mxu0 %vm537_vm0, %v538_v11 }
   0x3   :  { %v450_v8 = vpack.c.bf16 %v88_v5, %v87_v2  ;;  %v89_v9 = vld [vmem:[%s705_s2 + $0x10] sm:$0xff]  ;;  %v90_v10 = vld [vmem:[%s705_s2 + $0x18] sm:$0xff]  ;;  %v465_v12 = vpack.c.bf16 %v82_v7, %v81_v6  ;;  %v83_v14 = vld [vmem:[%s704_s1 + $0x20] sm:$0xff] }
   0x4   :  { %463 = vmatpush3.bf16.msra.mxu1 %v462_v4  ;;  %v453_v13 = vpack.c.bf16 %v90_v10, %v89_v9  ;;  %v84_v15 = vld [vmem:[%s704_s1 + $0x28] sm:$0xff]  ;;  %v91_v16 = vld [vmem:[%s705_s2 + $0x20] sm:$0xff] }
   0x5   :  { %451 = vmatpush3.bf16.msra.mxu0 %v450_v8  ;;  %464 = vmatprep.subr.bf16.mxu1 %v536_v3  ;;  %v92_v17 = vld [vmem:[%s705_s2 + $0x28] sm:$0xff]  ;;  %v27_v18 = vld [vmem:[%s703_s0] sm:$0x3]  ;;  %v28_v19 = vld [vmem:[%s703_s0 + $0x2] sm:$0x3] }
   0x6   :  { %452 = vmatprep.subr.bf16.mxu0 %v536_v3  ;;  %v30_v20 = vsel %vm29_vm1, %v27_v18, 0.0  ;;  %v37_v21 = vsel %vm29_vm1, %v28_v19, 0.0 }
   0x7   :  { %14 = vsyncpa [#allocation5], 0  ;;  %v468_v22 = vpack.c.bf16 %v84_v15, %v83_v14  ;;  %v31_v23 = vrot.slane %v30_v20, 4  ;;  %v38_v24 = vrot.slane %v37_v21, 4  ;;  %v456_v25 = vpack.c.bf16 %v92_v17, %v91_v16  ;;  %v85_v26 = vld [vmem:[%s704_s1 + $0x30] sm:$0xff]  ;;  %v86_v27 = vld [vmem:[%s704_s1 + $0x38] sm:$0xff] }
   0x8   :  { %466 = vmatpush3.bf16.msra.mxu1 %v465_v12  ;;  %v93_v28 = vld [vmem:[%s705_s2 + $0x30] sm:$0xff]  ;;  %v94_v29 = vld [vmem:[%s705_s2 + $0x38] sm:$0xff]  ;;  %v471_v32 = vpack.c.bf16 %v86_v27, %v85_v26  ;;  %vm97_vm2 = vcmask 1041409   ;;  %vm99_vm3 = vcmask 523264   ;;  %v258_v12 = vld [vmem:[%s707_s4] sm:$0xff]  ;;  %vm255_vm8 = vcmask 254976  }
   0x9   :  { %454 = vmatpush3.bf16.msra.mxu0 %v453_v13  ;;  %467 = vmatprep.subr.bf16.mxu1 %v536_v3  ;;  %v32_v30 = vadd.f32 %v31_v23, %v30_v20  ;;  %v39_v31 = vadd.f32 %v38_v24, %v37_v21  ;;  %v459_v35 = vpack.c.bf16 %v94_v29, %v93_v28  ;;  %v259_v13 = vld [vmem:[%s707_s4 + $0x8] sm:$0xff]  ;;  %v260_v15 = vld [vmem:[%s707_s4 + $0x10] sm:$0xff]  ;;  %v374_v20 = vld [vmem:[%s706_s3] ss:$0 sm:$0xff]  ;;  %vm269_vm9 = vcmask 261120   ;;  %s539_s21 = smov [#allocation2]  }
   0xa   :  { %455 = vmatprep.subr.bf16.mxu0 %v536_v3  ;;  %v474_v14 = vpack.c.bf16 %v259_v13, %v258_v12 }
   0xb   :  { %v33_v33 = vrot.slane %v32_v30, 2  ;;  %v40_v34 = vrot.slane %v39_v31, 2 }
   0xc   :  { %469 = vmatpush3.bf16.msra.mxu1 %v468_v22 }
   0xd   :  { %457 = vmatpush3.bf16.msra.mxu0 %v456_v25  ;;  %470 = vmatprep.subr.bf16.mxu1 %v536_v3  ;;  %v34_v36 = vadd.f32 %v33_v33, %v32_v30  ;;  %v41_v37 = vadd.f32 %v40_v34, %v39_v31 }
   0xe   :  { %458 = vmatprep.subr.bf16.mxu0 %v536_v3 }
   0xf   :  { %v35_v38 = vrot.slane %v34_v36, 1  ;;  %v42_v39 = vrot.slane %v41_v37, 1 }
  0x10   :  { %472 = vmatpush3.bf16.msra.mxu1 %v471_v32 }
  0x11   :  { %460 = vmatpush3.bf16.msra.mxu0 %v459_v35  ;;  %v36_v40 = vadd.f32 %v35_v38, %v34_v36  ;;  %v43_v41 = vadd.f32 %v42_v39, %v41_v37 }
  0x12   :  { %473 = vmatprep.subr.bf16.mxu0 %v536_v3 }
  0x13   :  { %v45_v42 = vmul.f32 0.5, %v36_v40  ;;  %v46_v43 = vmul.f32 0.5, %v43_v41 }
  0x15   :  { %v47_v44 = vsub.f32 %v27_v18, %v45_v42  ;;  %v48_v45 = vsub.f32 %v28_v19, %v46_v43  ;;  %v174_v46 = vsel %vm97_vm2, %v46_v43, %v45_v42 }
  0x16   :  { %436 = vmatmul.mubr.msk.f32.vlgmr.msra.gmra.mrb[0].mxu1 %vm99_vm3, %v174_v46 }
  0x17   :  { %v49_v47 = vmul.f32 %v47_v44, %v47_v44  ;;  %v50_v48 = vmul.f32 %v48_v45, %v48_v45 }
  0x19   :  { %v51_v49 = vsel %vm29_vm1, %v49_v47, 0.0  ;;  %v58_v50 = vsel %vm29_vm1, %v50_v48, 0.0 }
  0x1a   :  { %v52_v51 = vrot.slane %v51_v49, 4  ;;  %v59_v52 = vrot.slane %v58_v50, 4 }
  0x1c   :  { %v53_v53 = vadd.f32 %v52_v51, %v51_v49  ;;  %v60_v54 = vadd.f32 %v59_v52, %v58_v50 }
  0x1e   :  { %v54_v55 = vrot.slane %v53_v53, 2  ;;  %v61_v56 = vrot.slane %v60_v54, 2 }
  0x20   :  { %v55_v57 = vadd.f32 %v54_v55, %v53_v53  ;;  %v62_v58 = vadd.f32 %v61_v56, %v60_v54 }
  0x22   :  { %v56_v59 = vrot.slane %v55_v57, 1  ;;  %v63_v60 = vrot.slane %v62_v58, 1 }
  0x24   :  { %v57_v61 = vadd.f32 %v56_v59, %v55_v57  ;;  %v64_v62 = vadd.f32 %v63_v60, %v62_v58 }
  0x26   :  { %484 = vrsqrt.f32 %v57_v61  ;;  %vm67_vm4 = vcmp.eq.f32.partialorder %v57_v61, inf  ;;  %v70_v0 = vand.u32 2147483648, %v57_v61  ;;  %vm69_vm5 = vcmp.eq.f32.partialorder %v57_v61, 0.0 }
  0x27   :  { %486 = vrsqrt.f32 %v64_v62  ;;  %vm74_vm6 = vcmp.eq.f32.partialorder %v64_v62, inf  ;;  %v77_v4 = vand.u32 2147483648, %v64_v62  ;;  %vm76_vm7 = vcmp.eq.f32.partialorder %v64_v62, 0.0 }
  0x30   :  { %v485_v63 = vpop.eup %484 }
  0x31   :  { %v487_v1 = vpop.eup %486  ;;  %v66_v2 = vmul.f32 %v485_v63, %v57_v61 }
  0x32   :  { %v73_v5 = vmul.f32 %v487_v1, %v64_v62 }
  0x33   :  { %v68_v6 = vsel %vm67_vm4, %v57_v61, %v66_v2 }
  0x34   :  { %v71_v7 = vsel %vm69_vm5, %v70_v0, %v68_v6  ;;  %v75_v8 = vsel %vm74_vm6, %v64_v62, %v73_v5 }
  0x35   :  { %v78_v9 = vsel %vm76_vm7, %v77_v4, %v75_v8 }
  0x36   :  { %v98_v10 = vsel %vm97_vm2, %v78_v9, %v71_v7 }
  0x37   :  { %417 = vmatmul.mubr.msk.f32.vlgmr.msra.gmra.mrb[0].mxu0 %vm99_vm3, %v98_v10 }
  0x38   :  { %446 = vmatprep.mubr.msk.f32.mxu0 %vm537_vm0, %v538_v11  ;;  %475 = vmatpush3.bf16.msra.mxu0 %v474_v14  ;;  %v261_v11 = vld [vmem:[%s707_s4 + $0x18] sm:$0xff]  ;;  %s350_s4 = sshll.u32 %s539_s21, 4  ;;  %s351_s4 = int_to_ptr.vmem [resolvable:$true] %s350_s4 }
  0x39   :  { %476 = vmatprep.subr.bf16.mxu0 %v536_v3  ;;  %v477_v16 = vpack.c.bf16 %v261_v11, %v260_v15  ;;  %s488_s22 = scalar_lea.vmem %s351_s4, 32  ;;  %p493_p1 = scmp.lt.s32.totalorder %s351_s4, %s351_s4 }
  0x3a   :  { %p489_p0 = scmp.ne.s32.totalorder %s351_s4, %s488_s22  ;;  %p494_p2 = scmp.lt.s32.totalorder %s488_s22, %s488_s22 }
  0x3c   :  { %478 = vmatpush3.bf16.msra.mxu0 %v477_v16  ;;  %p495_p3 = por %p494_p2, %p493_p1 }
  0x3e   :  { %p496_p4 = pnand %p495_p3, %p489_p0 }
  0xe9   :  { %v243_v17 = vpop.f32.mrb[0].mxu1 }
  0xea   :  { %v437_v18 = vpop.f32.mrb[1].mxu1 }
 0x10a   :  { %v168_v19 = vpop.f32.mrb[0].mxu0 }
 0x10b   :  { %v244_v21 = vadd.f32 %v243_v17, %v168_v19  ;;  %v418_v22 = vpop.f32.mrb[1].mxu0 }
 0x10d   :  { %v254_v3 = vadd.f32 %v374_v20, %v244_v21 }
 0x10f   :  { %v257_v23 = vmax.f32 %v254_v3, 0.0  ;;  %256 = vst.msk [vmem:[#allocation2] sm:$0x3] %vm255_vm8, %v254_v3 }
 0x111   :  { %447 = vmatmul.mubr.msk.f32.vlgmr.msra.gmra.mrb[2].mxu0 %vm269_vm9, %v257_v23 }
 0x112   :  { %499 = shalt.err (!%p496_p4)
}
 0x113   :  { %s500_s24 = scalar_lea.hbm %s709_s6, 32 }
 0x114   :  { %p501_p5 = scmp.ne.s32.totalorder %s709_s6, %s500_s24  ;;  %p504_p6 = scmp.lt.u32.totalorder %s500_s24, %s709_s6 }
 0x116   :  { %p506_p7 = pnand %p504_p6, %p501_p5 }
 0x118   :  { %509 = shalt.err (!%p506_p7)
}
 0x119   :  { %353 = dma.vmem_to_hbm [thread:$0]  %s351_s4, 32, %s709_s6, [#allocation3]   ;;  %v375_v24 = vld [vmem:[%s708_s5] ss:$0 sm:$0xff] }
 0x11a   :  { %s540_s0 = smov [#allocation4]  }
 0x11b   :  { %s360_s10 = sshll.u32 %s540_s0, 4  ;;  %s361_s10 = int_to_ptr.vmem [resolvable:$true] %s360_s10 }
 0x11c   :  { %s510_s11 = scalar_lea.vmem %s361_s10, 32  ;;  %p515_p9 = scmp.lt.s32.totalorder %s361_s10, %s361_s10 }
 0x11d   :  { %p511_p8 = scmp.ne.s32.totalorder %s361_s10, %s510_s11  ;;  %p516_p10 = scmp.lt.s32.totalorder %s510_s11, %s510_s11 }
 0x11f   :  { %p517_p11 = por %p516_p10, %p515_p9 }
 0x121   :  { %p518_p12 = pnand %p517_p11, %p511_p8 }
 0x1e4   :  { %v339_v25 = vpop.f32.mrb[2].mxu0 }
 0x1e5   :  { %v340_v26 = vadd.f32 %v375_v24, %v339_v25  ;;  %v448_v27 = vpop.f32.mrb[3].mxu0 }
 0x1e7   :  { %343 = vst.msk [vmem:[#allocation4] sm:$0x3] %vm255_vm8, %v340_v26 }
 0x1e8   :  { %521 = shalt.err (!%p518_p12)
}
 0x1e9   :  { %s522_s1 = scalar_lea.hbm %s710_s7, 32 }
 0x1ea   :  { %p523_p13 = scmp.ne.s32.totalorder %s710_s7, %s522_s1  ;;  %p526_p0 = scmp.lt.u32.totalorder %s522_s1, %s710_s7 }
 0x1ec   :  { %p528_p1 = pnand %p526_p0, %p523_p13 }
 0x1ee   :  { %531 = shalt.err (!%p528_p1)
}
 0x1ef   :  { %363 = dma.vmem_to_hbm [thread:$0]  %s361_s10, 32, %s710_s7, [#allocation5]  }
 0x1f0   :  { %532 = dma.done.wait [#allocation3], 32  }
 0x1f1   :  { %533 = vsyncadd [#allocation3], 4294967264 }
 0x1f2   :  { %534 = dma.done.wait [#allocation5], 32  }
 0x1f3   :  { %535 = vsyncadd [#allocation5], 4294967264 }
 0x1f4   :  { %370 = vsyncpa [#allocation3], 1 }
 0x1f5   :  { %371 = vsyncpa [#allocation5], 1 }

</bundles_post_ra>
